<compile_context>
chip_gen: v7x
topology: tpu7x:2x2x1
jax: 0.10.0
libtpu: 0.0.40
codegen_flags: <defaults>
</compile_context>

<pallas_src>
import jax
import jax.numpy as jnp
from jax.experimental import pallas as pl
from jax.experimental.pallas import tpu as pltpu

LANE = 128      # TPU lane width; one 128-lane block per GRU gate.
SUBLANE = 8     # f32 sublane granule; batch is padded to a multiple of this.


def _round_up(x, m):
    return (x + m - 1) // m * m


# ----------------------------------------------------------------------------
# Kernel 1: multi-layer GRU recurrence (layer wavefront).
#   x_ref    : (T*Bp, Kp)     bf16  time-major [emb ; context], zero padded
#   h0_ref   : (L, Bp, Hp)    f32   initial hidden state (pad lanes/rows == 0)
#   w_ih_ref : (L, Kp, 3*G)   bf16  input weights, gate g in lanes [g*G, g*G+H)
#   w_hh_ref : (L, Hp, 3*G)   bf16  hidden weights (same gate layout)
#   b_i_ref  : (L, 1, 3*G)    f32   fused bias: r/z gates = b_ih+b_hh, n = b_ih
#   b_hn_ref : (L, 1, G)      f32   n-gate hidden bias (applied inside r*(...))
#   y_ref    : (T*Bp, Hp)     f32   OUT: last layer's output sequence
#   hN_ref   : (L, Bp, Hp)    f32   OUT: final hidden state (aliased to h0)
#   gi0_ref  : VMEM scratch (T*Bp, 3*G) f32  hoisted layer-0 projection
#   yk_ref   : VMEM scratch (max(L-1,1), T*Bp, Hp) f32  inner layers' outputs
# ----------------------------------------------------------------------------
def gru_stack_kernel(x_ref, h0_ref, w_ih_ref, w_hh_ref, b_i_ref, b_hn_ref,
                     y_ref, hN_ref, gi0_ref, yk_ref):
    L, Bp, Hp = h0_ref.shape
    TBp = x_ref.shape[0]
    T = TBp // Bp
    G = LANE

    # Hoisted layer-0 input projection for ALL time steps: one big matmul,
    # off the serial critical path, result parked in VMEM scratch (bounds the
    # live range -- per-step reads pull only one (Bp, 3G) tile into vregs).
    gi0_ref[...] = (jnp.dot(x_ref[...], w_ih_ref[0],
                            preferred_element_type=jnp.float32)
                    + b_i_ref[0])

    # Per-layer hidden state carried through the (static) wavefront loop.
    h = [h0_ref[l] for l in range(L)]

    def step(l, t):
        sl = pl.ds(t * Bp, Bp)                 # static start, sublane aligned
        if l == 0:
            gi = gi0_ref[sl, :]                                  # (Bp, 3G) f32
        else:
            x_in = yk_ref.at[l - 1][sl, :].astype(w_ih_ref.dtype)
            gi = (jnp.dot(x_in, w_ih_ref.at[l][0:Hp, :],
                          preferred_element_type=jnp.float32) + b_i_ref[l])
        gh = jnp.dot(h[l].astype(w_hh_ref.dtype), w_hh_ref[l],
                     preferred_element_type=jnp.float32)         # (Bp, 3G) f32
        # Gate slices are 128-lane aligned -> free.  Gate math stays f32.
        r = jax.nn.sigmoid(gi[:, 0:G] + gh[:, 0:G])
        z = jax.nn.sigmoid(gi[:, G:2 * G] + gh[:, G:2 * G])
        n = jnp.tanh(gi[:, 2 * G:3 * G]
                     + r * (gh[:, 2 * G:3 * G] + b_hn_ref[l]))
        h_new = (1.0 - z) * n + z * h[l]
        h[l] = h_new
        if l == L - 1:
            y_ref[sl, :] = h_new               # feeds fc_out (kernel 2)
        else:
            yk_ref.at[l][sl, :] = h_new        # feeds layer l+1

    # Layer wavefront: (layer l, time t) runs on diagonal d = l + t, so one
    # layer's MXU push overlaps the neighbouring layer's EUP/VPU gate math.
    # Dependencies (h[l] at t-1, y[l-1] at t) both come from diagonal d-1.
    for d in range(T + L - 1):
        for l in range(L):
            t = d - l
            if 0 <= t < T:
                step(l, t)

    for l in range(L):
        hN_ref[l] = h[l]


# ----------------------------------------------------------------------------
# Kernel 2: fc_out, tiled over rows and vocab (lane-dense output tiles).
# ----------------------------------------------------------------------------
def fc_out_kernel(y_ref, w_ref, b_ref, o_ref):
    o_ref[...] = (jnp.dot(y_ref[...].astype(w_ref.dtype), w_ref[...],
                          preferred_element_type=jnp.float32)
                  + b_ref[...])


def run_gru_stack(x_flat, h0, w_ih, w_hh, b_i, b_hn):
    TBp = x_flat.shape[0]
    L, Bp, Hp = h0.shape
    G = LANE

    def fs(shape):
        nd = len(shape)
        return pl.BlockSpec(shape, lambda i, nd=nd: (0,) * nd)

    # NOTE: whole-array blocks are fine here (weights + activations are small
    # relative to VMEM).  For much larger L/H, move the per-layer weights
    # behind memory_space=pl.ANY + manual copies to drop the implicit double
    # buffering of once-fetched inputs.
    return pl.pallas_call(
        gru_stack_kernel,
        out_shape=(jax.ShapeDtypeStruct((TBp, Hp), jnp.float32),
                   jax.ShapeDtypeStruct((L, Bp, Hp), jnp.float32)),
        grid_spec=pltpu.PrefetchScalarGridSpec(
            num_scalar_prefetch=0,
            grid=(1,),
            in_specs=[fs(x_flat.shape), fs(h0.shape), fs(w_ih.shape),
                      fs(w_hh.shape), fs(b_i.shape), fs(b_hn.shape)],
            out_specs=(fs((TBp, Hp)), fs((L, Bp, Hp))),
            scratch_shapes=[
                pltpu.VMEM((TBp, 3 * G), jnp.float32),
                pltpu.VMEM((max(L - 1, 1), TBp, Hp), jnp.float32)]),
        input_output_aliases={1: 1},    # h0 HBM buffer is reused for hN
        compiler_params=pltpu.CompilerParams(
            dimension_semantics=("arbitrary",),
            vmem_limit_bytes=32 * 1024 * 1024),
    )(x_flat, h0, w_ih, w_hh, b_i, b_hn)


def run_fc_out(y_seq, w_out, b_out, *, tile_m=256, tile_v=2048):
    TBp, Hp = y_seq.shape
    Vp = w_out.shape[1]
    tm = min(tile_m, TBp)                   # multiple of 8 (TBp = T * Bp)
    tv = min(tile_v, Vp)                    # multiple of 128
    grid = (pl.cdiv(TBp, tm), pl.cdiv(Vp, tv))
    return pl.pallas_call(
        fc_out_kernel,
        out_shape=jax.ShapeDtypeStruct((TBp, Vp), jnp.float32),
        grid_spec=pltpu.PrefetchScalarGridSpec(
            num_scalar_prefetch=0,
            grid=grid,
            in_specs=[pl.BlockSpec((tm, Hp), lambda i, j: (i, 0)),
                      pl.BlockSpec((Hp, tv), lambda i, j: (0, j)),
                      pl.BlockSpec((1, tv), lambda i, j: (0, j))],
            out_specs=pl.BlockSpec((tm, tv), lambda i, j: (i, j))),
        compiler_params=pltpu.CompilerParams(
            dimension_semantics=("parallel", "parallel"),
            vmem_limit_bytes=32 * 1024 * 1024),
    )(y_seq, w_out, b_out)


# ----------------------------------------------------------------------------
# Raw (nn.Module-shaped) parameter init, deterministic & synthetic.
# ----------------------------------------------------------------------------
def init_params(key, vocab_size, n_embd, block_size, hid_dim, num_layers):
    D_in = n_embd + hid_dim
    H = hid_dim
    ks = jax.random.split(key, 3 + num_layers)
    params = {}
    params['token_emb'] = 0.1 * jax.random.normal(
        ks[0], (vocab_size, n_embd), jnp.float32)
    params['pos_emb'] = 0.1 * jax.random.normal(
        ks[1], (block_size, n_embd), jnp.float32)
    params['w_ih'], params['w_hh'] = [], []
    params['b_ih'], params['b_hh'] = [], []
    for l in range(num_layers):
        in_dim = D_in if l == 0 else H
        k1, k2, k3, k4 = jax.random.split(ks[2 + l], 4)
        params['w_ih'].append(
            0.1 * jax.random.normal(k1, (3 * H, in_dim), jnp.float32))
        params['w_hh'].append(
            0.1 * jax.random.normal(k2, (3 * H, H), jnp.float32))
        params['b_ih'].append(
            0.1 * jax.random.normal(k3, (3 * H,), jnp.float32))
        params['b_hh'].append(
            0.1 * jax.random.normal(k4, (3 * H,), jnp.float32))
    kf1, kf2 = jax.random.split(ks[2 + num_layers], 2)
    params['w_out'] = 0.1 * jax.random.normal(
        kf1, (vocab_size, hid_dim), jnp.float32)
    params['b_out'] = 0.1 * jax.random.normal(kf2, (vocab_size,), jnp.float32)
    return params


# ----------------------------------------------------------------------------
# One-time repack into the lane-aligned kernel layout (bf16 weights).
# ----------------------------------------------------------------------------
def pack_decoder_params(params):
    H = params['w_hh'][0].shape[1]
    D_in = params['w_ih'][0].shape[1]
    V = params['w_out'].shape[0]
    L = len(params['w_ih'])
    G = LANE
    Hp = _round_up(H, LANE)
    Kp = _round_up(max(D_in, H), LANE)
    Vp = _round_up(V, LANE)
    # TODO(synk): support H > 128 with ceil(H/128) 128-lane blocks per gate.
    assert H <= G, "each gate must fit in one 128-lane block"

    # Invariant (keeps padded hidden lanes exactly zero through the GRU):
    # every padded weight row/lane and padded bias lane is 0, and the wrapper
    # zero-pads x / h0.  Do not pad with anything else.
    w_ih_p = jnp.zeros((L, Kp, 3 * G), jnp.float32)
    w_hh_p = jnp.zeros((L, Hp, 3 * G), jnp.float32)
    b_i_p = jnp.zeros((L, 1, 3 * G), jnp.float32)    # fused input-side bias
    b_hn_p = jnp.zeros((L, 1, G), jnp.float32)       # n-gate hidden bias
    for l in range(L):
        in_dim = params['w_ih'][l].shape[1]
        wi, wh = params['w_ih'][l], params['w_hh'][l]
        bi, bh = params['b_ih'][l], params['b_hh'][l]
        for g in range(3):  # gate order r, z, n (PyTorch convention)
            w_ih_p = w_ih_p.at[l, :in_dim, g * G:g * G + H].set(
                wi[g * H:(g + 1) * H, :].T)
            w_hh_p = w_hh_p.at[l, :H, g * G:g * G + H].set(
                wh[g * H:(g + 1) * H, :].T)
        # Fold r/z hidden biases into the input bias; the n-gate hidden bias
        # must stay separate (it sits inside r * (...) in PyTorch's GRU).
        b_i_p = b_i_p.at[l, 0, 0 * G:0 * G + H].set(bi[0:H] + bh[0:H])
        b_i_p = b_i_p.at[l, 0, 1 * G:1 * G + H].set(bi[H:2 * H] + bh[H:2 * H])
        b_i_p = b_i_p.at[l, 0, 2 * G:2 * G + H].set(bi[2 * H:3 * H])
        b_hn_p = b_hn_p.at[l, 0, :H].set(bh[2 * H:3 * H])

    w_out_p = jnp.zeros((Hp, Vp), jnp.float32).at[:H, :V].set(params['w_out'].T)
    b_out_p = jnp.zeros((1, Vp), jnp.float32).at[0, :V].set(params['b_out'])

    return dict(w_ih=w_ih_p.astype(jnp.bfloat16),
                w_hh=w_hh_p.astype(jnp.bfloat16),
                b_i=b_i_p, b_hn=b_hn_p,
                w_out=w_out_p.astype(jnp.bfloat16),
                b_out=b_out_p,
                Kp=Kp, Hp=Hp, Vp=Vp)


# ----------------------------------------------------------------------------
# Forward (matches Decoder.forward): glue in JAX, hot path in the kernels.
# ----------------------------------------------------------------------------
def decoder_forward(params, packed, x_tokens, hidden, context):
    B, T = x_tokens.shape
    L, _, H = hidden.shape
    V = params['w_out'].shape[0]
    Kp, Hp, Vp = packed['Kp'], packed['Hp'], packed['Vp']
    Bp = _round_up(B, SUBLANE)

    tok = jnp.take(params['token_emb'], x_tokens, axis=0)        # (B, T, E)
    pos = params['pos_emb'][:T]                                  # (T, E)
    emb = tok + pos[None, :, :]
    ctx = context[-1]                             # == context[-1:].permute(1,0,2)
    ctx_rep = jnp.broadcast_to(ctx[:, None, :], (B, T, H))       # .repeat(1,T,1)
    emb_cat = jnp.concatenate([emb, ctx_rep], axis=2).astype(jnp.float32)
    D_in = emb_cat.shape[-1]

    # Time-major, batch padded to a sublane multiple, lanes padded to Kp.
    x_tm = jnp.zeros((T, Bp, Kp), jnp.float32)
    x_tm = x_tm.at[:, :B, :D_in].set(jnp.transpose(emb_cat, (1, 0, 2)))
    x_flat = x_tm.reshape(T * Bp, Kp).astype(jnp.bfloat16)
    h0 = jnp.zeros((L, Bp, Hp), jnp.float32).at[:, :B, :H].set(
        hidden.astype(jnp.float32))

    y_seq, hN_p = run_gru_stack(x_flat, h0, packed['w_ih'], packed['w_hh'],
                                packed['b_i'], packed['b_hn'])
    logits_p = run_fc_out(y_seq, packed['w_out'], packed['b_out'])

    out = logits_p.reshape(T, Bp, Vp)[:, :B, :V].transpose(1, 0, 2)  # (B,T,V)
    h_new = hN_p[:, :B, :H]                                          # (L,B,H)
    # torch's output.squeeze(0) is a no-op for B > 1.
    return out, h_new


# ----------------------------------------------------------------------------
# Pure-JAX f32 reference (correctness check only).
# ----------------------------------------------------------------------------
def decoder_forward_ref(params, x_tokens, hidden, context):
    B, T = x_tokens.shape
    L, _, H = hidden.shape
    tok = jnp.take(params['token_emb'], x_tokens, axis=0)
    emb = tok + params['pos_emb'][:T][None]
    ctx = context[-1]
    inp = jnp.concatenate(
        [emb, jnp.broadcast_to(ctx[:, None, :], (B, T, H))], axis=2)
    h_out = []
    for l in range(L):
        wi, wh = params['w_ih'][l], params['w_hh'][l]
        bi, bh = params['b_ih'][l], params['b_hh'][l]
        h = hidden[l]
        outs = []
        for t in range(T):
            x_t = inp[:, t, :]
            gi = x_t @ wi.T + bi
            gh = h @ wh.T + bh
            r = jax.nn.sigmoid(gi[:, :H] + gh[:, :H])
            z = jax.nn.sigmoid(gi[:, H:2 * H] + gh[:, H:2 * H])
            n = jnp.tanh(gi[:, 2 * H:] + r * gh[:, 2 * H:])
            h = (1 - z) * n + z * h
            outs.append(h)
        inp = jnp.stack(outs, axis=1)
        h_out.append(h)
    out = inp @ params['w_out'].T + params['b_out']
    return out, jnp.stack(h_out, axis=0)


if __name__ == "__main__":
    vocab_size, n_embd, block_size, hid_dim, num_layers = 50, 16, 16, 32, 2
    B, T = 2, 8

    key = jax.random.PRNGKey(0)
    kp, kx, kh, kc = jax.random.split(key, 4)
    params = init_params(kp, vocab_size, n_embd, block_size, hid_dim,
                         num_layers)
    packed = pack_decoder_params(params)
    x_tokens = jax.random.randint(kx, (B, T), 0, vocab_size)
    hidden = 0.1 * jax.random.normal(kh, (num_layers, B, hid_dim), jnp.float32)
    context = 0.1 * jax.random.normal(kc, (num_layers, B, hid_dim), jnp.float32)

    out, h_new = decoder_forward(params, packed, x_tokens, hidden, context)
    jax.block_until_ready((out, h_new))

    out_ref, h_ref = decoder_forward_ref(params, x_tokens, hidden, context)
    assert out.shape == (B, T, vocab_size)
    assert h_new.shape == (num_layers, B, hid_dim)
    # Tolerance accounts for bf16 weight / matmul-input quantization (f32
    # accumulation and f32 gate math keep the error ~1e-3 at these scales).
    assert jnp.allclose(out, out_ref, atol=2e-2, rtol=2e-2)
    assert jnp.allclose(h_new, h_ref, atol=2e-2, rtol=2e-2)

    print("KERNEL_OK")
</pallas_src>

<mosaic_0001>
module attributes {stable_mosaic.version = 11 : i64} {
  func.func @gru_stack_kernel(%arg0: i32, %arg1: memref<64x128xbf16, #tpu.memory_space<vmem>>, %arg2: memref<2x8x128xf32, #tpu.memory_space<vmem>>, %arg3: memref<2x128x384xbf16, #tpu.memory_space<vmem>>, %arg4: memref<2x128x384xbf16, #tpu.memory_space<vmem>>, %arg5: memref<2x1x384xf32, #tpu.memory_space<vmem>>, %arg6: memref<2x1x128xf32, #tpu.memory_space<vmem>>, %arg7: memref<64x128xf32, #tpu.memory_space<vmem>>, %arg8: memref<2x8x128xf32, #tpu.memory_space<vmem>>, %arg9: memref<64x384xf32, #tpu.memory_space<vmem>>, %arg10: memref<1x64x128xf32, #tpu.memory_space<vmem>>) attributes {dimension_semantics = [#tpu.dimension_semantics<arbitrary>], iteration_bounds = array<i64: 1>, scalar_prefetch = 0 : i64, scratch_operands = 2 : i64, tpu.core_type = #tpu.core_type<tc>, window_params = [{pipeline_mode = #tpu.pipeline_mode<synchronous>, transform_indices = @transform_0, window_bounds = array<i64: 64, 128>}, {pipeline_mode = #tpu.pipeline_mode<synchronous>, transform_indices = @transform_1, window_bounds = array<i64: 2, 8, 128>}, {pipeline_mode = #tpu.pipeline_mode<synchronous>, transform_indices = @transform_2, window_bounds = array<i64: 2, 128, 384>}, {pipeline_mode = #tpu.pipeline_mode<synchronous>, transform_indices = @transform_3, window_bounds = array<i64: 2, 128, 384>}, {pipeline_mode = #tpu.pipeline_mode<synchronous>, transform_indices = @transform_4, window_bounds = array<i64: 2, 1, 384>}, {pipeline_mode = #tpu.pipeline_mode<synchronous>, transform_indices = @transform_5, window_bounds = array<i64: 2, 1, 128>}, {pipeline_mode = #tpu.pipeline_mode<synchronous>, transform_indices = @transform_6, window_bounds = array<i64: 64, 128>}, {pipeline_mode = #tpu.pipeline_mode<synchronous>, transform_indices = @transform_7, window_bounds = array<i64: 2, 8, 128>}]} {
    %c0 = arith.constant 0 : index
    %c0_0 = arith.constant 0 : index
    %0 = vector.load %arg1[%c0, %c0_0] : memref<64x128xbf16, #tpu.memory_space<vmem>>, vector<64x128xbf16>
    %c0_1 = arith.constant 0 : index
    %c0_2 = arith.constant 0 : index
    %c0_3 = arith.constant 0 : index
    %1 = vector.load %arg3[%c0_1, %c0_2, %c0_3] : memref<2x128x384xbf16, #tpu.memory_space<vmem>>, vector<1x128x384xbf16>
    %2 = vector.shape_cast %1 : vector<1x128x384xbf16> to vector<128x384xbf16>
    %cst = arith.constant dense<0.000000e+00> : vector<64x384xf32>
    %3 = tpu.matmul %0, %2, %cst {dimension_numbers = #tpu.dot_dimension_numbers<[1], [0], [0], [1], [0, 0, 1, 1], [], []>} : vector<64x128xbf16>, vector<128x384xbf16>, vector<64x384xf32> -> vector<64x384xf32>
    %c0_4 = arith.constant 0 : index
    %c0_5 = arith.constant 0 : index
    %c0_6 = arith.constant 0 : index
    %4 = vector.load %arg5[%c0_4, %c0_5, %c0_6] : memref<2x1x384xf32, #tpu.memory_space<vmem>>, vector<1x1x384xf32>
    %5 = vector.shape_cast %4 : vector<1x1x384xf32> to vector<1x384xf32>
    %6 = vector.broadcast %5 : vector<1x384xf32> to vector<64x384xf32>
    %7 = arith.addf %3, %6 : vector<64x384xf32>
    %c0_7 = arith.constant 0 : index
    %c0_8 = arith.constant 0 : index
    %8 = vector.load %arg9[%c0_7, %c0_8] : memref<64x384xf32, #tpu.memory_space<vmem>>, vector<64x384xf32>
    tpu.vector_store %arg9[%c0_7, %c0_8], %7 {strides = array<i32>} : memref<64x384xf32, #tpu.memory_space<vmem>>, vector<64x384xf32>,
    %c0_9 = arith.constant 0 : index
    %c0_10 = arith.constant 0 : index
    %c0_11 = arith.constant 0 : index
    %9 = vector.load %arg2[%c0_9, %c0_10, %c0_11] : memref<2x8x128xf32, #tpu.memory_space<vmem>>, vector<1x8x128xf32>
    %10 = vector.shape_cast %9 : vector<1x8x128xf32> to vector<8x128xf32>
    %c1 = arith.constant 1 : index
    %c0_12 = arith.constant 0 : index
    %c0_13 = arith.constant 0 : index
    %11 = vector.load %arg2[%c1, %c0_12, %c0_13] : memref<2x8x128xf32, #tpu.memory_space<vmem>>, vector<1x8x128xf32>
    %12 = vector.shape_cast %11 : vector<1x8x128xf32> to vector<8x128xf32>
    %c0_14 = arith.constant 0 : index
    %c0_15 = arith.constant 0 : index
    %13 = vector.load %arg9[%c0_14, %c0_15] : memref<64x384xf32, #tpu.memory_space<vmem>>, vector<8x384xf32>
    %14 = arith.truncf %10 : vector<8x128xf32> to vector<8x128xbf16>
    %c0_16 = arith.constant 0 : index
    %c0_17 = arith.constant 0 : index
    %c0_18 = arith.constant 0 : index
    %15 = vector.load %arg4[%c0_16, %c0_17, %c0_18] : memref<2x128x384xbf16, #tpu.memory_space<vmem>>, vector<1x128x384xbf16>
    %16 = vector.shape_cast %15 : vector<1x128x384xbf16> to vector<128x384xbf16>
    %cst_19 = arith.constant dense<0.000000e+00> : vector<8x384xf32>
    %17 = tpu.matmul %14, %16, %cst_19 {dimension_numbers = #tpu.dot_dimension_numbers<[1], [0], [0], [1], [0, 0, 1, 1], [], []>} : vector<8x128xbf16>, vector<128x384xbf16>, vector<8x384xf32> -> vector<8x384xf32>
    %18 = vector.extract_strided_slice %13 {offsets = [0, 0], sizes = [8, 128], strides = [1, 1]} : vector<8x384xf32> to vector<8x128xf32>
    %19 = vector.extract_strided_slice %17 {offsets = [0, 0], sizes = [8, 128], strides = [1, 1]} : vector<8x384xf32> to vector<8x128xf32>
    %20 = arith.addf %18, %19 : vector<8x128xf32>
    %21 = arith.negf %20 : vector<8x128xf32>
    %22 = math.exp %21 : vector<8x128xf32>
    %cst_20 = arith.constant 1.000000e+00 : f32
    %23 = vector.broadcast %cst_20 : f32 to vector<8x128xf32>
    %24 = arith.addf %23, %22 : vector<8x128xf32>
    %25 = arith.divf %23, %24 : vector<8x128xf32>
    %26 = vector.extract_strided_slice %13 {offsets = [0, 128], sizes = [8, 128], strides = [1, 1]} : vector<8x384xf32> to vector<8x128xf32>
    %27 = vector.extract_strided_slice %17 {offsets = [0, 128], sizes = [8, 128], strides = [1, 1]} : vector<8x384xf32> to vector<8x128xf32>
    %28 = arith.addf %26, %27 : vector<8x128xf32>
    %29 = arith.negf %28 : vector<8x128xf32>
    %30 = math.exp %29 : vector<8x128xf32>
    %cst_21 = arith.constant 1.000000e+00 : f32
    %31 = vector.broadcast %cst_21 : f32 to vector<8x128xf32>
    %32 = arith.addf %31, %30 : vector<8x128xf32>
    %33 = arith.divf %31, %32 : vector<8x128xf32>
    %34 = vector.extract_strided_slice %13 {offsets = [0, 256], sizes = [8, 128], strides = [1, 1]} : vector<8x384xf32> to vector<8x128xf32>
    %35 = vector.extract_strided_slice %17 {offsets = [0, 256], sizes = [8, 128], strides = [1, 1]} : vector<8x384xf32> to vector<8x128xf32>
    %c0_22 = arith.constant 0 : index
    %c0_23 = arith.constant 0 : index
    %c0_24 = arith.constant 0 : index
    %36 = vector.load %arg6[%c0_22, %c0_23, %c0_24] : memref<2x1x128xf32, #tpu.memory_space<vmem>>, vector<1x1x128xf32>
    %37 = vector.shape_cast %36 : vector<1x1x128xf32> to vector<1x128xf32>
    %38 = vector.broadcast %37 : vector<1x128xf32> to vector<8x128xf32>
    %39 = arith.addf %35, %38 : vector<8x128xf32>
    %40 = arith.mulf %25, %39 : vector<8x128xf32>
    %41 = arith.addf %34, %40 : vector<8x128xf32>
    %42 = math.tanh %41 : vector<8x128xf32>
    %cst_25 = arith.constant 1.000000e+00 : f32
    %43 = vector.broadcast %cst_25 : f32 to vector<8x128xf32>
    %44 = arith.subf %43, %33 : vector<8x128xf32>
    %45 = arith.mulf %44, %42 : vector<8x128xf32>
    %46 = arith.mulf %33, %10 : vector<8x128xf32>
    %47 = arith.addf %45, %46 : vector<8x128xf32>
    %c0_i32 = arith.constant 0 : i32
    %c0_i32_26 = arith.constant 0 : i32
    %c0_i32_27 = arith.constant 0 : i32
    %48 = tpu.memref_slice %arg10[%c0_i32, %c0_i32_26, %c0_i32_27] : memref<1x64x128xf32, #tpu.memory_space<vmem>> -> memref<1x64x128xf32, #tpu.memory_space<vmem>>
    %49 = tpu.memref_squeeze %48 : memref<1x64x128xf32, #tpu.memory_space<vmem>> -> memref<64x128xf32, #tpu.memory_space<vmem>>
    %c0_28 = arith.constant 0 : index
    %c0_29 = arith.constant 0 : index
    %50 = vector.load %49[%c0_28, %c0_29] : memref<64x128xf32, #tpu.memory_space<vmem>>, vector<8x128xf32>
    tpu.vector_store %49[%c0_28, %c0_29], %47 {strides = array<i32>} : memref<64x128xf32, #tpu.memory_space<vmem>>, vector<8x128xf32>,
    %c8 = arith.constant 8 : index
    %c0_30 = arith.constant 0 : index
    %51 = vector.load %arg9[%c8, %c0_30] : memref<64x384xf32, #tpu.memory_space<vmem>>, vector<8x384xf32>
    %52 = arith.truncf %47 : vector<8x128xf32> to vector<8x128xbf16>
    %c0_31 = arith.constant 0 : index
    %c0_32 = arith.constant 0 : index
    %c0_33 = arith.constant 0 : index
    %53 = vector.load %arg4[%c0_31, %c0_32, %c0_33] : memref<2x128x384xbf16, #tpu.memory_space<vmem>>, vector<1x128x384xbf16>
    %54 = vector.shape_cast %53 : vector<1x128x384xbf16> to vector<128x384xbf16>
    %cst_34 = arith.constant dense<0.000000e+00> : vector<8x384xf32>
    %55 = tpu.matmul %52, %54, %cst_34 {dimension_numbers = #tpu.dot_dimension_numbers<[1], [0], [0], [1], [0, 0, 1, 1], [], []>} : vector<8x128xbf16>, vector<128x384xbf16>, vector<8x384xf32> -> vector<8x384xf32>
    %56 = vector.extract_strided_slice %51 {offsets = [0, 0], sizes = [8, 128], strides = [1, 1]} : vector<8x384xf32> to vector<8x128xf32>
    %57 = vector.extract_strided_slice %55 {offsets = [0, 0], sizes = [8, 128], strides = [1, 1]} : vector<8x384xf32> to vector<8x128xf32>
    %58 = arith.addf %56, %57 : vector<8x128xf32>
    %59 = arith.negf %58 : vector<8x128xf32>
    %60 = math.exp %59 : vector<8x128xf32>
    %cst_35 = arith.constant 1.000000e+00 : f32
    %61 = vector.broadcast %cst_35 : f32 to vector<8x128xf32>
    %62 = arith.addf %61, %60 : vector<8x128xf32>
    %63 = arith.divf %61, %62 : vector<8x128xf32>
    %64 = vector.extract_strided_slice %51 {offsets = [0, 128], sizes = [8, 128], strides = [1, 1]} : vector<8x384xf32> to vector<8x128xf32>
    %65 = vector.extract_strided_slice %55 {offsets = [0, 128], sizes = [8, 128], strides = [1, 1]} : vector<8x384xf32> to vector<8x128xf32>
    %66 = arith.addf %64, %65 : vector<8x128xf32>
    %67 = arith.negf %66 : vector<8x128xf32>
    %68 = math.exp %67 : vector<8x128xf32>
    %cst_36 = arith.constant 1.000000e+00 : f32
    %69 = vector.broadcast %cst_36 : f32 to vector<8x128xf32>
    %70 = arith.addf %69, %68 : vector<8x128xf32>
    %71 = arith.divf %69, %70 : vector<8x128xf32>
    %72 = vector.extract_strided_slice %51 {offsets = [0, 256], sizes = [8, 128], strides = [1, 1]} : vector<8x384xf32> to vector<8x128xf32>
    %73 = vector.extract_strided_slice %55 {offsets = [0, 256], sizes = [8, 128], strides = [1, 1]} : vector<8x384xf32> to vector<8x128xf32>
    %c0_37 = arith.constant 0 : index
    %c0_38 = arith.constant 0 : index
    %c0_39 = arith.constant 0 : index
    %74 = vector.load %arg6[%c0_37, %c0_38, %c0_39] : memref<2x1x128xf32, #tpu.memory_space<vmem>>, vector<1x1x128xf32>
    %75 = vector.shape_cast %74 : vector<1x1x128xf32> to vector<1x128xf32>
    %76 = vector.broadcast %75 : vector<1x128xf32> to vector<8x128xf32>
    %77 = arith.addf %73, %76 : vector<8x128xf32>
    %78 = arith.mulf %63, %77 : vector<8x128xf32>
    %79 = arith.addf %72, %78 : vector<8x128xf32>
    %80 = math.tanh %79 : vector<8x128xf32>
    %cst_40 = arith.constant 1.000000e+00 : f32
    %81 = vector.broadcast %cst_40 : f32 to vector<8x128xf32>
    %82 = arith.subf %81, %71 : vector<8x128xf32>
    %83 = arith.mulf %82, %80 : vector<8x128xf32>
    %84 = arith.mulf %71, %47 : vector<8x128xf32>
    %85 = arith.addf %83, %84 : vector<8x128xf32>
    %c0_i32_41 = arith.constant 0 : i32
    %c0_i32_42 = arith.constant 0 : i32
    %c0_i32_43 = arith.constant 0 : i32
    %86 = tpu.memref_slice %arg10[%c0_i32_41, %c0_i32_42, %c0_i32_43] : memref<1x64x128xf32, #tpu.memory_space<vmem>> -> memref<1x64x128xf32, #tpu.memory_space<vmem>>
    %87 = tpu.memref_squeeze %86 : memref<1x64x128xf32, #tpu.memory_space<vmem>> -> memref<64x128xf32, #tpu.memory_space<vmem>>
    %c8_44 = arith.constant 8 : index
    %c0_45 = arith.constant 0 : index
    %88 = vector.load %87[%c8_44, %c0_45] : memref<64x128xf32, #tpu.memory_space<vmem>>, vector<8x128xf32>
    tpu.vector_store %87[%c8_44, %c0_45], %85 {strides = array<i32>} : memref<64x128xf32, #tpu.memory_space<vmem>>, vector<8x128xf32>,
    %c0_i32_46 = arith.constant 0 : i32
    %c0_i32_47 = arith.constant 0 : i32
    %c0_i32_48 = arith.constant 0 : i32
    %89 = tpu.memref_slice %arg10[%c0_i32_46, %c0_i32_47, %c0_i32_48] : memref<1x64x128xf32, #tpu.memory_space<vmem>> -> memref<1x64x128xf32, #tpu.memory_space<vmem>>
    %90 = tpu.memref_squeeze %89 : memref<1x64x128xf32, #tpu.memory_space<vmem>> -> memref<64x128xf32, #tpu.memory_space<vmem>>
    %c0_49 = arith.constant 0 : index
    %c0_50 = arith.constant 0 : index
    %91 = vector.load %90[%c0_49, %c0_50] : memref<64x128xf32, #tpu.memory_space<vmem>>, vector<8x128xf32>
    %92 = arith.truncf %91 : vector<8x128xf32> to vector<8x128xbf16>
    %c1_i32 = arith.constant 1 : i32
    %c0_i32_51 = arith.constant 0 : i32
    %c0_i32_52 = arith.constant 0 : i32
    %93 = tpu.memref_slice %arg3[%c1_i32, %c0_i32_51, %c0_i32_52] : memref<2x128x384xbf16, #tpu.memory_space<vmem>> -> memref<1x128x384xbf16, #tpu.memory_space<vmem>>
    %94 = tpu.memref_squeeze %93 : memref<1x128x384xbf16, #tpu.memory_space<vmem>> -> memref<128x384xbf16, #tpu.memory_space<vmem>>
    %c0_53 = arith.constant 0 : index
    %c0_54 = arith.constant 0 : index
    %95 = vector.load %94[%c0_53, %c0_54] : memref<128x384xbf16, #tpu.memory_space<vmem>>, vector<128x384xbf16>
    %cst_55 = arith.constant dense<0.000000e+00> : vector<8x384xf32>
    %96 = tpu.matmul %92, %95, %cst_55 {dimension_numbers = #tpu.dot_dimension_numbers<[1], [0], [0], [1], [0, 0, 1, 1], [], []>} : vector<8x128xbf16>, vector<128x384xbf16>, vector<8x384xf32> -> vector<8x384xf32>
    %c1_56 = arith.constant 1 : index
    %c0_57 = arith.constant 0 : index
    %c0_58 = arith.constant 0 : index
    %97 = vector.load %arg5[%c1_56, %c0_57, %c0_58] : memref<2x1x384xf32, #tpu.memory_space<vmem>>, vector<1x1x384xf32>
    %98 = vector.shape_cast %97 : vector<1x1x384xf32> to vector<1x384xf32>
    %99 = vector.broadcast %98 : vector<1x384xf32> to vector<8x384xf32>
    %100 = arith.addf %96, %99 : vector<8x384xf32>
    %101 = arith.truncf %12 : vector<8x128xf32> to vector<8x128xbf16>
    %c1_59 = arith.constant 1 : index
    %c0_60 = arith.constant 0 : index
    %c0_61 = arith.constant 0 : index
    %102 = vector.load %arg4[%c1_59, %c0_60, %c0_61] : memref<2x128x384xbf16, #tpu.memory_space<vmem>>, vector<1x128x384xbf16>
    %103 = vector.shape_cast %102 : vector<1x128x384xbf16> to vector<128x384xbf16>
    %cst_62 = arith.constant dense<0.000000e+00> : vector<8x384xf32>
    %104 = tpu.matmul %101, %103, %cst_62 {dimension_numbers = #tpu.dot_dimension_numbers<[1], [0], [0], [1], [0, 0, 1, 1], [], []>} : vector<8x128xbf16>, vector<128x384xbf16>, vector<8x384xf32> -> vector<8x384xf32>
    %105 = vector.extract_strided_slice %100 {offsets = [0, 0], sizes = [8, 128], strides = [1, 1]} : vector<8x384xf32> to vector<8x128xf32>
    %106 = vector.extract_strided_slice %104 {offsets = [0, 0], sizes = [8, 128], strides = [1, 1]} : vector<8x384xf32> to vector<8x128xf32>
    %107 = arith.addf %105, %106 : vector<8x128xf32>
    %108 = arith.negf %107 : vector<8x128xf32>
    %109 = math.exp %108 : vector<8x128xf32>
    %cst_63 = arith.constant 1.000000e+00 : f32
    %110 = vector.broadcast %cst_63 : f32 to vector<8x128xf32>
    %111 = arith.addf %110, %109 : vector<8x128xf32>
    %112 = arith.divf %110, %111 : vector<8x128xf32>
    %113 = vector.extract_strided_slice %100 {offsets = [0, 128], sizes = [8, 128], strides = [1, 1]} : vector<8x384xf32> to vector<8x128xf32>
    %114 = vector.extract_strided_slice %104 {offsets = [0, 128], sizes = [8, 128], strides = [1, 1]} : vector<8x384xf32> to vector<8x128xf32>
    %115 = arith.addf %113, %114 : vector<8x128xf32>
    %116 = arith.negf %115 : vector<8x128xf32>
    %117 = math.exp %116 : vector<8x128xf32>
    %cst_64 = arith.constant 1.000000e+00 : f32
    %118 = vector.broadcast %cst_64 : f32 to vector<8x128xf32>
    %119 = arith.addf %118, %117 : vector<8x128xf32>
    %120 = arith.divf %118, %119 : vector<8x128xf32>
    %121 = vector.extract_strided_slice %100 {offsets = [0, 256], sizes = [8, 128], strides = [1, 1]} : vector<8x384xf32> to vector<8x128xf32>
    %122 = vector.extract_strided_slice %104 {offsets = [0, 256], sizes = [8, 128], strides = [1, 1]} : vector<8x384xf32> to vector<8x128xf32>
    %c1_65 = arith.constant 1 : index
    %c0_66 = arith.constant 0 : index
    %c0_67 = arith.constant 0 : index
    %123 = vector.load %arg6[%c1_65, %c0_66, %c0_67] : memref<2x1x128xf32, #tpu.memory_space<vmem>>, vector<1x1x128xf32>
    %124 = vector.shape_cast %123 : vector<1x1x128xf32> to vector<1x128xf32>
    %125 = vector.broadcast %124 : vector<1x128xf32> to vector<8x128xf32>
    %126 = arith.addf %122, %125 : vector<8x128xf32>
    %127 = arith.mulf %112, %126 : vector<8x128xf32>
    %128 = arith.addf %121, %127 : vector<8x128xf32>
    %129 = math.tanh %128 : vector<8x128xf32>
    %cst_68 = arith.constant 1.000000e+00 : f32
    %130 = vector.broadcast %cst_68 : f32 to vector<8x128xf32>
    %131 = arith.subf %130, %120 : vector<8x128xf32>
    %132 = arith.mulf %131, %129 : vector<8x128xf32>
    %133 = arith.mulf %120, %12 : vector<8x128xf32>
    %134 = arith.addf %132, %133 : vector<8x128xf32>
    %c0_69 = arith.constant 0 : index
    %c0_70 = arith.constant 0 : index
    %135 = vector.load %arg7[%c0_69, %c0_70] : memref<64x128xf32, #tpu.memory_space<vmem>>, vector<8x128xf32>
    tpu.vector_store %arg7[%c0_69, %c0_70], %134 {strides = array<i32>} : memref<64x128xf32, #tpu.memory_space<vmem>>, vector<8x128xf32>,
    %c16 = arith.constant 16 : index
    %c0_71 = arith.constant 0 : index
    %136 = vector.load %arg9[%c16, %c0_71] : memref<64x384xf32, #tpu.memory_space<vmem>>, vector<8x384xf32>
    %137 = arith.truncf %85 : vector<8x128xf32> to vector<8x128xbf16>
    %c0_72 = arith.constant 0 : index
    %c0_73 = arith.constant 0 : index
    %c0_74 = arith.constant 0 : index
    %138 = vector.load %arg4[%c0_72, %c0_73, %c0_74] : memref<2x128x384xbf16, #tpu.memory_space<vmem>>, vector<1x128x384xbf16>
    %139 = vector.shape_cast %138 : vector<1x128x384xbf16> to vector<128x384xbf16>
    %cst_75 = arith.constant dense<0.000000e+00> : vector<8x384xf32>
    %140 = tpu.matmul %137, %139, %cst_75 {dimension_numbers = #tpu.dot_dimension_numbers<[1], [0], [0], [1], [0, 0, 1, 1], [], []>} : vector<8x128xbf16>, vector<128x384xbf16>, vector<8x384xf32> -> vector<8x384xf32>
    %141 = vector.extract_strided_slice %136 {offsets = [0, 0], sizes = [8, 128], strides = [1, 1]} : vector<8x384xf32> to vector<8x128xf32>
    %142 = vector.extract_strided_slice %140 {offsets = [0, 0], sizes = [8, 128], strides = [1, 1]} : vector<8x384xf32> to vector<8x128xf32>
    %143 = arith.addf %141, %142 : vector<8x128xf32>
    %144 = arith.negf %143 : vector<8x128xf32>
    %145 = math.exp %144 : vector<8x128xf32>
    %cst_76 = arith.constant 1.000000e+00 : f32
    %146 = vector.broadcast %cst_76 : f32 to vector<8x128xf32>
    %147 = arith.addf %146, %145 : vector<8x128xf32>
    %148 = arith.divf %146, %147 : vector<8x128xf32>
    %149 = vector.extract_strided_slice %136 {offsets = [0, 128], sizes = [8, 128], strides = [1, 1]} : vector<8x384xf32> to vector<8x128xf32>
    %150 = vector.extract_strided_slice %140 {offsets = [0, 128], sizes = [8, 128], strides = [1, 1]} : vector<8x384xf32> to vector<8x128xf32>
    %151 = arith.addf %149, %150 : vector<8x128xf32>
    %152 = arith.negf %151 : vector<8x128xf32>
    %153 = math.exp %152 : vector<8x128xf32>
    %cst_77 = arith.constant 1.000000e+00 : f32
    %154 = vector.broadcast %cst_77 : f32 to vector<8x128xf32>
    %155 = arith.addf %154, %153 : vector<8x128xf32>
    %156 = arith.divf %154, %155 : vector<8x128xf32>
    %157 = vector.extract_strided_slice %136 {offsets = [0, 256], sizes = [8, 128], strides = [1, 1]} : vector<8x384xf32> to vector<8x128xf32>
    %158 = vector.extract_strided_slice %140 {offsets = [0, 256], sizes = [8, 128], strides = [1, 1]} : vector<8x384xf32> to vector<8x128xf32>
    %c0_78 = arith.constant 0 : index
    %c0_79 = arith.constant 0 : index
    %c0_80 = arith.constant 0 : index
    %159 = vector.load %arg6[%c0_78, %c0_79, %c0_80] : memref<2x1x128xf32, #tpu.memory_space<vmem>>, vector<1x1x128xf32>
    %160 = vector.shape_cast %159 : vector<1x1x128xf32> to vector<1x128xf32>
    %161 = vector.broadcast %160 : vector<1x128xf32> to vector<8x128xf32>
    %162 = arith.addf %158, %161 : vector<8x128xf32>
    %163 = arith.mulf %148, %162 : vector<8x128xf32>
    %164 = arith.addf %157, %163 : vector<8x128xf32>
    %165 = math.tanh %164 : vector<8x128xf32>
    %cst_81 = arith.constant 1.000000e+00 : f32
    %166 = vector.broadcast %cst_81 : f32 to vector<8x128xf32>
    %167 = arith.subf %166, %156 : vector<8x128xf32>
    %168 = arith.mulf %167, %165 : vector<8x128xf32>
    %169 = arith.mulf %156, %85 : vector<8x128xf32>
    %170 = arith.addf %168, %169 : vector<8x128xf32>
    %c0_i32_82 = arith.constant 0 : i32
    %c0_i32_83 = arith.constant 0 : i32
    %c0_i32_84 = arith.constant 0 : i32
    %171 = tpu.memref_slice %arg10[%c0_i32_82, %c0_i32_83, %c0_i32_84] : memref<1x64x128xf32, #tpu.memory_space<vmem>> -> memref<1x64x128xf32, #tpu.memory_space<vmem>>
    %172 = tpu.memref_squeeze %171 : memref<1x64x128xf32, #tpu.memory_space<vmem>> -> memref<64x128xf32, #tpu.memory_space<vmem>>
    %c16_85 = arith.constant 16 : index
    %c0_86 = arith.constant 0 : index
    %173 = vector.load %172[%c16_85, %c0_86] : memref<64x128xf32, #tpu.memory_space<vmem>>, vector<8x128xf32>
    tpu.vector_store %172[%c16_85, %c0_86], %170 {strides = array<i32>} : memref<64x128xf32, #tpu.memory_space<vmem>>, vector<8x128xf32>,
    %c0_i32_87 = arith.constant 0 : i32
    %c0_i32_88 = arith.constant 0 : i32
    %c0_i32_89 = arith.constant 0 : i32
    %174 = tpu.memref_slice %arg10[%c0_i32_87, %c0_i32_88, %c0_i32_89] : memref<1x64x128xf32, #tpu.memory_space<vmem>> -> memref<1x64x128xf32, #tpu.memory_space<vmem>>
    %175 = tpu.memref_squeeze %174 : memref<1x64x128xf32, #tpu.memory_space<vmem>> -> memref<64x128xf32, #tpu.memory_space<vmem>>
    %c8_90 = arith.constant 8 : index
    %c0_91 = arith.constant 0 : index
    %176 = vector.load %175[%c8_90, %c0_91] : memref<64x128xf32, #tpu.memory_space<vmem>>, vector<8x128xf32>
    %177 = arith.truncf %176 : vector<8x128xf32> to vector<8x128xbf16>
    %c1_i32_92 = arith.constant 1 : i32
    %c0_i32_93 = arith.constant 0 : i32
    %c0_i32_94 = arith.constant 0 : i32
    %178 = tpu.memref_slice %arg3[%c1_i32_92, %c0_i32_93, %c0_i32_94] : memref<2x128x384xbf16, #tpu.memory_space<vmem>> -> memref<1x128x384xbf16, #tpu.memory_space<vmem>>
    %179 = tpu.memref_squeeze %178 : memref<1x128x384xbf16, #tpu.memory_space<vmem>> -> memref<128x384xbf16, #tpu.memory_space<vmem>>
    %c0_95 = arith.constant 0 : index
    %c0_96 = arith.constant 0 : index
    %180 = vector.load %179[%c0_95, %c0_96] : memref<128x384xbf16, #tpu.memory_space<vmem>>, vector<128x384xbf16>
    %cst_97 = arith.constant dense<0.000000e+00> : vector<8x384xf32>
    %181 = tpu.matmul %177, %180, %cst_97 {dimension_numbers = #tpu.dot_dimension_numbers<[1], [0], [0], [1], [0, 0, 1, 1], [], []>} : vector<8x128xbf16>, vector<128x384xbf16>, vector<8x384xf32> -> vector<8x384xf32>
    %c1_98 = arith.constant 1 : index
    %c0_99 = arith.constant 0 : index
    %c0_100 = arith.constant 0 : index
    %182 = vector.load %arg5[%c1_98, %c0_99, %c0_100] : memref<2x1x384xf32, #tpu.memory_space<vmem>>, vector<1x1x384xf32>
    %183 = vector.shape_cast %182 : vector<1x1x384xf32> to vector<1x384xf32>
    %184 = vector.broadcast %183 : vector<1x384xf32> to vector<8x384xf32>
    %185 = arith.addf %181, %184 : vector<8x384xf32>
    %186 = arith.truncf %134 : vector<8x128xf32> to vector<8x128xbf16>
    %c1_101 = arith.constant 1 : index
    %c0_102 = arith.constant 0 : index
    %c0_103 = arith.constant 0 : index
    %187 = vector.load %arg4[%c1_101, %c0_102, %c0_103] : memref<2x128x384xbf16, #tpu.memory_space<vmem>>, vector<1x128x384xbf16>
    %188 = vector.shape_cast %187 : vector<1x128x384xbf16> to vector<128x384xbf16>
    %cst_104 = arith.constant dense<0.000000e+00> : vector<8x384xf32>
    %189 = tpu.matmul %186, %188, %cst_104 {dimension_numbers = #tpu.dot_dimension_numbers<[1], [0], [0], [1], [0, 0, 1, 1], [], []>} : vector<8x128xbf16>, vector<128x384xbf16>, vector<8x384xf32> -> vector<8x384xf32>
    %190 = vector.extract_strided_slice %185 {offsets = [0, 0], sizes = [8, 128], strides = [1, 1]} : vector<8x384xf32> to vector<8x128xf32>
    %191 = vector.extract_strided_slice %189 {offsets = [0, 0], sizes = [8, 128], strides = [1, 1]} : vector<8x384xf32> to vector<8x128xf32>
    %192 = arith.addf %190, %191 : vector<8x128xf32>
    %193 = arith.negf %192 : vector<8x128xf32>
    %194 = math.exp %193 : vector<8x128xf32>
    %cst_105 = arith.constant 1.000000e+00 : f32
    %195 = vector.broadcast %cst_105 : f32 to vector<8x128xf32>
    %196 = arith.addf %195, %194 : vector<8x128xf32>
    %197 = arith.divf %195, %196 : vector<8x128xf32>
    %198 = vector.extract_strided_slice %185 {offsets = [0, 128], sizes = [8, 128], strides = [1, 1]} : vector<8x384xf32> to vector<8x128xf32>
    %199 = vector.extract_strided_slice %189 {offsets = [0, 128], sizes = [8, 128], strides = [1, 1]} : vector<8x384xf32> to vector<8x128xf32>
    %200 = arith.addf %198, %199 : vector<8x128xf32>
    %201 = arith.negf %200 : vector<8x128xf32>
    %202 = math.exp %201 : vector<8x128xf32>
    %cst_106 = arith.constant 1.000000e+00 : f32
    %203 = vector.broadcast %cst_106 : f32 to vector<8x128xf32>
    %204 = arith.addf %203, %202 : vector<8x128xf32>
    %205 = arith.divf %203, %204 : vector<8x128xf32>
    %206 = vector.extract_strided_slice %185 {offsets = [0, 256], sizes = [8, 128], strides = [1, 1]} : vector<8x384xf32> to vector<8x128xf32>
    %207 = vector.extract_strided_slice %189 {offsets = [0, 256], sizes = [8, 128], strides = [1, 1]} : vector<8x384xf32> to vector<8x128xf32>
    %c1_107 = arith.constant 1 : index
    %c0_108 = arith.constant 0 : index
    %c0_109 = arith.constant 0 : index
    %208 = vector.load %arg6[%c1_107, %c0_108, %c0_109] : memref<2x1x128xf32, #tpu.memory_space<vmem>>, vector<1x1x128xf32>
    %209 = vector.shape_cast %208 : vector<1x1x128xf32> to vector<1x128xf32>
    %210 = vector.broadcast %209 : vector<1x128xf32> to vector<8x128xf32>
    %211 = arith.addf %207, %210 : vector<8x128xf32>
    %212 = arith.mulf %197, %211 : vector<8x128xf32>
    %213 = arith.addf %206, %212 : vector<8x128xf32>
    %214 = math.tanh %213 : vector<8x128xf32>
    %cst_110 = arith.constant 1.000000e+00 : f32
    %215 = vector.broadcast %cst_110 : f32 to vector<8x128xf32>
    %216 = arith.subf %215, %205 : vector<8x128xf32>
    %217 = arith.mulf %216, %214 : vector<8x128xf32>
    %218 = arith.mulf %205, %134 : vector<8x128xf32>
    %219 = arith.addf %217, %218 : vector<8x128xf32>
    %c8_111 = arith.constant 8 : index
    %c0_112 = arith.constant 0 : index
    %220 = vector.load %arg7[%c8_111, %c0_112] : memref<64x128xf32, #tpu.memory_space<vmem>>, vector<8x128xf32>
    tpu.vector_store %arg7[%c8_111, %c0_112], %219 {strides = array<i32>} : memref<64x128xf32, #tpu.memory_space<vmem>>, vector<8x128xf32>,
    %c24 = arith.constant 24 : index
    %c0_113 = arith.constant 0 : index
    %221 = vector.load %arg9[%c24, %c0_113] : memref<64x384xf32, #tpu.memory_space<vmem>>, vector<8x384xf32>
    %222 = arith.truncf %170 : vector<8x128xf32> to vector<8x128xbf16>
    %c0_114 = arith.constant 0 : index
    %c0_115 = arith.constant 0 : index
    %c0_116 = arith.constant 0 : index
    %223 = vector.load %arg4[%c0_114, %c0_115, %c0_116] : memref<2x128x384xbf16, #tpu.memory_space<vmem>>, vector<1x128x384xbf16>
    %224 = vector.shape_cast %223 : vector<1x128x384xbf16> to vector<128x384xbf16>
    %cst_117 = arith.constant dense<0.000000e+00> : vector<8x384xf32>
    %225 = tpu.matmul %222, %224, %cst_117 {dimension_numbers = #tpu.dot_dimension_numbers<[1], [0], [0], [1], [0, 0, 1, 1], [], []>} : vector<8x128xbf16>, vector<128x384xbf16>, vector<8x384xf32> -> vector<8x384xf32>
    %226 = vector.extract_strided_slice %221 {offsets = [0, 0], sizes = [8, 128], strides = [1, 1]} : vector<8x384xf32> to vector<8x128xf32>
    %227 = vector.extract_strided_slice %225 {offsets = [0, 0], sizes = [8, 128], strides = [1, 1]} : vector<8x384xf32> to vector<8x128xf32>
    %228 = arith.addf %226, %227 : vector<8x128xf32>
    %229 = arith.negf %228 : vector<8x128xf32>
    %230 = math.exp %229 : vector<8x128xf32>
    %cst_118 = arith.constant 1.000000e+00 : f32
    %231 = vector.broadcast %cst_118 : f32 to vector<8x128xf32>
    %232 = arith.addf %231, %230 : vector<8x128xf32>
    %233 = arith.divf %231, %232 : vector<8x128xf32>
    %234 = vector.extract_strided_slice %221 {offsets = [0, 128], sizes = [8, 128], strides = [1, 1]} : vector<8x384xf32> to vector<8x128xf32>
    %235 = vector.extract_strided_slice %225 {offsets = [0, 128], sizes = [8, 128], strides = [1, 1]} : vector<8x384xf32> to vector<8x128xf32>
    %236 = arith.addf %234, %235 : vector<8x128xf32>
    %237 = arith.negf %236 : vector<8x128xf32>
    %238 = math.exp %237 : vector<8x128xf32>
    %cst_119 = arith.constant 1.000000e+00 : f32
    %239 = vector.broadcast %cst_119 : f32 to vector<8x128xf32>
    %240 = arith.addf %239, %238 : vector<8x128xf32>
    %241 = arith.divf %239, %240 : vector<8x128xf32>
    %242 = vector.extract_strided_slice %221 {offsets = [0, 256], sizes = [8, 128], strides = [1, 1]} : vector<8x384xf32> to vector<8x128xf32>
    %243 = vector.extract_strided_slice %225 {offsets = [0, 256], sizes = [8, 128], strides = [1, 1]} : vector<8x384xf32> to vector<8x128xf32>
    %c0_120 = arith.constant 0 : index
    %c0_121 = arith.constant 0 : index
    %c0_122 = arith.constant 0 : index
    %244 = vector.load %arg6[%c0_120, %c0_121, %c0_122] : memref<2x1x128xf32, #tpu.memory_space<vmem>>, vector<1x1x128xf32>
    %245 = vector.shape_cast %244 : vector<1x1x128xf32> to vector<1x128xf32>
    %246 = vector.broadcast %245 : vector<1x128xf32> to vector<8x128xf32>
    %247 = arith.addf %243, %246 : vector<8x128xf32>
    %248 = arith.mulf %233, %247 : vector<8x128xf32>
    %249 = arith.addf %242, %248 : vector<8x128xf32>
    %250 = math.tanh %249 : vector<8x128xf32>
    %cst_123 = arith.constant 1.000000e+00 : f32
    %251 = vector.broadcast %cst_123 : f32 to vector<8x128xf32>
    %252 = arith.subf %251, %241 : vector<8x128xf32>
    %253 = arith.mulf %252, %250 : vector<8x128xf32>
    %254 = arith.mulf %241, %170 : vector<8x128xf32>
    %255 = arith.addf %253, %254 : vector<8x128xf32>
    %c0_i32_124 = arith.constant 0 : i32
    %c0_i32_125 = arith.constant 0 : i32
    %c0_i32_126 = arith.constant 0 : i32
    %256 = tpu.memref_slice %arg10[%c0_i32_124, %c0_i32_125, %c0_i32_126] : memref<1x64x128xf32, #tpu.memory_space<vmem>> -> memref<1x64x128xf32, #tpu.memory_space<vmem>>
    %257 = tpu.memref_squeeze %256 : memref<1x64x128xf32, #tpu.memory_space<vmem>> -> memref<64x128xf32, #tpu.memory_space<vmem>>
    %c24_127 = arith.constant 24 : index
    %c0_128 = arith.constant 0 : index
    %258 = vector.load %257[%c24_127, %c0_128] : memref<64x128xf32, #tpu.memory_space<vmem>>, vector<8x128xf32>
    tpu.vector_store %257[%c24_127, %c0_128], %255 {strides = array<i32>} : memref<64x128xf32, #tpu.memory_space<vmem>>, vector<8x128xf32>,
    %c0_i32_129 = arith.constant 0 : i32
    %c0_i32_130 = arith.constant 0 : i32
    %c0_i32_131 = arith.constant 0 : i32
    %259 = tpu.memref_slice %arg10[%c0_i32_129, %c0_i32_130, %c0_i32_131] : memref<1x64x128xf32, #tpu.memory_space<vmem>> -> memref<1x64x128xf32, #tpu.memory_space<vmem>>
    %260 = tpu.memref_squeeze %259 : memref<1x64x128xf32, #tpu.memory_space<vmem>> -> memref<64x128xf32, #tpu.memory_space<vmem>>
    %c16_132 = arith.constant 16 : index
    %c0_133 = arith.constant 0 : index
    %261 = vector.load %260[%c16_132, %c0_133] : memref<64x128xf32, #tpu.memory_space<vmem>>, vector<8x128xf32>
    %262 = arith.truncf %261 : vector<8x128xf32> to vector<8x128xbf16>
    %c1_i32_134 = arith.constant 1 : i32
    %c0_i32_135 = arith.constant 0 : i32
    %c0_i32_136 = arith.constant 0 : i32
    %263 = tpu.memref_slice %arg3[%c1_i32_134, %c0_i32_135, %c0_i32_136] : memref<2x128x384xbf16, #tpu.memory_space<vmem>> -> memref<1x128x384xbf16, #tpu.memory_space<vmem>>
    %264 = tpu.memref_squeeze %263 : memref<1x128x384xbf16, #tpu.memory_space<vmem>> -> memref<128x384xbf16, #tpu.memory_space<vmem>>
    %c0_137 = arith.constant 0 : index
    %c0_138 = arith.constant 0 : index
    %265 = vector.load %264[%c0_137, %c0_138] : memref<128x384xbf16, #tpu.memory_space<vmem>>, vector<128x384xbf16>
    %cst_139 = arith.constant dense<0.000000e+00> : vector<8x384xf32>
    %266 = tpu.matmul %262, %265, %cst_139 {dimension_numbers = #tpu.dot_dimension_numbers<[1], [0], [0], [1], [0, 0, 1, 1], [], []>} : vector<8x128xbf16>, vector<128x384xbf16>, vector<8x384xf32> -> vector<8x384xf32>
    %c1_140 = arith.constant 1 : index
    %c0_141 = arith.constant 0 : index
    %c0_142 = arith.constant 0 : index
    %267 = vector.load %arg5[%c1_140, %c0_141, %c0_142] : memref<2x1x384xf32, #tpu.memory_space<vmem>>, vector<1x1x384xf32>
    %268 = vector.shape_cast %267 : vector<1x1x384xf32> to vector<1x384xf32>
    %269 = vector.broadcast %268 : vector<1x384xf32> to vector<8x384xf32>
    %270 = arith.addf %266, %269 : vector<8x384xf32>
    %271 = arith.truncf %219 : vector<8x128xf32> to vector<8x128xbf16>
    %c1_143 = arith.constant 1 : index
    %c0_144 = arith.constant 0 : index
    %c0_145 = arith.constant 0 : index
    %272 = vector.load %arg4[%c1_143, %c0_144, %c0_145] : memref<2x128x384xbf16, #tpu.memory_space<vmem>>, vector<1x128x384xbf16>
    %273 = vector.shape_cast %272 : vector<1x128x384xbf16> to vector<128x384xbf16>
    %cst_146 = arith.constant dense<0.000000e+00> : vector<8x384xf32>
    %274 = tpu.matmul %271, %273, %cst_146 {dimension_numbers = #tpu.dot_dimension_numbers<[1], [0], [0], [1], [0, 0, 1, 1], [], []>} : vector<8x128xbf16>, vector<128x384xbf16>, vector<8x384xf32> -> vector<8x384xf32>
    %275 = vector.extract_strided_slice %270 {offsets = [0, 0], sizes = [8, 128], strides = [1, 1]} : vector<8x384xf32> to vector<8x128xf32>
    %276 = vector.extract_strided_slice %274 {offsets = [0, 0], sizes = [8, 128], strides = [1, 1]} : vector<8x384xf32> to vector<8x128xf32>
    %277 = arith.addf %275, %276 : vector<8x128xf32>
    %278 = arith.negf %277 : vector<8x128xf32>
    %279 = math.exp %278 : vector<8x128xf32>
    %cst_147 = arith.constant 1.000000e+00 : f32
    %280 = vector.broadcast %cst_147 : f32 to vector<8x128xf32>
    %281 = arith.addf %280, %279 : vector<8x128xf32>
    %282 = arith.divf %280, %281 : vector<8x128xf32>
    %283 = vector.extract_strided_slice %270 {offsets = [0, 128], sizes = [8, 128], strides = [1, 1]} : vector<8x384xf32> to vector<8x128xf32>
    %284 = vector.extract_strided_slice %274 {offsets = [0, 128], sizes = [8, 128], strides = [1, 1]} : vector<8x384xf32> to vector<8x128xf32>
    %285 = arith.addf %283, %284 : vector<8x128xf32>
    %286 = arith.negf %285 : vector<8x128xf32>
    %287 = math.exp %286 : vector<8x128xf32>
    %cst_148 = arith.constant 1.000000e+00 : f32
    %288 = vector.broadcast %cst_148 : f32 to vector<8x128xf32>
    %289 = arith.addf %288, %287 : vector<8x128xf32>
    %290 = arith.divf %288, %289 : vector<8x128xf32>
    %291 = vector.extract_strided_slice %270 {offsets = [0, 256], sizes = [8, 128], strides = [1, 1]} : vector<8x384xf32> to vector<8x128xf32>
    %292 = vector.extract_strided_slice %274 {offsets = [0, 256], sizes = [8, 128], strides = [1, 1]} : vector<8x384xf32> to vector<8x128xf32>
    %c1_149 = arith.constant 1 : index
    %c0_150 = arith.constant 0 : index
    %c0_151 = arith.constant 0 : index
    %293 = vector.load %arg6[%c1_149, %c0_150, %c0_151] : memref<2x1x128xf32, #tpu.memory_space<vmem>>, vector<1x1x128xf32>
    %294 = vector.shape_cast %293 : vector<1x1x128xf32> to vector<1x128xf32>
    %295 = vector.broadcast %294 : vector<1x128xf32> to vector<8x128xf32>
    %296 = arith.addf %292, %295 : vector<8x128xf32>
    %297 = arith.mulf %282, %296 : vector<8x128xf32>
    %298 = arith.addf %291, %297 : vector<8x128xf32>
    %299 = math.tanh %298 : vector<8x128xf32>
    %cst_152 = arith.constant 1.000000e+00 : f32
    %300 = vector.broadcast %cst_152 : f32 to vector<8x128xf32>
    %301 = arith.subf %300, %290 : vector<8x128xf32>
    %302 = arith.mulf %301, %299 : vector<8x128xf32>
    %303 = arith.mulf %290, %219 : vector<8x128xf32>
    %304 = arith.addf %302, %303 : vector<8x128xf32>
    %c16_153 = arith.constant 16 : index
    %c0_154 = arith.constant 0 : index
    %305 = vector.load %arg7[%c16_153, %c0_154] : memref<64x128xf32, #tpu.memory_space<vmem>>, vector<8x128xf32>
    tpu.vector_store %arg7[%c16_153, %c0_154], %304 {strides = array<i32>} : memref<64x128xf32, #tpu.memory_space<vmem>>, vector<8x128xf32>,
    %c32 = arith.constant 32 : index
    %c0_155 = arith.constant 0 : index
    %306 = vector.load %arg9[%c32, %c0_155] : memref<64x384xf32, #tpu.memory_space<vmem>>, vector<8x384xf32>
    %307 = arith.truncf %255 : vector<8x128xf32> to vector<8x128xbf16>
    %c0_156 = arith.constant 0 : index
    %c0_157 = arith.constant 0 : index
    %c0_158 = arith.constant 0 : index
    %308 = vector.load %arg4[%c0_156, %c0_157, %c0_158] : memref<2x128x384xbf16, #tpu.memory_space<vmem>>, vector<1x128x384xbf16>
    %309 = vector.shape_cast %308 : vector<1x128x384xbf16> to vector<128x384xbf16>
    %cst_159 = arith.constant dense<0.000000e+00> : vector<8x384xf32>
    %310 = tpu.matmul %307, %309, %cst_159 {dimension_numbers = #tpu.dot_dimension_numbers<[1], [0], [0], [1], [0, 0, 1, 1], [], []>} : vector<8x128xbf16>, vector<128x384xbf16>, vector<8x384xf32> -> vector<8x384xf32>
    %311 = vector.extract_strided_slice %306 {offsets = [0, 0], sizes = [8, 128], strides = [1, 1]} : vector<8x384xf32> to vector<8x128xf32>
    %312 = vector.extract_strided_slice %310 {offsets = [0, 0], sizes = [8, 128], strides = [1, 1]} : vector<8x384xf32> to vector<8x128xf32>
    %313 = arith.addf %311, %312 : vector<8x128xf32>
    %314 = arith.negf %313 : vector<8x128xf32>
    %315 = math.exp %314 : vector<8x128xf32>
    %cst_160 = arith.constant 1.000000e+00 : f32
    %316 = vector.broadcast %cst_160 : f32 to vector<8x128xf32>
    %317 = arith.addf %316, %315 : vector<8x128xf32>
    %318 = arith.divf %316, %317 : vector<8x128xf32>
    %319 = vector.extract_strided_slice %306 {offsets = [0, 128], sizes = [8, 128], strides = [1, 1]} : vector<8x384xf32> to vector<8x128xf32>
    %320 = vector.extract_strided_slice %310 {offsets = [0, 128], sizes = [8, 128], strides = [1, 1]} : vector<8x384xf32> to vector<8x128xf32>
    %321 = arith.addf %319, %320 : vector<8x128xf32>
    %322 = arith.negf %321 : vector<8x128xf32>
    %323 = math.exp %322 : vector<8x128xf32>
    %cst_161 = arith.constant 1.000000e+00 : f32
    %324 = vector.broadcast %cst_161 : f32 to vector<8x128xf32>
    %325 = arith.addf %324, %323 : vector<8x128xf32>
    %326 = arith.divf %324, %325 : vector<8x128xf32>
    %327 = vector.extract_strided_slice %306 {offsets = [0, 256], sizes = [8, 128], strides = [1, 1]} : vector<8x384xf32> to vector<8x128xf32>
    %328 = vector.extract_strided_slice %310 {offsets = [0, 256], sizes = [8, 128], strides = [1, 1]} : vector<8x384xf32> to vector<8x128xf32>
    %c0_162 = arith.constant 0 : index
    %c0_163 = arith.constant 0 : index
    %c0_164 = arith.constant 0 : index
    %329 = vector.load %arg6[%c0_162, %c0_163, %c0_164] : memref<2x1x128xf32, #tpu.memory_space<vmem>>, vector<1x1x128xf32>
    %330 = vector.shape_cast %329 : vector<1x1x128xf32> to vector<1x128xf32>
    %331 = vector.broadcast %330 : vector<1x128xf32> to vector<8x128xf32>
    %332 = arith.addf %328, %331 : vector<8x128xf32>
    %333 = arith.mulf %318, %332 : vector<8x128xf32>
    %334 = arith.addf %327, %333 : vector<8x128xf32>
    %335 = math.tanh %334 : vector<8x128xf32>
    %cst_165 = arith.constant 1.000000e+00 : f32
    %336 = vector.broadcast %cst_165 : f32 to vector<8x128xf32>
    %337 = arith.subf %336, %326 : vector<8x128xf32>
    %338 = arith.mulf %337, %335 : vector<8x128xf32>
    %339 = arith.mulf %326, %255 : vector<8x128xf32>
    %340 = arith.addf %338, %339 : vector<8x128xf32>
    %c0_i32_166 = arith.constant 0 : i32
    %c0_i32_167 = arith.constant 0 : i32
    %c0_i32_168 = arith.constant 0 : i32
    %341 = tpu.memref_slice %arg10[%c0_i32_166, %c0_i32_167, %c0_i32_168] : memref<1x64x128xf32, #tpu.memory_space<vmem>> -> memref<1x64x128xf32, #tpu.memory_space<vmem>>
    %342 = tpu.memref_squeeze %341 : memref<1x64x128xf32, #tpu.memory_space<vmem>> -> memref<64x128xf32, #tpu.memory_space<vmem>>
    %c32_169 = arith.constant 32 : index
    %c0_170 = arith.constant 0 : index
    %343 = vector.load %342[%c32_169, %c0_170] : memref<64x128xf32, #tpu.memory_space<vmem>>, vector<8x128xf32>
    tpu.vector_store %342[%c32_169, %c0_170], %340 {strides = array<i32>} : memref<64x128xf32, #tpu.memory_space<vmem>>, vector<8x128xf32>,
    %c0_i32_171 = arith.constant 0 : i32
    %c0_i32_172 = arith.constant 0 : i32
    %c0_i32_173 = arith.constant 0 : i32
    %344 = tpu.memref_slice %arg10[%c0_i32_171, %c0_i32_172, %c0_i32_173] : memref<1x64x128xf32, #tpu.memory_space<vmem>> -> memref<1x64x128xf32, #tpu.memory_space<vmem>>
    %345 = tpu.memref_squeeze %344 : memref<1x64x128xf32, #tpu.memory_space<vmem>> -> memref<64x128xf32, #tpu.memory_space<vmem>>
    %c24_174 = arith.constant 24 : index
    %c0_175 = arith.constant 0 : index
    %346 = vector.load %345[%c24_174, %c0_175] : memref<64x128xf32, #tpu.memory_space<vmem>>, vector<8x128xf32>
    %347 = arith.truncf %346 : vector<8x128xf32> to vector<8x128xbf16>
    %c1_i32_176 = arith.constant 1 : i32
    %c0_i32_177 = arith.constant 0 : i32
    %c0_i32_178 = arith.constant 0 : i32
    %348 = tpu.memref_slice %arg3[%c1_i32_176, %c0_i32_177, %c0_i32_178] : memref<2x128x384xbf16, #tpu.memory_space<vmem>> -> memref<1x128x384xbf16, #tpu.memory_space<vmem>>
    %349 = tpu.memref_squeeze %348 : memref<1x128x384xbf16, #tpu.memory_space<vmem>> -> memref<128x384xbf16, #tpu.memory_space<vmem>>
    %c0_179 = arith.constant 0 : index
    %c0_180 = arith.constant 0 : index
    %350 = vector.load %349[%c0_179, %c0_180] : memref<128x384xbf16, #tpu.memory_space<vmem>>, vector<128x384xbf16>
    %cst_181 = arith.constant dense<0.000000e+00> : vector<8x384xf32>
    %351 = tpu.matmul %347, %350, %cst_181 {dimension_numbers = #tpu.dot_dimension_numbers<[1], [0], [0], [1], [0, 0, 1, 1], [], []>} : vector<8x128xbf16>, vector<128x384xbf16>, vector<8x384xf32> -> vector<8x384xf32>
    %c1_182 = arith.constant 1 : index
    %c0_183 = arith.constant 0 : index
    %c0_184 = arith.constant 0 : index
    %352 = vector.load %arg5[%c1_182, %c0_183, %c0_184] : memref<2x1x384xf32, #tpu.memory_space<vmem>>, vector<1x1x384xf32>
    %353 = vector.shape_cast %352 : vector<1x1x384xf32> to vector<1x384xf32>
    %354 = vector.broadcast %353 : vector<1x384xf32> to vector<8x384xf32>
    %355 = arith.addf %351, %354 : vector<8x384xf32>
    %356 = arith.truncf %304 : vector<8x128xf32> to vector<8x128xbf16>
    %c1_185 = arith.constant 1 : index
    %c0_186 = arith.constant 0 : index
    %c0_187 = arith.constant 0 : index
    %357 = vector.load %arg4[%c1_185, %c0_186, %c0_187] : memref<2x128x384xbf16, #tpu.memory_space<vmem>>, vector<1x128x384xbf16>
    %358 = vector.shape_cast %357 : vector<1x128x384xbf16> to vector<128x384xbf16>
    %cst_188 = arith.constant dense<0.000000e+00> : vector<8x384xf32>
    %359 = tpu.matmul %356, %358, %cst_188 {dimension_numbers = #tpu.dot_dimension_numbers<[1], [0], [0], [1], [0, 0, 1, 1], [], []>} : vector<8x128xbf16>, vector<128x384xbf16>, vector<8x384xf32> -> vector<8x384xf32>
    %360 = vector.extract_strided_slice %355 {offsets = [0, 0], sizes = [8, 128], strides = [1, 1]} : vector<8x384xf32> to vector<8x128xf32>
    %361 = vector.extract_strided_slice %359 {offsets = [0, 0], sizes = [8, 128], strides = [1, 1]} : vector<8x384xf32> to vector<8x128xf32>
    %362 = arith.addf %360, %361 : vector<8x128xf32>
    %363 = arith.negf %362 : vector<8x128xf32>
    %364 = math.exp %363 : vector<8x128xf32>
    %cst_189 = arith.constant 1.000000e+00 : f32
    %365 = vector.broadcast %cst_189 : f32 to vector<8x128xf32>
    %366 = arith.addf %365, %364 : vector<8x128xf32>
    %367 = arith.divf %365, %366 : vector<8x128xf32>
    %368 = vector.extract_strided_slice %355 {offsets = [0, 128], sizes = [8, 128], strides = [1, 1]} : vector<8x384xf32> to vector<8x128xf32>
    %369 = vector.extract_strided_slice %359 {offsets = [0, 128], sizes = [8, 128], strides = [1, 1]} : vector<8x384xf32> to vector<8x128xf32>
    %370 = arith.addf %368, %369 : vector<8x128xf32>
    %371 = arith.negf %370 : vector<8x128xf32>
    %372 = math.exp %371 : vector<8x128xf32>
    %cst_190 = arith.constant 1.000000e+00 : f32
    %373 = vector.broadcast %cst_190 : f32 to vector<8x128xf32>
    %374 = arith.addf %373, %372 : vector<8x128xf32>
    %375 = arith.divf %373, %374 : vector<8x128xf32>
    %376 = vector.extract_strided_slice %355 {offsets = [0, 256], sizes = [8, 128], strides = [1, 1]} : vector<8x384xf32> to vector<8x128xf32>
    %377 = vector.extract_strided_slice %359 {offsets = [0, 256], sizes = [8, 128], strides = [1, 1]} : vector<8x384xf32> to vector<8x128xf32>
    %c1_191 = arith.constant 1 : index
    %c0_192 = arith.constant 0 : index
    %c0_193 = arith.constant 0 : index
    %378 = vector.load %arg6[%c1_191, %c0_192, %c0_193] : memref<2x1x128xf32, #tpu.memory_space<vmem>>, vector<1x1x128xf32>
    %379 = vector.shape_cast %378 : vector<1x1x128xf32> to vector<1x128xf32>
    %380 = vector.broadcast %379 : vector<1x128xf32> to vector<8x128xf32>
    %381 = arith.addf %377, %380 : vector<8x128xf32>
    %382 = arith.mulf %367, %381 : vector<8x128xf32>
    %383 = arith.addf %376, %382 : vector<8x128xf32>
    %384 = math.tanh %383 : vector<8x128xf32>
    %cst_194 = arith.constant 1.000000e+00 : f32
    %385 = vector.broadcast %cst_194 : f32 to vector<8x128xf32>
    %386 = arith.subf %385, %375 : vector<8x128xf32>
    %387 = arith.mulf %386, %384 : vector<8x128xf32>
    %388 = arith.mulf %375, %304 : vector<8x128xf32>
    %389 = arith.addf %387, %388 : vector<8x128xf32>
    %c24_195 = arith.constant 24 : index
    %c0_196 = arith.constant 0 : index
    %390 = vector.load %arg7[%c24_195, %c0_196] : memref<64x128xf32, #tpu.memory_space<vmem>>, vector<8x128xf32>
    tpu.vector_store %arg7[%c24_195, %c0_196], %389 {strides = array<i32>} : memref<64x128xf32, #tpu.memory_space<vmem>>, vector<8x128xf32>,
    %c40 = arith.constant 40 : index
    %c0_197 = arith.constant 0 : index
    %391 = vector.load %arg9[%c40, %c0_197] : memref<64x384xf32, #tpu.memory_space<vmem>>, vector<8x384xf32>
    %392 = arith.truncf %340 : vector<8x128xf32> to vector<8x128xbf16>
    %c0_198 = arith.constant 0 : index
    %c0_199 = arith.constant 0 : index
    %c0_200 = arith.constant 0 : index
    %393 = vector.load %arg4[%c0_198, %c0_199, %c0_200] : memref<2x128x384xbf16, #tpu.memory_space<vmem>>, vector<1x128x384xbf16>
    %394 = vector.shape_cast %393 : vector<1x128x384xbf16> to vector<128x384xbf16>
    %cst_201 = arith.constant dense<0.000000e+00> : vector<8x384xf32>
    %395 = tpu.matmul %392, %394, %cst_201 {dimension_numbers = #tpu.dot_dimension_numbers<[1], [0], [0], [1], [0, 0, 1, 1], [], []>} : vector<8x128xbf16>, vector<128x384xbf16>, vector<8x384xf32> -> vector<8x384xf32>
    %396 = vector.extract_strided_slice %391 {offsets = [0, 0], sizes = [8, 128], strides = [1, 1]} : vector<8x384xf32> to vector<8x128xf32>
    %397 = vector.extract_strided_slice %395 {offsets = [0, 0], sizes = [8, 128], strides = [1, 1]} : vector<8x384xf32> to vector<8x128xf32>
    %398 = arith.addf %396, %397 : vector<8x128xf32>
    %399 = arith.negf %398 : vector<8x128xf32>
    %400 = math.exp %399 : vector<8x128xf32>
    %cst_202 = arith.constant 1.000000e+00 : f32
    %401 = vector.broadcast %cst_202 : f32 to vector<8x128xf32>
    %402 = arith.addf %401, %400 : vector<8x128xf32>
    %403 = arith.divf %401, %402 : vector<8x128xf32>
    %404 = vector.extract_strided_slice %391 {offsets = [0, 128], sizes = [8, 128], strides = [1, 1]} : vector<8x384xf32> to vector<8x128xf32>
    %405 = vector.extract_strided_slice %395 {offsets = [0, 128], sizes = [8, 128], strides = [1, 1]} : vector<8x384xf32> to vector<8x128xf32>
    %406 = arith.addf %404, %405 : vector<8x128xf32>
    %407 = arith.negf %406 : vector<8x128xf32>
    %408 = math.exp %407 : vector<8x128xf32>
    %cst_203 = arith.constant 1.000000e+00 : f32
    %409 = vector.broadcast %cst_203 : f32 to vector<8x128xf32>
    %410 = arith.addf %409, %408 : vector<8x128xf32>
    %411 = arith.divf %409, %410 : vector<8x128xf32>
    %412 = vector.extract_strided_slice %391 {offsets = [0, 256], sizes = [8, 128], strides = [1, 1]} : vector<8x384xf32> to vector<8x128xf32>
    %413 = vector.extract_strided_slice %395 {offsets = [0, 256], sizes = [8, 128], strides = [1, 1]} : vector<8x384xf32> to vector<8x128xf32>
    %c0_204 = arith.constant 0 : index
    %c0_205 = arith.constant 0 : index
    %c0_206 = arith.constant 0 : index
    %414 = vector.load %arg6[%c0_204, %c0_205, %c0_206] : memref<2x1x128xf32, #tpu.memory_space<vmem>>, vector<1x1x128xf32>
    %415 = vector.shape_cast %414 : vector<1x1x128xf32> to vector<1x128xf32>
    %416 = vector.broadcast %415 : vector<1x128xf32> to vector<8x128xf32>
    %417 = arith.addf %413, %416 : vector<8x128xf32>
    %418 = arith.mulf %403, %417 : vector<8x128xf32>
    %419 = arith.addf %412, %418 : vector<8x128xf32>
    %420 = math.tanh %419 : vector<8x128xf32>
    %cst_207 = arith.constant 1.000000e+00 : f32
    %421 = vector.broadcast %cst_207 : f32 to vector<8x128xf32>
    %422 = arith.subf %421, %411 : vector<8x128xf32>
    %423 = arith.mulf %422, %420 : vector<8x128xf32>
    %424 = arith.mulf %411, %340 : vector<8x128xf32>
    %425 = arith.addf %423, %424 : vector<8x128xf32>
    %c0_i32_208 = arith.constant 0 : i32
    %c0_i32_209 = arith.constant 0 : i32
    %c0_i32_210 = arith.constant 0 : i32
    %426 = tpu.memref_slice %arg10[%c0_i32_208, %c0_i32_209, %c0_i32_210] : memref<1x64x128xf32, #tpu.memory_space<vmem>> -> memref<1x64x128xf32, #tpu.memory_space<vmem>>
    %427 = tpu.memref_squeeze %426 : memref<1x64x128xf32, #tpu.memory_space<vmem>> -> memref<64x128xf32, #tpu.memory_space<vmem>>
    %c40_211 = arith.constant 40 : index
    %c0_212 = arith.constant 0 : index
    %428 = vector.load %427[%c40_211, %c0_212] : memref<64x128xf32, #tpu.memory_space<vmem>>, vector<8x128xf32>
    tpu.vector_store %427[%c40_211, %c0_212], %425 {strides = array<i32>} : memref<64x128xf32, #tpu.memory_space<vmem>>, vector<8x128xf32>,
    %c0_i32_213 = arith.constant 0 : i32
    %c0_i32_214 = arith.constant 0 : i32
    %c0_i32_215 = arith.constant 0 : i32
    %429 = tpu.memref_slice %arg10[%c0_i32_213, %c0_i32_214, %c0_i32_215] : memref<1x64x128xf32, #tpu.memory_space<vmem>> -> memref<1x64x128xf32, #tpu.memory_space<vmem>>
    %430 = tpu.memref_squeeze %429 : memref<1x64x128xf32, #tpu.memory_space<vmem>> -> memref<64x128xf32, #tpu.memory_space<vmem>>
    %c32_216 = arith.constant 32 : index
    %c0_217 = arith.constant 0 : index
    %431 = vector.load %430[%c32_216, %c0_217] : memref<64x128xf32, #tpu.memory_space<vmem>>, vector<8x128xf32>
    %432 = arith.truncf %431 : vector<8x128xf32> to vector<8x128xbf16>
    %c1_i32_218 = arith.constant 1 : i32
    %c0_i32_219 = arith.constant 0 : i32
    %c0_i32_220 = arith.constant 0 : i32
    %433 = tpu.memref_slice %arg3[%c1_i32_218, %c0_i32_219, %c0_i32_220] : memref<2x128x384xbf16, #tpu.memory_space<vmem>> -> memref<1x128x384xbf16, #tpu.memory_space<vmem>>
    %434 = tpu.memref_squeeze %433 : memref<1x128x384xbf16, #tpu.memory_space<vmem>> -> memref<128x384xbf16, #tpu.memory_space<vmem>>
    %c0_221 = arith.constant 0 : index
    %c0_222 = arith.constant 0 : index
    %435 = vector.load %434[%c0_221, %c0_222] : memref<128x384xbf16, #tpu.memory_space<vmem>>, vector<128x384xbf16>
    %cst_223 = arith.constant dense<0.000000e+00> : vector<8x384xf32>
    %436 = tpu.matmul %432, %435, %cst_223 {dimension_numbers = #tpu.dot_dimension_numbers<[1], [0], [0], [1], [0, 0, 1, 1], [], []>} : vector<8x128xbf16>, vector<128x384xbf16>, vector<8x384xf32> -> vector<8x384xf32>
    %c1_224 = arith.constant 1 : index
    %c0_225 = arith.constant 0 : index
    %c0_226 = arith.constant 0 : index
    %437 = vector.load %arg5[%c1_224, %c0_225, %c0_226] : memref<2x1x384xf32, #tpu.memory_space<vmem>>, vector<1x1x384xf32>
    %438 = vector.shape_cast %437 : vector<1x1x384xf32> to vector<1x384xf32>
    %439 = vector.broadcast %438 : vector<1x384xf32> to vector<8x384xf32>
    %440 = arith.addf %436, %439 : vector<8x384xf32>
    %441 = arith.truncf %389 : vector<8x128xf32> to vector<8x128xbf16>
    %c1_227 = arith.constant 1 : index
    %c0_228 = arith.constant 0 : index
    %c0_229 = arith.constant 0 : index
    %442 = vector.load %arg4[%c1_227, %c0_228, %c0_229] : memref<2x128x384xbf16, #tpu.memory_space<vmem>>, vector<1x128x384xbf16>
    %443 = vector.shape_cast %442 : vector<1x128x384xbf16> to vector<128x384xbf16>
    %cst_230 = arith.constant dense<0.000000e+00> : vector<8x384xf32>
    %444 = tpu.matmul %441, %443, %cst_230 {dimension_numbers = #tpu.dot_dimension_numbers<[1], [0], [0], [1], [0, 0, 1, 1], [], []>} : vector<8x128xbf16>, vector<128x384xbf16>, vector<8x384xf32> -> vector<8x384xf32>
    %445 = vector.extract_strided_slice %440 {offsets = [0, 0], sizes = [8, 128], strides = [1, 1]} : vector<8x384xf32> to vector<8x128xf32>
    %446 = vector.extract_strided_slice %444 {offsets = [0, 0], sizes = [8, 128], strides = [1, 1]} : vector<8x384xf32> to vector<8x128xf32>
    %447 = arith.addf %445, %446 : vector<8x128xf32>
    %448 = arith.negf %447 : vector<8x128xf32>
    %449 = math.exp %448 : vector<8x128xf32>
    %cst_231 = arith.constant 1.000000e+00 : f32
    %450 = vector.broadcast %cst_231 : f32 to vector<8x128xf32>
    %451 = arith.addf %450, %449 : vector<8x128xf32>
    %452 = arith.divf %450, %451 : vector<8x128xf32>
    %453 = vector.extract_strided_slice %440 {offsets = [0, 128], sizes = [8, 128], strides = [1, 1]} : vector<8x384xf32> to vector<8x128xf32>
    %454 = vector.extract_strided_slice %444 {offsets = [0, 128], sizes = [8, 128], strides = [1, 1]} : vector<8x384xf32> to vector<8x128xf32>
    %455 = arith.addf %453, %454 : vector<8x128xf32>
    %456 = arith.negf %455 : vector<8x128xf32>
    %457 = math.exp %456 : vector<8x128xf32>
    %cst_232 = arith.constant 1.000000e+00 : f32
    %458 = vector.broadcast %cst_232 : f32 to vector<8x128xf32>
    %459 = arith.addf %458, %457 : vector<8x128xf32>
    %460 = arith.divf %458, %459 : vector<8x128xf32>
    %461 = vector.extract_strided_slice %440 {offsets = [0, 256], sizes = [8, 128], strides = [1, 1]} : vector<8x384xf32> to vector<8x128xf32>
    %462 = vector.extract_strided_slice %444 {offsets = [0, 256], sizes = [8, 128], strides = [1, 1]} : vector<8x384xf32> to vector<8x128xf32>
    %c1_233 = arith.constant 1 : index
    %c0_234 = arith.constant 0 : index
    %c0_235 = arith.constant 0 : index
    %463 = vector.load %arg6[%c1_233, %c0_234, %c0_235] : memref<2x1x128xf32, #tpu.memory_space<vmem>>, vector<1x1x128xf32>
    %464 = vector.shape_cast %463 : vector<1x1x128xf32> to vector<1x128xf32>
    %465 = vector.broadcast %464 : vector<1x128xf32> to vector<8x128xf32>
    %466 = arith.addf %462, %465 : vector<8x128xf32>
    %467 = arith.mulf %452, %466 : vector<8x128xf32>
    %468 = arith.addf %461, %467 : vector<8x128xf32>
    %469 = math.tanh %468 : vector<8x128xf32>
    %cst_236 = arith.constant 1.000000e+00 : f32
    %470 = vector.broadcast %cst_236 : f32 to vector<8x128xf32>
    %471 = arith.subf %470, %460 : vector<8x128xf32>
    %472 = arith.mulf %471, %469 : vector<8x128xf32>
    %473 = arith.mulf %460, %389 : vector<8x128xf32>
    %474 = arith.addf %472, %473 : vector<8x128xf32>
    %c32_237 = arith.constant 32 : index
    %c0_238 = arith.constant 0 : index
    %475 = vector.load %arg7[%c32_237, %c0_238] : memref<64x128xf32, #tpu.memory_space<vmem>>, vector<8x128xf32>
    tpu.vector_store %arg7[%c32_237, %c0_238], %474 {strides = array<i32>} : memref<64x128xf32, #tpu.memory_space<vmem>>, vector<8x128xf32>,
    %c48 = arith.constant 48 : index
    %c0_239 = arith.constant 0 : index
    %476 = vector.load %arg9[%c48, %c0_239] : memref<64x384xf32, #tpu.memory_space<vmem>>, vector<8x384xf32>
    %477 = arith.truncf %425 : vector<8x128xf32> to vector<8x128xbf16>
    %c0_240 = arith.constant 0 : index
    %c0_241 = arith.constant 0 : index
    %c0_242 = arith.constant 0 : index
    %478 = vector.load %arg4[%c0_240, %c0_241, %c0_242] : memref<2x128x384xbf16, #tpu.memory_space<vmem>>, vector<1x128x384xbf16>
    %479 = vector.shape_cast %478 : vector<1x128x384xbf16> to vector<128x384xbf16>
    %cst_243 = arith.constant dense<0.000000e+00> : vector<8x384xf32>
    %480 = tpu.matmul %477, %479, %cst_243 {dimension_numbers = #tpu.dot_dimension_numbers<[1], [0], [0], [1], [0, 0, 1, 1], [], []>} : vector<8x128xbf16>, vector<128x384xbf16>, vector<8x384xf32> -> vector<8x384xf32>
    %481 = vector.extract_strided_slice %476 {offsets = [0, 0], sizes = [8, 128], strides = [1, 1]} : vector<8x384xf32> to vector<8x128xf32>
    %482 = vector.extract_strided_slice %480 {offsets = [0, 0], sizes = [8, 128], strides = [1, 1]} : vector<8x384xf32> to vector<8x128xf32>
    %483 = arith.addf %481, %482 : vector<8x128xf32>
    %484 = arith.negf %483 : vector<8x128xf32>
    %485 = math.exp %484 : vector<8x128xf32>
    %cst_244 = arith.constant 1.000000e+00 : f32
    %486 = vector.broadcast %cst_244 : f32 to vector<8x128xf32>
    %487 = arith.addf %486, %485 : vector<8x128xf32>
    %488 = arith.divf %486, %487 : vector<8x128xf32>
    %489 = vector.extract_strided_slice %476 {offsets = [0, 128], sizes = [8, 128], strides = [1, 1]} : vector<8x384xf32> to vector<8x128xf32>
    %490 = vector.extract_strided_slice %480 {offsets = [0, 128], sizes = [8, 128], strides = [1, 1]} : vector<8x384xf32> to vector<8x128xf32>
    %491 = arith.addf %489, %490 : vector<8x128xf32>
    %492 = arith.negf %491 : vector<8x128xf32>
    %493 = math.exp %492 : vector<8x128xf32>
    %cst_245 = arith.constant 1.000000e+00 : f32
    %494 = vector.broadcast %cst_245 : f32 to vector<8x128xf32>
    %495 = arith.addf %494, %493 : vector<8x128xf32>
    %496 = arith.divf %494, %495 : vector<8x128xf32>
    %497 = vector.extract_strided_slice %476 {offsets = [0, 256], sizes = [8, 128], strides = [1, 1]} : vector<8x384xf32> to vector<8x128xf32>
    %498 = vector.extract_strided_slice %480 {offsets = [0, 256], sizes = [8, 128], strides = [1, 1]} : vector<8x384xf32> to vector<8x128xf32>
    %c0_246 = arith.constant 0 : index
    %c0_247 = arith.constant 0 : index
    %c0_248 = arith.constant 0 : index
    %499 = vector.load %arg6[%c0_246, %c0_247, %c0_248] : memref<2x1x128xf32, #tpu.memory_space<vmem>>, vector<1x1x128xf32>
    %500 = vector.shape_cast %499 : vector<1x1x128xf32> to vector<1x128xf32>
    %501 = vector.broadcast %500 : vector<1x128xf32> to vector<8x128xf32>
    %502 = arith.addf %498, %501 : vector<8x128xf32>
    %503 = arith.mulf %488, %502 : vector<8x128xf32>
    %504 = arith.addf %497, %503 : vector<8x128xf32>
    %505 = math.tanh %504 : vector<8x128xf32>
    %cst_249 = arith.constant 1.000000e+00 : f32
    %506 = vector.broadcast %cst_249 : f32 to vector<8x128xf32>
    %507 = arith.subf %506, %496 : vector<8x128xf32>
    %508 = arith.mulf %507, %505 : vector<8x128xf32>
    %509 = arith.mulf %496, %425 : vector<8x128xf32>
    %510 = arith.addf %508, %509 : vector<8x128xf32>
    %c0_i32_250 = arith.constant 0 : i32
    %c0_i32_251 = arith.constant 0 : i32
    %c0_i32_252 = arith.constant 0 : i32
    %511 = tpu.memref_slice %arg10[%c0_i32_250, %c0_i32_251, %c0_i32_252] : memref<1x64x128xf32, #tpu.memory_space<vmem>> -> memref<1x64x128xf32, #tpu.memory_space<vmem>>
    %512 = tpu.memref_squeeze %511 : memref<1x64x128xf32, #tpu.memory_space<vmem>> -> memref<64x128xf32, #tpu.memory_space<vmem>>
    %c48_253 = arith.constant 48 : index
    %c0_254 = arith.constant 0 : index
    %513 = vector.load %512[%c48_253, %c0_254] : memref<64x128xf32, #tpu.memory_space<vmem>>, vector<8x128xf32>
    tpu.vector_store %512[%c48_253, %c0_254], %510 {strides = array<i32>} : memref<64x128xf32, #tpu.memory_space<vmem>>, vector<8x128xf32>,
    %c0_i32_255 = arith.constant 0 : i32
    %c0_i32_256 = arith.constant 0 : i32
    %c0_i32_257 = arith.constant 0 : i32
    %514 = tpu.memref_slice %arg10[%c0_i32_255, %c0_i32_256, %c0_i32_257] : memref<1x64x128xf32, #tpu.memory_space<vmem>> -> memref<1x64x128xf32, #tpu.memory_space<vmem>>
    %515 = tpu.memref_squeeze %514 : memref<1x64x128xf32, #tpu.memory_space<vmem>> -> memref<64x128xf32, #tpu.memory_space<vmem>>
    %c40_258 = arith.constant 40 : index
    %c0_259 = arith.constant 0 : index
    %516 = vector.load %515[%c40_258, %c0_259] : memref<64x128xf32, #tpu.memory_space<vmem>>, vector<8x128xf32>
    %517 = arith.truncf %516 : vector<8x128xf32> to vector<8x128xbf16>
    %c1_i32_260 = arith.constant 1 : i32
    %c0_i32_261 = arith.constant 0 : i32
    %c0_i32_262 = arith.constant 0 : i32
    %518 = tpu.memref_slice %arg3[%c1_i32_260, %c0_i32_261, %c0_i32_262] : memref<2x128x384xbf16, #tpu.memory_space<vmem>> -> memref<1x128x384xbf16, #tpu.memory_space<vmem>>
    %519 = tpu.memref_squeeze %518 : memref<1x128x384xbf16, #tpu.memory_space<vmem>> -> memref<128x384xbf16, #tpu.memory_space<vmem>>
    %c0_263 = arith.constant 0 : index
    %c0_264 = arith.constant 0 : index
    %520 = vector.load %519[%c0_263, %c0_264] : memref<128x384xbf16, #tpu.memory_space<vmem>>, vector<128x384xbf16>
    %cst_265 = arith.constant dense<0.000000e+00> : vector<8x384xf32>
    %521 = tpu.matmul %517, %520, %cst_265 {dimension_numbers = #tpu.dot_dimension_numbers<[1], [0], [0], [1], [0, 0, 1, 1], [], []>} : vector<8x128xbf16>, vector<128x384xbf16>, vector<8x384xf32> -> vector<8x384xf32>
    %c1_266 = arith.constant 1 : index
    %c0_267 = arith.constant 0 : index
    %c0_268 = arith.constant 0 : index
    %522 = vector.load %arg5[%c1_266, %c0_267, %c0_268] : memref<2x1x384xf32, #tpu.memory_space<vmem>>, vector<1x1x384xf32>
    %523 = vector.shape_cast %522 : vector<1x1x384xf32> to vector<1x384xf32>
    %524 = vector.broadcast %523 : vector<1x384xf32> to vector<8x384xf32>
    %525 = arith.addf %521, %524 : vector<8x384xf32>
    %526 = arith.truncf %474 : vector<8x128xf32> to vector<8x128xbf16>
    %c1_269 = arith.constant 1 : index
    %c0_270 = arith.constant 0 : index
    %c0_271 = arith.constant 0 : index
    %527 = vector.load %arg4[%c1_269, %c0_270, %c0_271] : memref<2x128x384xbf16, #tpu.memory_space<vmem>>, vector<1x128x384xbf16>
    %528 = vector.shape_cast %527 : vector<1x128x384xbf16> to vector<128x384xbf16>
    %cst_272 = arith.constant dense<0.000000e+00> : vector<8x384xf32>
    %529 = tpu.matmul %526, %528, %cst_272 {dimension_numbers = #tpu.dot_dimension_numbers<[1], [0], [0], [1], [0, 0, 1, 1], [], []>} : vector<8x128xbf16>, vector<128x384xbf16>, vector<8x384xf32> -> vector<8x384xf32>
    %530 = vector.extract_strided_slice %525 {offsets = [0, 0], sizes = [8, 128], strides = [1, 1]} : vector<8x384xf32> to vector<8x128xf32>
    %531 = vector.extract_strided_slice %529 {offsets = [0, 0], sizes = [8, 128], strides = [1, 1]} : vector<8x384xf32> to vector<8x128xf32>
    %532 = arith.addf %530, %531 : vector<8x128xf32>
    %533 = arith.negf %532 : vector<8x128xf32>
    %534 = math.exp %533 : vector<8x128xf32>
    %cst_273 = arith.constant 1.000000e+00 : f32
    %535 = vector.broadcast %cst_273 : f32 to vector<8x128xf32>
    %536 = arith.addf %535, %534 : vector<8x128xf32>
    %537 = arith.divf %535, %536 : vector<8x128xf32>
    %538 = vector.extract_strided_slice %525 {offsets = [0, 128], sizes = [8, 128], strides = [1, 1]} : vector<8x384xf32> to vector<8x128xf32>
    %539 = vector.extract_strided_slice %529 {offsets = [0, 128], sizes = [8, 128], strides = [1, 1]} : vector<8x384xf32> to vector<8x128xf32>
    %540 = arith.addf %538, %539 : vector<8x128xf32>
    %541 = arith.negf %540 : vector<8x128xf32>
    %542 = math.exp %541 : vector<8x128xf32>
    %cst_274 = arith.constant 1.000000e+00 : f32
    %543 = vector.broadcast %cst_274 : f32 to vector<8x128xf32>
    %544 = arith.addf %543, %542 : vector<8x128xf32>
    %545 = arith.divf %543, %544 : vector<8x128xf32>
    %546 = vector.extract_strided_slice %525 {offsets = [0, 256], sizes = [8, 128], strides = [1, 1]} : vector<8x384xf32> to vector<8x128xf32>
    %547 = vector.extract_strided_slice %529 {offsets = [0, 256], sizes = [8, 128], strides = [1, 1]} : vector<8x384xf32> to vector<8x128xf32>
    %c1_275 = arith.constant 1 : index
    %c0_276 = arith.constant 0 : index
    %c0_277 = arith.constant 0 : index
    %548 = vector.load %arg6[%c1_275, %c0_276, %c0_277] : memref<2x1x128xf32, #tpu.memory_space<vmem>>, vector<1x1x128xf32>
    %549 = vector.shape_cast %548 : vector<1x1x128xf32> to vector<1x128xf32>
    %550 = vector.broadcast %549 : vector<1x128xf32> to vector<8x128xf32>
    %551 = arith.addf %547, %550 : vector<8x128xf32>
    %552 = arith.mulf %537, %551 : vector<8x128xf32>
    %553 = arith.addf %546, %552 : vector<8x128xf32>
    %554 = math.tanh %553 : vector<8x128xf32>
    %cst_278 = arith.constant 1.000000e+00 : f32
    %555 = vector.broadcast %cst_278 : f32 to vector<8x128xf32>
    %556 = arith.subf %555, %545 : vector<8x128xf32>
    %557 = arith.mulf %556, %554 : vector<8x128xf32>
    %558 = arith.mulf %545, %474 : vector<8x128xf32>
    %559 = arith.addf %557, %558 : vector<8x128xf32>
    %c40_279 = arith.constant 40 : index
    %c0_280 = arith.constant 0 : index
    %560 = vector.load %arg7[%c40_279, %c0_280] : memref<64x128xf32, #tpu.memory_space<vmem>>, vector<8x128xf32>
    tpu.vector_store %arg7[%c40_279, %c0_280], %559 {strides = array<i32>} : memref<64x128xf32, #tpu.memory_space<vmem>>, vector<8x128xf32>,
    %c56 = arith.constant 56 : index
    %c0_281 = arith.constant 0 : index
    %561 = vector.load %arg9[%c56, %c0_281] : memref<64x384xf32, #tpu.memory_space<vmem>>, vector<8x384xf32>
    %562 = arith.truncf %510 : vector<8x128xf32> to vector<8x128xbf16>
    %c0_282 = arith.constant 0 : index
    %c0_283 = arith.constant 0 : index
    %c0_284 = arith.constant 0 : index
    %563 = vector.load %arg4[%c0_282, %c0_283, %c0_284] : memref<2x128x384xbf16, #tpu.memory_space<vmem>>, vector<1x128x384xbf16>
    %564 = vector.shape_cast %563 : vector<1x128x384xbf16> to vector<128x384xbf16>
    %cst_285 = arith.constant dense<0.000000e+00> : vector<8x384xf32>
    %565 = tpu.matmul %562, %564, %cst_285 {dimension_numbers = #tpu.dot_dimension_numbers<[1], [0], [0], [1], [0, 0, 1, 1], [], []>} : vector<8x128xbf16>, vector<128x384xbf16>, vector<8x384xf32> -> vector<8x384xf32>
    %566 = vector.extract_strided_slice %561 {offsets = [0, 0], sizes = [8, 128], strides = [1, 1]} : vector<8x384xf32> to vector<8x128xf32>
    %567 = vector.extract_strided_slice %565 {offsets = [0, 0], sizes = [8, 128], strides = [1, 1]} : vector<8x384xf32> to vector<8x128xf32>
    %568 = arith.addf %566, %567 : vector<8x128xf32>
    %569 = arith.negf %568 : vector<8x128xf32>
    %570 = math.exp %569 : vector<8x128xf32>
    %cst_286 = arith.constant 1.000000e+00 : f32
    %571 = vector.broadcast %cst_286 : f32 to vector<8x128xf32>
    %572 = arith.addf %571, %570 : vector<8x128xf32>
    %573 = arith.divf %571, %572 : vector<8x128xf32>
    %574 = vector.extract_strided_slice %561 {offsets = [0, 128], sizes = [8, 128], strides = [1, 1]} : vector<8x384xf32> to vector<8x128xf32>
    %575 = vector.extract_strided_slice %565 {offsets = [0, 128], sizes = [8, 128], strides = [1, 1]} : vector<8x384xf32> to vector<8x128xf32>
    %576 = arith.addf %574, %575 : vector<8x128xf32>
    %577 = arith.negf %576 : vector<8x128xf32>
    %578 = math.exp %577 : vector<8x128xf32>
    %cst_287 = arith.constant 1.000000e+00 : f32
    %579 = vector.broadcast %cst_287 : f32 to vector<8x128xf32>
    %580 = arith.addf %579, %578 : vector<8x128xf32>
    %581 = arith.divf %579, %580 : vector<8x128xf32>
    %582 = vector.extract_strided_slice %561 {offsets = [0, 256], sizes = [8, 128], strides = [1, 1]} : vector<8x384xf32> to vector<8x128xf32>
    %583 = vector.extract_strided_slice %565 {offsets = [0, 256], sizes = [8, 128], strides = [1, 1]} : vector<8x384xf32> to vector<8x128xf32>
    %c0_288 = arith.constant 0 : index
    %c0_289 = arith.constant 0 : index
    %c0_290 = arith.constant 0 : index
    %584 = vector.load %arg6[%c0_288, %c0_289, %c0_290] : memref<2x1x128xf32, #tpu.memory_space<vmem>>, vector<1x1x128xf32>
    %585 = vector.shape_cast %584 : vector<1x1x128xf32> to vector<1x128xf32>
    %586 = vector.broadcast %585 : vector<1x128xf32> to vector<8x128xf32>
    %587 = arith.addf %583, %586 : vector<8x128xf32>
    %588 = arith.mulf %573, %587 : vector<8x128xf32>
    %589 = arith.addf %582, %588 : vector<8x128xf32>
    %590 = math.tanh %589 : vector<8x128xf32>
    %cst_291 = arith.constant 1.000000e+00 : f32
    %591 = vector.broadcast %cst_291 : f32 to vector<8x128xf32>
    %592 = arith.subf %591, %581 : vector<8x128xf32>
    %593 = arith.mulf %592, %590 : vector<8x128xf32>
    %594 = arith.mulf %581, %510 : vector<8x128xf32>
    %595 = arith.addf %593, %594 : vector<8x128xf32>
    %c0_i32_292 = arith.constant 0 : i32
    %c0_i32_293 = arith.constant 0 : i32
    %c0_i32_294 = arith.constant 0 : i32
    %596 = tpu.memref_slice %arg10[%c0_i32_292, %c0_i32_293, %c0_i32_294] : memref<1x64x128xf32, #tpu.memory_space<vmem>> -> memref<1x64x128xf32, #tpu.memory_space<vmem>>
    %597 = tpu.memref_squeeze %596 : memref<1x64x128xf32, #tpu.memory_space<vmem>> -> memref<64x128xf32, #tpu.memory_space<vmem>>
    %c56_295 = arith.constant 56 : index
    %c0_296 = arith.constant 0 : index
    %598 = vector.load %597[%c56_295, %c0_296] : memref<64x128xf32, #tpu.memory_space<vmem>>, vector<8x128xf32>
    tpu.vector_store %597[%c56_295, %c0_296], %595 {strides = array<i32>} : memref<64x128xf32, #tpu.memory_space<vmem>>, vector<8x128xf32>,
    %c0_i32_297 = arith.constant 0 : i32
    %c0_i32_298 = arith.constant 0 : i32
    %c0_i32_299 = arith.constant 0 : i32
    %599 = tpu.memref_slice %arg10[%c0_i32_297, %c0_i32_298, %c0_i32_299] : memref<1x64x128xf32, #tpu.memory_space<vmem>> -> memref<1x64x128xf32, #tpu.memory_space<vmem>>
    %600 = tpu.memref_squeeze %599 : memref<1x64x128xf32, #tpu.memory_space<vmem>> -> memref<64x128xf32, #tpu.memory_space<vmem>>
    %c48_300 = arith.constant 48 : index
    %c0_301 = arith.constant 0 : index
    %601 = vector.load %600[%c48_300, %c0_301] : memref<64x128xf32, #tpu.memory_space<vmem>>, vector<8x128xf32>
    %602 = arith.truncf %601 : vector<8x128xf32> to vector<8x128xbf16>
    %c1_i32_302 = arith.constant 1 : i32
    %c0_i32_303 = arith.constant 0 : i32
    %c0_i32_304 = arith.constant 0 : i32
    %603 = tpu.memref_slice %arg3[%c1_i32_302, %c0_i32_303, %c0_i32_304] : memref<2x128x384xbf16, #tpu.memory_space<vmem>> -> memref<1x128x384xbf16, #tpu.memory_space<vmem>>
    %604 = tpu.memref_squeeze %603 : memref<1x128x384xbf16, #tpu.memory_space<vmem>> -> memref<128x384xbf16, #tpu.memory_space<vmem>>
    %c0_305 = arith.constant 0 : index
    %c0_306 = arith.constant 0 : index
    %605 = vector.load %604[%c0_305, %c0_306] : memref<128x384xbf16, #tpu.memory_space<vmem>>, vector<128x384xbf16>
    %cst_307 = arith.constant dense<0.000000e+00> : vector<8x384xf32>
    %606 = tpu.matmul %602, %605, %cst_307 {dimension_numbers = #tpu.dot_dimension_numbers<[1], [0], [0], [1], [0, 0, 1, 1], [], []>} : vector<8x128xbf16>, vector<128x384xbf16>, vector<8x384xf32> -> vector<8x384xf32>
    %c1_308 = arith.constant 1 : index
    %c0_309 = arith.constant 0 : index
    %c0_310 = arith.constant 0 : index
    %607 = vector.load %arg5[%c1_308, %c0_309, %c0_310] : memref<2x1x384xf32, #tpu.memory_space<vmem>>, vector<1x1x384xf32>
    %608 = vector.shape_cast %607 : vector<1x1x384xf32> to vector<1x384xf32>
    %609 = vector.broadcast %608 : vector<1x384xf32> to vector<8x384xf32>
    %610 = arith.addf %606, %609 : vector<8x384xf32>
    %611 = arith.truncf %559 : vector<8x128xf32> to vector<8x128xbf16>
    %c1_311 = arith.constant 1 : index
    %c0_312 = arith.constant 0 : index
    %c0_313 = arith.constant 0 : index
    %612 = vector.load %arg4[%c1_311, %c0_312, %c0_313] : memref<2x128x384xbf16, #tpu.memory_space<vmem>>, vector<1x128x384xbf16>
    %613 = vector.shape_cast %612 : vector<1x128x384xbf16> to vector<128x384xbf16>
    %cst_314 = arith.constant dense<0.000000e+00> : vector<8x384xf32>
    %614 = tpu.matmul %611, %613, %cst_314 {dimension_numbers = #tpu.dot_dimension_numbers<[1], [0], [0], [1], [0, 0, 1, 1], [], []>} : vector<8x128xbf16>, vector<128x384xbf16>, vector<8x384xf32> -> vector<8x384xf32>
    %615 = vector.extract_strided_slice %610 {offsets = [0, 0], sizes = [8, 128], strides = [1, 1]} : vector<8x384xf32> to vector<8x128xf32>
    %616 = vector.extract_strided_slice %614 {offsets = [0, 0], sizes = [8, 128], strides = [1, 1]} : vector<8x384xf32> to vector<8x128xf32>
    %617 = arith.addf %615, %616 : vector<8x128xf32>
    %618 = arith.negf %617 : vector<8x128xf32>
    %619 = math.exp %618 : vector<8x128xf32>
    %cst_315 = arith.constant 1.000000e+00 : f32
    %620 = vector.broadcast %cst_315 : f32 to vector<8x128xf32>
    %621 = arith.addf %620, %619 : vector<8x128xf32>
    %622 = arith.divf %620, %621 : vector<8x128xf32>
    %623 = vector.extract_strided_slice %610 {offsets = [0, 128], sizes = [8, 128], strides = [1, 1]} : vector<8x384xf32> to vector<8x128xf32>
    %624 = vector.extract_strided_slice %614 {offsets = [0, 128], sizes = [8, 128], strides = [1, 1]} : vector<8x384xf32> to vector<8x128xf32>
    %625 = arith.addf %623, %624 : vector<8x128xf32>
    %626 = arith.negf %625 : vector<8x128xf32>
    %627 = math.exp %626 : vector<8x128xf32>
    %cst_316 = arith.constant 1.000000e+00 : f32
    %628 = vector.broadcast %cst_316 : f32 to vector<8x128xf32>
    %629 = arith.addf %628, %627 : vector<8x128xf32>
    %630 = arith.divf %628, %629 : vector<8x128xf32>
    %631 = vector.extract_strided_slice %610 {offsets = [0, 256], sizes = [8, 128], strides = [1, 1]} : vector<8x384xf32> to vector<8x128xf32>
    %632 = vector.extract_strided_slice %614 {offsets = [0, 256], sizes = [8, 128], strides = [1, 1]} : vector<8x384xf32> to vector<8x128xf32>
    %c1_317 = arith.constant 1 : index
    %c0_318 = arith.constant 0 : index
    %c0_319 = arith.constant 0 : index
    %633 = vector.load %arg6[%c1_317, %c0_318, %c0_319] : memref<2x1x128xf32, #tpu.memory_space<vmem>>, vector<1x1x128xf32>
    %634 = vector.shape_cast %633 : vector<1x1x128xf32> to vector<1x128xf32>
    %635 = vector.broadcast %634 : vector<1x128xf32> to vector<8x128xf32>
    %636 = arith.addf %632, %635 : vector<8x128xf32>
    %637 = arith.mulf %622, %636 : vector<8x128xf32>
    %638 = arith.addf %631, %637 : vector<8x128xf32>
    %639 = math.tanh %638 : vector<8x128xf32>
    %cst_320 = arith.constant 1.000000e+00 : f32
    %640 = vector.broadcast %cst_320 : f32 to vector<8x128xf32>
    %641 = arith.subf %640, %630 : vector<8x128xf32>
    %642 = arith.mulf %641, %639 : vector<8x128xf32>
    %643 = arith.mulf %630, %559 : vector<8x128xf32>
    %644 = arith.addf %642, %643 : vector<8x128xf32>
    %c48_321 = arith.constant 48 : index
    %c0_322 = arith.constant 0 : index
    %645 = vector.load %arg7[%c48_321, %c0_322] : memref<64x128xf32, #tpu.memory_space<vmem>>, vector<8x128xf32>
    tpu.vector_store %arg7[%c48_321, %c0_322], %644 {strides = array<i32>} : memref<64x128xf32, #tpu.memory_space<vmem>>, vector<8x128xf32>,
    %c0_i32_323 = arith.constant 0 : i32
    %c0_i32_324 = arith.constant 0 : i32
    %c0_i32_325 = arith.constant 0 : i32
    %646 = tpu.memref_slice %arg10[%c0_i32_323, %c0_i32_324, %c0_i32_325] : memref<1x64x128xf32, #tpu.memory_space<vmem>> -> memref<1x64x128xf32, #tpu.memory_space<vmem>>
    %647 = tpu.memref_squeeze %646 : memref<1x64x128xf32, #tpu.memory_space<vmem>> -> memref<64x128xf32, #tpu.memory_space<vmem>>
    %c56_326 = arith.constant 56 : index
    %c0_327 = arith.constant 0 : index
    %648 = vector.load %647[%c56_326, %c0_327] : memref<64x128xf32, #tpu.memory_space<vmem>>, vector<8x128xf32>
    %649 = arith.truncf %648 : vector<8x128xf32> to vector<8x128xbf16>
    %c1_i32_328 = arith.constant 1 : i32
    %c0_i32_329 = arith.constant 0 : i32
    %c0_i32_330 = arith.constant 0 : i32
    %650 = tpu.memref_slice %arg3[%c1_i32_328, %c0_i32_329, %c0_i32_330] : memref<2x128x384xbf16, #tpu.memory_space<vmem>> -> memref<1x128x384xbf16, #tpu.memory_space<vmem>>
    %651 = tpu.memref_squeeze %650 : memref<1x128x384xbf16, #tpu.memory_space<vmem>> -> memref<128x384xbf16, #tpu.memory_space<vmem>>
    %c0_331 = arith.constant 0 : index
    %c0_332 = arith.constant 0 : index
    %652 = vector.load %651[%c0_331, %c0_332] : memref<128x384xbf16, #tpu.memory_space<vmem>>, vector<128x384xbf16>
    %cst_333 = arith.constant dense<0.000000e+00> : vector<8x384xf32>
    %653 = tpu.matmul %649, %652, %cst_333 {dimension_numbers = #tpu.dot_dimension_numbers<[1], [0], [0], [1], [0, 0, 1, 1], [], []>} : vector<8x128xbf16>, vector<128x384xbf16>, vector<8x384xf32> -> vector<8x384xf32>
    %c1_334 = arith.constant 1 : index
    %c0_335 = arith.constant 0 : index
    %c0_336 = arith.constant 0 : index
    %654 = vector.load %arg5[%c1_334, %c0_335, %c0_336] : memref<2x1x384xf32, #tpu.memory_space<vmem>>, vector<1x1x384xf32>
    %655 = vector.shape_cast %654 : vector<1x1x384xf32> to vector<1x384xf32>
    %656 = vector.broadcast %655 : vector<1x384xf32> to vector<8x384xf32>
    %657 = arith.addf %653, %656 : vector<8x384xf32>
    %658 = arith.truncf %644 : vector<8x128xf32> to vector<8x128xbf16>
    %c1_337 = arith.constant 1 : index
    %c0_338 = arith.constant 0 : index
    %c0_339 = arith.constant 0 : index
    %659 = vector.load %arg4[%c1_337, %c0_338, %c0_339] : memref<2x128x384xbf16, #tpu.memory_space<vmem>>, vector<1x128x384xbf16>
    %660 = vector.shape_cast %659 : vector<1x128x384xbf16> to vector<128x384xbf16>
    %cst_340 = arith.constant dense<0.000000e+00> : vector<8x384xf32>
    %661 = tpu.matmul %658, %660, %cst_340 {dimension_numbers = #tpu.dot_dimension_numbers<[1], [0], [0], [1], [0, 0, 1, 1], [], []>} : vector<8x128xbf16>, vector<128x384xbf16>, vector<8x384xf32> -> vector<8x384xf32>
    %662 = vector.extract_strided_slice %657 {offsets = [0, 0], sizes = [8, 128], strides = [1, 1]} : vector<8x384xf32> to vector<8x128xf32>
    %663 = vector.extract_strided_slice %661 {offsets = [0, 0], sizes = [8, 128], strides = [1, 1]} : vector<8x384xf32> to vector<8x128xf32>
    %664 = arith.addf %662, %663 : vector<8x128xf32>
    %665 = arith.negf %664 : vector<8x128xf32>
    %666 = math.exp %665 : vector<8x128xf32>
    %cst_341 = arith.constant 1.000000e+00 : f32
    %667 = vector.broadcast %cst_341 : f32 to vector<8x128xf32>
    %668 = arith.addf %667, %666 : vector<8x128xf32>
    %669 = arith.divf %667, %668 : vector<8x128xf32>
    %670 = vector.extract_strided_slice %657 {offsets = [0, 128], sizes = [8, 128], strides = [1, 1]} : vector<8x384xf32> to vector<8x128xf32>
    %671 = vector.extract_strided_slice %661 {offsets = [0, 128], sizes = [8, 128], strides = [1, 1]} : vector<8x384xf32> to vector<8x128xf32>
    %672 = arith.addf %670, %671 : vector<8x128xf32>
    %673 = arith.negf %672 : vector<8x128xf32>
    %674 = math.exp %673 : vector<8x128xf32>
    %cst_342 = arith.constant 1.000000e+00 : f32
    %675 = vector.broadcast %cst_342 : f32 to vector<8x128xf32>
    %676 = arith.addf %675, %674 : vector<8x128xf32>
    %677 = arith.divf %675, %676 : vector<8x128xf32>
    %678 = vector.extract_strided_slice %657 {offsets = [0, 256], sizes = [8, 128], strides = [1, 1]} : vector<8x384xf32> to vector<8x128xf32>
    %679 = vector.extract_strided_slice %661 {offsets = [0, 256], sizes = [8, 128], strides = [1, 1]} : vector<8x384xf32> to vector<8x128xf32>
    %c1_343 = arith.constant 1 : index
    %c0_344 = arith.constant 0 : index
    %c0_345 = arith.constant 0 : index
    %680 = vector.load %arg6[%c1_343, %c0_344, %c0_345] : memref<2x1x128xf32, #tpu.memory_space<vmem>>, vector<1x1x128xf32>
    %681 = vector.shape_cast %680 : vector<1x1x128xf32> to vector<1x128xf32>
    %682 = vector.broadcast %681 : vector<1x128xf32> to vector<8x128xf32>
    %683 = arith.addf %679, %682 : vector<8x128xf32>
    %684 = arith.mulf %669, %683 : vector<8x128xf32>
    %685 = arith.addf %678, %684 : vector<8x128xf32>
    %686 = math.tanh %685 : vector<8x128xf32>
    %cst_346 = arith.constant 1.000000e+00 : f32
    %687 = vector.broadcast %cst_346 : f32 to vector<8x128xf32>
    %688 = arith.subf %687, %677 : vector<8x128xf32>
    %689 = arith.mulf %688, %686 : vector<8x128xf32>
    %690 = arith.mulf %677, %644 : vector<8x128xf32>
    %691 = arith.addf %689, %690 : vector<8x128xf32>
    %c56_347 = arith.constant 56 : index
    %c0_348 = arith.constant 0 : index
    %692 = vector.load %arg7[%c56_347, %c0_348] : memref<64x128xf32, #tpu.memory_space<vmem>>, vector<8x128xf32>
    tpu.vector_store %arg7[%c56_347, %c0_348], %691 {strides = array<i32>} : memref<64x128xf32, #tpu.memory_space<vmem>>, vector<8x128xf32>,
    %c0_349 = arith.constant 0 : index
    %c0_350 = arith.constant 0 : index
    %c0_351 = arith.constant 0 : index
    %693 = vector.load %arg8[%c0_349, %c0_350, %c0_351] : memref<2x8x128xf32, #tpu.memory_space<vmem>>, vector<1x8x128xf32>
    %694 = vector.shape_cast %693 : vector<1x8x128xf32> to vector<8x128xf32>
    %695 = vector.shape_cast %595 : vector<8x128xf32> to vector<1x8x128xf32>
    tpu.vector_store %arg8[%c0_349, %c0_350, %c0_351], %695 {strides = array<i32>} : memref<2x8x128xf32, #tpu.memory_space<vmem>>, vector<1x8x128xf32>,
    %c1_352 = arith.constant 1 : index
    %c0_353 = arith.constant 0 : index
    %c0_354 = arith.constant 0 : index
    %696 = vector.load %arg8[%c1_352, %c0_353, %c0_354] : memref<2x8x128xf32, #tpu.memory_space<vmem>>, vector<1x8x128xf32>
    %697 = vector.shape_cast %696 : vector<1x8x128xf32> to vector<8x128xf32>
    %698 = vector.shape_cast %691 : vector<8x128xf32> to vector<1x8x128xf32>
    tpu.vector_store %arg8[%c1_352, %c0_353, %c0_354], %698 {strides = array<i32>} : memref<2x8x128xf32, #tpu.memory_space<vmem>>, vector<1x8x128xf32>,
    return
  }
  func.func @transform_0(%arg0: i32) -> (i32, i32) {
    %c0_i32 = arith.constant 0 : i32
    %c0_i32_0 = arith.constant 0 : i32
    %c0_i32_1 = arith.constant 0 : i32
    return %c0_i32, %c0_i32_0 : i32, i32
  }
  func.func @transform_1(%arg0: i32) -> (i32, i32, i32) {
    %c0_i32 = arith.constant 0 : i32
    %c0_i32_0 = arith.constant 0 : i32
    %c0_i32_1 = arith.constant 0 : i32
    %c0_i32_2 = arith.constant 0 : i32
    return %c0_i32, %c0_i32_0, %c0_i32_1 : i32, i32, i32
  }
  func.func @transform_2(%arg0: i32) -> (i32, i32, i32) {
    %c0_i32 = arith.constant 0 : i32
    %c0_i32_0 = arith.constant 0 : i32
    %c0_i32_1 = arith.constant 0 : i32
    %c0_i32_2 = arith.constant 0 : i32
    return %c0_i32, %c0_i32_0, %c0_i32_1 : i32, i32, i32
  }
  func.func @transform_3(%arg0: i32) -> (i32, i32, i32) {
    %c0_i32 = arith.constant 0 : i32
    %c0_i32_0 = arith.constant 0 : i32
    %c0_i32_1 = arith.constant 0 : i32
    %c0_i32_2 = arith.constant 0 : i32
    return %c0_i32, %c0_i32_0, %c0_i32_1 : i32, i32, i32
  }
  func.func @transform_4(%arg0: i32) -> (i32, i32, i32) {
    %c0_i32 = arith.constant 0 : i32
    %c0_i32_0 = arith.constant 0 : i32
    %c0_i32_1 = arith.constant 0 : i32
    %c0_i32_2 = arith.constant 0 : i32
    return %c0_i32, %c0_i32_0, %c0_i32_1 : i32, i32, i32
  }
  func.func @transform_5(%arg0: i32) -> (i32, i32, i32) {
    %c0_i32 = arith.constant 0 : i32
    %c0_i32_0 = arith.constant 0 : i32
    %c0_i32_1 = arith.constant 0 : i32
    %c0_i32_2 = arith.constant 0 : i32
    return %c0_i32, %c0_i32_0, %c0_i32_1 : i32, i32, i32
  }
  func.func @transform_6(%arg0: i32) -> (i32, i32) {
    %c0_i32 = arith.constant 0 : i32
    %c0_i32_0 = arith.constant 0 : i32
    %c0_i32_1 = arith.constant 0 : i32
    return %c0_i32, %c0_i32_0 : i32, i32
  }
  func.func @transform_7(%arg0: i32) -> (i32, i32, i32) {
    %c0_i32 = arith.constant 0 : i32
    %c0_i32_0 = arith.constant 0 : i32
    %c0_i32_1 = arith.constant 0 : i32
    %c0_i32_2 = arith.constant 0 : i32
    return %c0_i32, %c0_i32_0, %c0_i32_1 : i32, i32, i32
  }
}

</mosaic_0001>

<bundles_post_ra>
// kernel: tpu_custom_call.1
= control target key start
LH: loop header
LB: loop body
LE: loop exit
PB: predicated region body
PF: predicated region fallthrough
CT: control target
= control target key end

     0   :  { %13 = vsyncpa [#allocation5], 0  ;;  %s10706_s0 = inlined_call_operand.vmem [shape: bf16[64,128], index: 0, kind: input, shape index: {}]   ;;  %s10707_s1 = inlined_call_operand.hbm [shape: f32[2,8,128], index: 1, kind: input, shape index: {}, may-alias: {1,7}]   ;;  %s10708_s2 = inlined_call_operand.hbm [shape: bf16[2,128,384], index: 2, kind: input, shape index: {}]   ;;  %s10709_s3 = inlined_call_operand.hbm [shape: bf16[2,128,384], index: 3, kind: input, shape index: {}]   ;;  %s10710_s4 = inlined_call_operand.vmem [shape: f32[2,1,384], index: 4, kind: input, shape index: {}]   ;;  %s10711_s5 = inlined_call_operand.vmem [shape: f32[2,1,128], index: 5, kind: input, shape index: {}]   ;;  %s10712_s6 = inlined_call_operand.hbm [shape: f32[64,128], index: 6, kind: output, shape index: {0}]   ;;  %s10713_s7 = inlined_call_operand.hbm [shape: f32[2,8,128], index: 7, kind: output, shape index: {1}, may-alias: {1,7}]  }
   0x1   :  { %14 = vsyncpa [#allocation8], 0 }
   0x2   :  { %15 = vsyncpa [#allocation6], 0 }
   0x3   :  { %16 = vsyncpa [#allocation12], 0  ;;  %s9195_s24 = smov [#allocation7]   ;;  %s9077_s28 = scalar_lea.hbm %s10708_s2, 6144 }
   0x4   :  { %s36_s25 = sshll.u32 %s9195_s24, 4  ;;  %p9078_p0 = scmp.ne.s32.totalorder %s10708_s2, %s9077_s28  ;;  %s37_s25 = int_to_ptr.vmem [resolvable:$true] %s36_s25 }
   0x5   :  { %p9081_p1 = scmp.lt.u32.totalorder %s9077_s28, %s10708_s2 }
   0x7   :  { %p9083_p2 = pnand %p9081_p1, %p9078_p0 }
   0x9   :  { %9086 = shalt.err (!%p9083_p2)
}
   0xa   :  { %s9087_s10 = scalar_lea.vmem %s37_s25, 6144  ;;  %p9092_p4 = scmp.lt.s32.totalorder %s37_s25, %s37_s25 }
   0xb   :  { %p9088_p3 = scmp.ne.s32.totalorder %s37_s25, %s9087_s10  ;;  %p9093_p5 = scmp.lt.s32.totalorder %s9087_s10, %s9087_s10 }
   0xd   :  { %p9094_p6 = por %p9093_p5, %p9092_p4 }
   0xf   :  { %p9095_p7 = pnand %p9094_p6, %p9088_p3 }
  0x11   :  { %9098 = shalt.err (!%p9095_p7)
}
  0x12   :  { %s9196_s11 = smov 192   ;;  %s9197_s12 = smov 12  }
  0x13   :  { %42 = dma.hbm_to_vmem [thread:$0]  %s10708_s2, 6144, %s37_s25, [#allocation8], %s9196_s11, %s9196_s11, %s9197_s12  }
  0x14   :  { %s9198_s15 = smov [#allocation4]   ;;  %s9099_s19 = scalar_lea.hbm %s10707_s1, 256 }
  0x15   :  { %s24_s16 = sshll.u32 %s9198_s15, 4  ;;  %p9100_p8 = scmp.ne.s32.totalorder %s10707_s1, %s9099_s19  ;;  %s25_s16 = int_to_ptr.vmem [resolvable:$true] %s24_s16 }
  0x16   :  { %p9103_p9 = scmp.lt.u32.totalorder %s9099_s19, %s10707_s1 }
  0x18   :  { %p9105_p10 = pnand %p9103_p9, %p9100_p8 }
  0x1a   :  { %9108 = shalt.err (!%p9105_p10)
}
  0x1b   :  { %s9109_s24 = scalar_lea.vmem %s25_s16, 256  ;;  %p9114_p12 = scmp.lt.s32.totalorder %s25_s16, %s25_s16 }
  0x1c   :  { %p9110_p11 = scmp.ne.s32.totalorder %s25_s16, %s9109_s24  ;;  %p9115_p13 = scmp.lt.s32.totalorder %s9109_s24, %s9109_s24 }
  0x1e   :  { %p9116_p0 = por %p9115_p13, %p9114_p12 }
  0x20   :  { %p9117_p1 = pnand %p9116_p0, %p9110_p11 }
  0x22   :  { %9120 = shalt.err (!%p9117_p1)
}
  0x23   :  { %s9199_s2 = smov 128   ;;  %s9200_s25 = smov 8  }
  0x24   :  { %30 = dma.hbm_to_vmem [thread:$0]  %s10707_s1, 256, %s25_s16, [#allocation5], %s9199_s2, %s9199_s2, %s9200_s25  }
  0x25   :  { %s9201_s28 = smov [#allocation9]   ;;  %s9121_s9 = scalar_lea.hbm %s10709_s3, 6144 }
  0x26   :  { %s48_s29 = sshll.u32 %s9201_s28, 4  ;;  %p9122_p2 = scmp.ne.s32.totalorder %s10709_s3, %s9121_s9  ;;  %s49_s29 = int_to_ptr.vmem [resolvable:$true] %s48_s29 }
  0x27   :  { %p9125_p3 = scmp.lt.u32.totalorder %s9121_s9, %s10709_s3 }
  0x29   :  { %p9127_p4 = pnand %p9125_p3, %p9122_p2 }
  0x2b   :  { %9130 = shalt.err (!%p9127_p4)
}
  0x2c   :  { %s9131_s17 = scalar_lea.vmem %s49_s29, 6144  ;;  %p9136_p6 = scmp.lt.s32.totalorder %s49_s29, %s49_s29 }
  0x2d   :  { %p9132_p5 = scmp.ne.s32.totalorder %s49_s29, %s9131_s17  ;;  %p9137_p7 = scmp.lt.s32.totalorder %s9131_s17, %s9131_s17 }
  0x2f   :  { %p9138_p8 = por %p9137_p7, %p9136_p6 }
  0x31   :  { %p9139_p9 = pnand %p9138_p8, %p9132_p5 }
  0x33   :  { %9142 = shalt.err (!%p9139_p9)
}
  0x34   :  { %54 = dma.hbm_to_vmem [thread:$0]  %s10709_s3, 6144, %s49_s29, [#allocation8], %s9196_s11, %s9196_s11, %s9197_s12  }
  0x35   :  { %9187 = dma.done.wait [#allocation5], 256  }
  0x36   :  { %9188 = vsyncadd [#allocation5], 4294967040 }
  0x37   :  { %9189 = dma.done.wait [#allocation8], 12288  }
  0x38   :  { %9190 = vsyncadd [#allocation8], 4294955008  ;;  %v10714_v0 = vmov 0   ;;  %v8400_v1 = vld [vmem:[#allocation7 + $0x4] ss:$12 sps:$4 sm:$0xff]   ;;  %v8435_v31 = vld [vmem:[%s10706_s0 + $0x8] sm:$0xff]  }
  0x39   :  { %310 = vmatprep.mubr.bf16.mxu0 %v10714_v0  ;;  %v8402_v2 = vld [vmem:[#allocation7] ss:$12 sps:$4 sm:$0xff]   ;;  %278 = vmatprep.subr.bf16.mxu0 %v8400_v1  ;;  %v8403_v3 = vld [vmem:[#allocation7 + $0x1c] ss:$12 sps:$4 sm:$0xff]   ;;  %v8405_v4 = vld [vmem:[#allocation7 + $0x18] ss:$12 sps:$4 sm:$0xff]  }
  0x3a   :  { %279 = vmatpush1.bf16.msra.mxu0 %v8402_v2  ;;  %v8406_v5 = vld [vmem:[#allocation7 + $0x34] ss:$12 sps:$4 sm:$0xff]   ;;  %v8408_v6 = vld [vmem:[#allocation7 + $0x30] ss:$12 sps:$4 sm:$0xff]   ;;  %v8409_v7 = vld [vmem:[#allocation7 + $0x4c] ss:$12 sps:$4 sm:$0xff]   ;;  %v111_v2 = vlaneseq }
  0x3b   :  { %280 = vmatprep.subr.bf16.mxu0 %v8403_v3  ;;  %v8420_v8 = vld [vmem:[#allocation7 + $0x8] ss:$12 sps:$4 sm:$0xff]   ;;  %v8412_v10 = vld [vmem:[#allocation7 + $0x64] ss:$12 sps:$4 sm:$0xff]   ;;  %v8424_v11 = vld [vmem:[#allocation7 + $0x20] ss:$12 sps:$4 sm:$0xff]  }
  0x3c   :  { %v8411_v9 = vld [vmem:[#allocation7 + $0x48] ss:$12 sps:$4 sm:$0xff]   ;;  %7836 = vmatprep.subr.bf16.mxu1 %v8420_v8  ;;  %v8427_v13 = vld [vmem:[#allocation7 + $0x38] ss:$12 sps:$4 sm:$0xff]   ;;  %v8414_v14 = vld [vmem:[#allocation7 + $0x60] ss:$12 sps:$4 sm:$0xff]  }
  0x3d   :  { %7837 = vmatpush3.bf16.msra.mxu1 %v8420_v8  ;;  %v8426_v12 = vld [vmem:[%s10706_s0] sm:$0xff]   ;;  %v8415_v15 = vld [vmem:[#allocation7 + $0x7c] ss:$12 sps:$4 sm:$0xff]   ;;  %v8417_v17 = vld [vmem:[#allocation7 + $0x78] ss:$12 sps:$4 sm:$0xff]   ;;  %v10723_v36 = vmov 0.0  }
  0x3e   :  { %281 = vmatpush1.bf16.msra.mxu0 %v8405_v4  ;;  %7838 = vmatprep.subr.bf16.mxu1 %v8424_v11  ;;  %v8431_v16 = vld [vmem:[#allocation7 + $0x50] ss:$12 sps:$4 sm:$0xff]   ;;  %v8418_v18 = vld [vmem:[#allocation7 + $0x94] ss:$12 sps:$4 sm:$0xff]   ;;  %v8422_v21 = vld [vmem:[#allocation7 + $0xac] ss:$12 sps:$4 sm:$0xff]  }
  0x3f   :  { %282 = vmatprep.subr.bf16.mxu0 %v8406_v5  ;;  %7852 = vmatprep.mubr.bf16.mxu1 %v8426_v12  ;;  %v8436_v19 = vld [vmem:[#allocation7 + $0x68] ss:$12 sps:$4 sm:$0xff]   ;;  %v8421_v20 = vld [vmem:[#allocation7 + $0x90] ss:$12 sps:$4 sm:$0xff]   ;;  %v8440_v22 = vld [vmem:[#allocation7 + $0x80] ss:$12 sps:$4 sm:$0xff]  }
  0x40   :  { %v8425_v23 = vld [vmem:[#allocation7 + $0xa8] ss:$12 sps:$4 sm:$0xff]   ;;  %v9296_v24 = vld [vmem:[#allocation9 + $0x4] ss:$12 sps:$4 sm:$0xff]   ;;  %v9298_v26 = vld [vmem:[#allocation9] ss:$12 sps:$4 sm:$0xff]  }
  0x41   :  { %7839 = vmatpush3.bf16.msra.mxu1 %v8424_v11  ;;  %v8445_v25 = vld [vmem:[#allocation7 + $0x98] ss:$12 sps:$4 sm:$0xff]   ;;  %v9301_v27 = vld [vmem:[#allocation9 + $0x1c] ss:$12 sps:$4 sm:$0xff]   ;;  %v9308_v30 = vld [vmem:[#allocation9 + $0x34] ss:$12 sps:$4 sm:$0xff]  }
  0x42   :  { %283 = vmatpush1.bf16.msra.mxu0 %v8408_v6  ;;  %7840 = vmatprep.subr.bf16.mxu1 %v8427_v13  ;;  %v8449_v28 = vld [vmem:[#allocation7 + $0xb0] ss:$12 sps:$4 sm:$0xff]   ;;  %v9304_v29 = vld [vmem:[#allocation9 + $0x18] ss:$12 sps:$4 sm:$0xff]   ;;  %v9319_v34 = vld [vmem:[#allocation9 + $0x48] ss:$12 sps:$4 sm:$0xff]  }
  0x43   :  { %284 = vmatprep.subr.bf16.mxu0 %v8409_v7  ;;  %v9314_v32 = vld [vmem:[#allocation9 + $0x30] ss:$12 sps:$4 sm:$0xff]   ;;  %v9317_v33 = vld [vmem:[#allocation9 + $0x4c] ss:$12 sps:$4 sm:$0xff]   ;;  %v8444_v35 = vld [vmem:[%s10706_s0 + $0x10] sm:$0xff]   ;;  %vm9204_vm0 = vmmov 0  }
  0x44   :  { %v8457_v37 = vld [vmem:[#allocation9 + $0x8] ss:$12 sps:$4 sm:$0xff]   ;;  %v9325_v38 = vld [vmem:[#allocation9 + $0x64] ss:$12 sps:$4 sm:$0xff]   ;;  %v8461_v39 = vld [vmem:[#allocation9 + $0x20] ss:$12 sps:$4 sm:$0xff]  }
  0x45   :  { %7841 = vmatpush3.bf16.msra.mxu1 %v8427_v13  ;;  %v8446_v40 = vld [vmem:[#allocation9 + $0x60] ss:$12 sps:$4 sm:$0xff]   ;;  %v8452_v41 = vld [vmem:[#allocation9 + $0x7c] ss:$12 sps:$4 sm:$0xff]   ;;  %v8462_v42 = vld [vmem:[#allocation9 + $0x38] ss:$12 sps:$4 sm:$0xff]  }
  0x46   :  { %285 = vmatpush1.bf16.msra.mxu0 %v8411_v9  ;;  %7842 = vmatprep.subr.bf16.mxu1 %v8431_v16  ;;  %v8453_v43 = vld [vmem:[%s10706_s0 + $0x18] sm:$0xff]   ;;  %v8450_v44 = vld [vmem:[#allocation9 + $0x78] ss:$12 sps:$4 sm:$0xff]   ;;  %v8456_v45 = vld [vmem:[#allocation9 + $0x94] ss:$12 sps:$4 sm:$0xff]   ;;  %v112_v3 = vshrl.u32 %v111_v2, 7 }
  0x47   :  { %286 = vmatprep.subr.bf16.mxu0 %v8412_v10  ;;  %v8463_v46 = vld [vmem:[#allocation9 + $0x50] ss:$12 sps:$4 sm:$0xff]   ;;  %v8460_v48 = vld [vmem:[#allocation9 + $0xac] ss:$12 sps:$4 sm:$0xff]   ;;  %v8464_v49 = vld [vmem:[#allocation9 + $0x68] ss:$12 sps:$4 sm:$0xff]  }
  0x48   :  { %v8454_v47 = vld [vmem:[#allocation9 + $0x90] ss:$12 sps:$4 sm:$0xff]   ;;  %v8458_v50 = vld [vmem:[#allocation9 + $0xa8] ss:$12 sps:$4 sm:$0xff]   ;;  %v8465_v52 = vld [vmem:[#allocation9 + $0x80] ss:$12 sps:$4 sm:$0xff]  }
  0x49   :  { %7843 = vmatpush3.bf16.msra.mxu1 %v8431_v16  ;;  %v440_v51 = vld [vmem:[#allocation4] sm:$0xff]  ;;  %v8466_v54 = vld [vmem:[#allocation9 + $0x98] ss:$12 sps:$4 sm:$0xff]   ;;  %v8469_v57 = vld [vmem:[#allocation9 + $0x20] ss:$12 sps:$4 sm:$0xff]   ;;  %v9370_v4 = vsub.s32 0, %v112_v3 }
  0x4a   :  { %287 = vmatpush1.bf16.msra.mxu0 %v8414_v14  ;;  %7844 = vmatprep.subr.bf16.mxu1 %v8436_v19  ;;  %v446_v53 = vpack.c.bf16 %v440_v51, %v440_v51  ;;  %v8467_v55 = vld [vmem:[#allocation9 + $0xb0] ss:$12 sps:$4 sm:$0xff]   ;;  %v8468_v56 = vld [vmem:[#allocation9 + $0x8] ss:$12 sps:$4 sm:$0xff]   ;;  %v8470_v58 = vld [vmem:[#allocation9 + $0x38] ss:$12 sps:$4 sm:$0xff]  }
  0x4b   :  { %288 = vmatprep.subr.bf16.mxu0 %v8415_v15  ;;  %v8471_v59 = vld [vmem:[#allocation9 + $0x50] ss:$12 sps:$4 sm:$0xff]   ;;  %v8472_v60 = vld [vmem:[#allocation9 + $0x68] ss:$12 sps:$4 sm:$0xff]   ;;  %v8473_v61 = vld [vmem:[#allocation9 + $0x80] ss:$12 sps:$4 sm:$0xff]  }
  0x4c   :  { %v9363_v62 = vld [vmem:[#allocation7 + $0xc4] ss:$12 sps:$4 sm:$0xff]   ;;  %v9375_v6 = vsub.s32 1, %v112_v3  ;;  %v9381_v14 = vsub.s32 2, %v112_v3  ;;  %s9206_s9 = smov [#allocation11]  }
  0x4d   :  { %7845 = vmatpush3.bf16.msra.mxu1 %v8436_v19  ;;  %v8474_v63 = vld [vmem:[#allocation9 + $0x98] ss:$12 sps:$4 sm:$0xff]   ;;  %v8475_v1 = vld [vmem:[#allocation9 + $0xb0] ss:$12 sps:$4 sm:$0xff]   ;;  %s6923_s10 = sshll.u32 %s9206_s9, 4  ;;  %s10669_s10 = int_to_ptr.vmem [resolvable:$true] %s6923_s10 }
  0x4e   :  { %289 = vmatpush1.bf16.msra.mxu0 %v8417_v17  ;;  %7846 = vmatprep.subr.bf16.mxu1 %v8440_v22  ;;  %v109_v5 = vld [vmem:[%s10710_s4] sm:$0x7] }
  0x4f   :  { %290 = vmatprep.subr.bf16.mxu0 %v8418_v18  ;;  %v114_v8 = vrot.slane %v109_v5, %v9370_v4  ;;  %v118_v10 = vrot.slane %v109_v5, %v9375_v6  ;;  %v9386_v16 = vrot.slane %v109_v5, %v9381_v14 }
  0x51   :  { %7847 = vmatpush3.bf16.msra.mxu1 %v8440_v22 }
  0x52   :  { %291 = vmatpush1.bf16.msra.mxu0 %v8421_v20  ;;  %7848 = vmatprep.subr.bf16.mxu1 %v8445_v25 }
  0x53   :  { %292 = vmatprep.subr.bf16.mxu0 %v8422_v21 }
  0x55   :  { %7849 = vmatpush3.bf16.msra.mxu1 %v8445_v25 }
  0x56   :  { %293 = vmatpush1.bf16.msra.mxu0 %v8425_v23  ;;  %7850 = vmatprep.subr.bf16.mxu1 %v8449_v28 }
  0x57   :  { %607 = vmatprep.subr.bf16.mxu0 %v9296_v24 }
  0x59   :  { %311 = vmatmul.mubr.bf16.vlgmr.msra.gmra.mrb[0].mxu0 %v8426_v12  ;;  %7851 = vmatpush3.bf16.msra.mxu1 %v8449_v28 }
  0x5a   :  { %608 = vmatpush1.bf16.msra.mxu0 %v9298_v26  ;;  %320 = vmatprep.mubr.bf16.mxu0 %v10714_v0 }
  0x5b   :  { %609 = vmatprep.subr.bf16.mxu0 %v9301_v27  ;;  %7860 = vmatprep.subr.bf16.mxu1 %v10723_v36 }
  0x5c   :  { %7853 = vmatmul.mubr.bf16.vlgmr.msra.gmra.mrb[0].mxu1 %v8435_v31 }
  0x5d   :  { %7861 = vmatpush3.bf16.msra.mxu1 %v8457_v37  ;;  %7856 = vmatprep.mubr.bf16.mxu1 %v8444_v35 }
  0x5e   :  { %610 = vmatpush1.bf16.msra.mxu0 %v9304_v29  ;;  %7862 = vmatprep.subr.bf16.mxu1 %v10723_v36 }
  0x5f   :  { %611 = vmatprep.subr.bf16.mxu0 %v9308_v30 }
  0x61   :  { %321 = vmatmul.mubr.bf16.gmra.mrb[4].mxu0 %v8435_v31  ;;  %7863 = vmatpush3.bf16.msra.mxu1 %v8461_v39 }
  0x62   :  { %612 = vmatpush1.bf16.msra.mxu0 %v9314_v32  ;;  %330 = vmatprep.mubr.bf16.mxu0 %v10714_v0 }
  0x63   :  { %613 = vmatprep.subr.bf16.mxu0 %v9317_v33  ;;  %7864 = vmatprep.subr.bf16.mxu1 %v10723_v36 }
  0x64   :  { %7857 = vmatmul.mubr.bf16.gmra.mrb[4].mxu1 %v8453_v43 }
  0x65   :  { %7865 = vmatpush3.bf16.msra.mxu1 %v8462_v42  ;;  %7876 = vmatprep.mubr.msk.bf16.mxu1 %vm9204_vm0, %v10723_v36 }
  0x66   :  { %614 = vmatpush1.bf16.msra.mxu0 %v9319_v34  ;;  %7866 = vmatprep.subr.bf16.mxu1 %v10723_v36 }
  0x67   :  { %615 = vmatprep.subr.bf16.mxu0 %v9325_v38 }
  0x69   :  { %331 = vmatmul.mubr.bf16.gmra.mrb[8].mxu0 %v8444_v35  ;;  %7867 = vmatpush3.bf16.msra.mxu1 %v8463_v46 }
  0x6a   :  { %616 = vmatpush1.bf16.msra.mxu0 %v8446_v40  ;;  %340 = vmatprep.mubr.bf16.mxu0 %v10714_v0 }
  0x6b   :  { %617 = vmatprep.subr.bf16.mxu0 %v8452_v41  ;;  %7868 = vmatprep.subr.bf16.mxu1 %v10723_v36 }
  0x6d   :  { %7869 = vmatpush3.bf16.msra.mxu1 %v8464_v49 }
  0x6e   :  { %618 = vmatpush1.bf16.msra.mxu0 %v8450_v44  ;;  %7870 = vmatprep.subr.bf16.mxu1 %v10723_v36 }
  0x6f   :  { %619 = vmatprep.subr.bf16.mxu0 %v8456_v45 }
  0x71   :  { %341 = vmatmul.mubr.bf16.gmra.mrb[12].mxu0 %v8453_v43  ;;  %7871 = vmatpush3.bf16.msra.mxu1 %v8465_v52 }
  0x72   :  { %620 = vmatpush1.bf16.msra.mxu0 %v8454_v47  ;;  %639 = vmatprep.mubr.bf16.mxu0 %v10714_v0 }
  0x73   :  { %621 = vmatprep.subr.bf16.mxu0 %v8460_v48  ;;  %7872 = vmatprep.subr.bf16.mxu1 %v10723_v36 }
  0x75   :  { %7873 = vmatpush3.bf16.msra.mxu1 %v8466_v54 }
  0x76   :  { %622 = vmatpush1.bf16.msra.mxu0 %v8458_v50  ;;  %7874 = vmatprep.subr.bf16.mxu1 %v10723_v36 }
  0x77   :  { %882 = vmatprep.subr.bf16.mxu0 %v9296_v24 }
  0x79   :  { %640 = vmatmul.mubr.bf16.vlgmr.msra.gmra.mrb[16].mxu0 %v446_v53  ;;  %7875 = vmatpush3.bf16.msra.mxu1 %v8467_v55 }
  0x7a   :  { %883 = vmatpush1.bf16.msra.mxu0 %v9298_v26  ;;  %914 = vmatprep.mubr.bf16.mxu0 %v10714_v0 }
  0x7b   :  { %884 = vmatprep.subr.bf16.mxu0 %v9301_v27  ;;  %7880 = vmatprep.subr.bf16.mxu1 %v10723_v36 }
  0x7c   :  { %7877 = vmatmul.mubr.bf16.vlgmr.msra.gmra.mrb[8].mxu1 %v446_v53 }
  0x7d   :  { %7896 = vmatprep.mubr.msk.bf16.mxu1 %vm9204_vm0, %v10723_v36  ;;  %7881 = vmatpush3.bf16.msra.mxu1 %v8468_v56 }
  0x7e   :  { %885 = vmatpush1.bf16.msra.mxu0 %v9304_v29  ;;  %7882 = vmatprep.subr.bf16.mxu1 %v10723_v36 }
  0x7f   :  { %886 = vmatprep.subr.bf16.mxu0 %v9308_v30 }
  0x81   :  { %7883 = vmatpush3.bf16.msra.mxu1 %v8469_v57 }
  0x82   :  { %887 = vmatpush1.bf16.msra.mxu0 %v9314_v32  ;;  %7884 = vmatprep.subr.bf16.mxu1 %v10723_v36 }
  0x83   :  { %888 = vmatprep.subr.bf16.mxu0 %v9317_v33 }
  0x85   :  { %7885 = vmatpush3.bf16.msra.mxu1 %v8470_v58 }
  0x86   :  { %889 = vmatpush1.bf16.msra.mxu0 %v9319_v34  ;;  %7886 = vmatprep.subr.bf16.mxu1 %v10723_v36 }
  0x87   :  { %890 = vmatprep.subr.bf16.mxu0 %v9325_v38 }
  0x89   :  { %7887 = vmatpush3.bf16.msra.mxu1 %v8471_v59 }
  0x8a   :  { %891 = vmatpush1.bf16.msra.mxu0 %v8446_v40  ;;  %7888 = vmatprep.subr.bf16.mxu1 %v10723_v36 }
  0x8b   :  { %892 = vmatprep.subr.bf16.mxu0 %v8452_v41 }
  0x8d   :  { %7889 = vmatpush3.bf16.msra.mxu1 %v8472_v60 }
  0x8e   :  { %893 = vmatpush1.bf16.msra.mxu0 %v8450_v44  ;;  %7890 = vmatprep.subr.bf16.mxu1 %v10723_v36 }
  0x8f   :  { %894 = vmatprep.subr.bf16.mxu0 %v8456_v45 }
  0x91   :  { %7891 = vmatpush3.bf16.msra.mxu1 %v8473_v61 }
  0x92   :  { %895 = vmatpush1.bf16.msra.mxu0 %v8454_v47  ;;  %7892 = vmatprep.subr.bf16.mxu1 %v10723_v36 }
  0x93   :  { %896 = vmatprep.subr.bf16.mxu0 %v8460_v48 }
  0x95   :  { %7893 = vmatpush3.bf16.msra.mxu1 %v8474_v63 }
  0x96   :  { %897 = vmatpush1.bf16.msra.mxu0 %v8458_v50  ;;  %7894 = vmatprep.subr.bf16.mxu1 %v10723_v36 }
  0x97   :  { %1174 = vmatprep.subr.bf16.mxu0 %v9363_v62 }
  0x99   :  { %7895 = vmatpush3.bf16.msra.mxu1 %v8475_v1 }
  0x9a   :  { %7900 = vmatprep.subr.bf16.mxu1 %v10723_v36 }
 0x12c   :  { %v312_v7 = vpop.f32.mrb[0].mxu0 }
 0x12d   :  { %v314_v9 = vpop.f32.mrb[1].mxu0  ;;  %v313_v57 = vadd.f32 %v312_v7, %v114_v8  ;;  %v9436_v7 = vld [vmem:[%s10711_s5] ss:$0 sm:$0xff] }
 0x12e   :  { %v316_v11 = vpop.f32.mrb[2].mxu0  ;;  %v315_v58 = vadd.f32 %v314_v9, %v118_v10 }
 0x12f   :  { %v9379_v12 = vadd.f32 %v316_v11, %v114_v8  ;;  %v318_v13 = vpop.f32.mrb[3].mxu0  ;;  %v7854_v22 = vpop.f32.mrb[0].mxu1 }
 0x130   :  { %v9383_v15 = vadd.f32 %v318_v13, %v118_v10  ;;  %v9395_v25 = vadd.f32 %v7854_v22, %v9386_v16  ;;  %v385_v26 = vpop.f32.mrb[1].mxu1 }
 0x131   :  { %v7855_v28 = vpop.f32.mrb[2].mxu1 }
 0x132   :  { %10750 = vst [vmem:[#allocation20_spill] sm:$0xff] %v9395_v25  ;;  %v9400_v29 = vadd.f32 %v7855_v28, %v9386_v16  ;;  %v388_v30 = vpop.f32.mrb[3].mxu1  ;;  %v386_v28 = vadd.f32 %v385_v26, %v9386_v16  ;;  %v8483_v26 = vld [vmem:[#allocation7 + $0xe0] ss:$12 sps:$4 sm:$0xff]  }
 0x133   :  { %v9403_v31 = vadd.f32 %v388_v30, %v9386_v16 }
 0x134   :  { %v322_v17 = vpop.f32.mrb[4].mxu0  ;;  %10752 = vst [vmem:[#allocation22_spill] sm:$0xff] %v9400_v29  ;;  %v8567_v29 = vld [vmem:[#allocation9 + $0x98] ss:$12 sps:$4 sm:$0xff]  }
 0x135   :  { %v9388_v18 = vadd.f32 %v322_v17, %v114_v8  ;;  %v324_v19 = vpop.f32.mrb[5].mxu0 }
 0x136   :  { %v9390_v20 = vadd.f32 %v324_v19, %v118_v10  ;;  %v326_v21 = vpop.f32.mrb[6].mxu0 }
 0x137   :  { %10747 = vst [vmem:[#allocation17_spill] sm:$0xff] %v9388_v18  ;;  %v9392_v23 = vadd.f32 %v326_v21, %v114_v8  ;;  %v328_v24 = vpop.f32.mrb[7].mxu0  ;;  %v7858_v38 = vpop.f32.mrb[4].mxu1 }
 0x138   :  { %10748 = vst [vmem:[#allocation18_spill] sm:$0xff] %v9390_v20  ;;  %v9397_v27 = vadd.f32 %v328_v24, %v118_v10  ;;  %v9412_v41 = vadd.f32 %v7858_v38, %v9386_v16  ;;  %v401_v42 = vpop.f32.mrb[5].mxu1 }
 0x139   :  { %10749 = vst [vmem:[#allocation19_spill] sm:$0xff] %v9392_v23  ;;  %v9417_v44 = vadd.f32 %v401_v42, %v9386_v16  ;;  %v7859_v45 = vpop.f32.mrb[6].mxu1  ;;  %v9076_v42 = vld [vmem:[#allocation4] sm:$0xff] }
 0x13a   :  { %10751 = vst [vmem:[#allocation21_spill] sm:$0xff] %v9397_v27  ;;  %10756 = vst [vmem:[#allocation26_spill] sm:$0xff] %v9412_v41  ;;  %v9420_v46 = vadd.f32 %v7859_v45, %v9386_v16  ;;  %v404_v47 = vpop.f32.mrb[7].mxu1  ;;  %v9582_v41 = vld [vmem:[#allocation9 + $0x30] ss:$12 sps:$4 sm:$0xff]  }
 0x13b   :  { %10758 = vst [vmem:[#allocation28_spill] sm:$0xff] %v9417_v44  ;;  %v9423_v48 = vadd.f32 %v404_v47, %v9386_v16  ;;  %v9449_v16 = vld [vmem:[#allocation7 + $0xd8] ss:$12 sps:$4 sm:$0xff]   ;;  %v9602_v44 = vld [vmem:[#allocation9 + $0x7c] ss:$12 sps:$4 sm:$0xff]  }
 0x13c   :  { %v332_v32 = vpop.f32.mrb[8].mxu0  ;;  %10759 = vst [vmem:[#allocation29_spill] sm:$0xff] %v9420_v46  ;;  %v9568_v46 = vld [vmem:[#allocation9] ss:$12 sps:$4 sm:$0xff]   ;;  %10769 = vst [vmem:[#allocation39_spill] sm:$0xff] %v9602_v44 }
 0x13d   :  { %v9405_v33 = vadd.f32 %v332_v32, %v114_v8  ;;  %v334_v34 = vpop.f32.mrb[9].mxu0  ;;  %10760 = vst [vmem:[#allocation30_spill] sm:$0xff] %v9423_v48  ;;  %v8555_v48 = vld [vmem:[#allocation9 + $0x50] ss:$12 sps:$4 sm:$0xff]   ;;  %v9616_v27 = vld [vmem:[#allocation9 + $0xa8] ss:$12 sps:$4 sm:$0xff]  }
 0x13e   :  { %v9407_v35 = vadd.f32 %v334_v34, %v118_v10  ;;  %v336_v37 = vpop.f32.mrb[10].mxu0  ;;  %10773 = vst [vmem:[#allocation43_spill] sm:$0xff] %v9616_v27  ;;  %v8571_v23 = vld [vmem:[#allocation9 + $0xb0] ss:$12 sps:$4 sm:$0xff]  }
 0x13f   :  { %10753 = vst [vmem:[#allocation23_spill] sm:$0xff] %v9405_v33  ;;  %v9409_v39 = vadd.f32 %v336_v37, %v114_v8  ;;  %v338_v40 = vpop.f32.mrb[11].mxu0  ;;  %v9609_v33 = vld [vmem:[#allocation9 + $0x90] ss:$12 sps:$4 sm:$0xff]  }
 0x140   :  { %10754 = vst [vmem:[#allocation24_spill] sm:$0xff] %v9407_v35  ;;  %v9414_v43 = vadd.f32 %v338_v40, %v118_v10  ;;  %v8563_v35 = vld [vmem:[#allocation9 + $0x80] ss:$12 sps:$4 sm:$0xff]   ;;  %10771 = vst [vmem:[#allocation41_spill] sm:$0xff] %v9609_v33 }
 0x141   :  { %10755 = vst [vmem:[#allocation25_spill] sm:$0xff] %v9409_v39  ;;  %v8559_v39 = vld [vmem:[#allocation9 + $0x68] ss:$12 sps:$4 sm:$0xff]  }
 0x142   :  { %10757 = vst [vmem:[#allocation27_spill] sm:$0xff] %v9414_v43  ;;  %v9596_v43 = vld [vmem:[#allocation9 + $0x60] ss:$12 sps:$4 sm:$0xff]  }
 0x143   :  { %10767 = vst [vmem:[#allocation37_spill] sm:$0xff] %v9596_v43 }
 0x144   :  { %v342_v49 = vpop.f32.mrb[12].mxu0 }
 0x145   :  { %v9425_v50 = vadd.f32 %v342_v49, %v114_v8  ;;  %v344_v51 = vpop.f32.mrb[13].mxu0  ;;  %v9442_v49 = vld [vmem:[#allocation7 + $0xc0] ss:$12 sps:$4 sm:$0xff]  }
 0x146   :  { %v9427_v52 = vadd.f32 %v344_v51, %v118_v10  ;;  %v346_v53 = vpop.f32.mrb[14].mxu0  ;;  %v8479_v51 = vld [vmem:[#allocation7 + $0xc8] ss:$12 sps:$4 sm:$0xff]  }
 0x147   :  { %10761 = vst [vmem:[#allocation31_spill] sm:$0xff] %v9425_v50  ;;  %v9429_v54 = vadd.f32 %v346_v53, %v114_v8  ;;  %v348_v55 = vpop.f32.mrb[15].mxu0  ;;  %v9589_v50 = vld [vmem:[#allocation9 + $0x48] ss:$12 sps:$4 sm:$0xff]  }
 0x148   :  { %10762 = vst [vmem:[#allocation32_spill] sm:$0xff] %v9427_v52  ;;  %v9431_v56 = vadd.f32 %v348_v55, %v118_v10  ;;  %v9446_v55 = vld [vmem:[#allocation7 + $0xdc] ss:$12 sps:$4 sm:$0xff]   ;;  %v8551_v52 = vld [vmem:[#allocation9 + $0x38] ss:$12 sps:$4 sm:$0xff]   ;;  %10765 = vst [vmem:[#allocation35_spill] sm:$0xff] %v9589_v50 }
 0x149   :  { %10763 = vst [vmem:[#allocation33_spill] sm:$0xff] %v9429_v54  ;;  %v9579_v54 = vld [vmem:[#allocation9 + $0x34] ss:$12 sps:$4 sm:$0xff]  }
 0x14a   :  { %10764 = vst [vmem:[#allocation34_spill] sm:$0xff] %v9431_v56  ;;  %v8543_v56 = vld [vmem:[#allocation9 + $0x8] ss:$12 sps:$4 sm:$0xff]  }
 0x14c   :  { %v641_v59 = vpop.f32.mrb[16].mxu0 }
 0x14d   :  { %v688_v60 = vadd.f32 %v641_v59, %v313_v57  ;;  %v643_v61 = vpop.f32.mrb[17].mxu0  ;;  %v9453_v57 = vld [vmem:[#allocation7 + $0xf4] ss:$12 sps:$4 sm:$0xff]   ;;  %v8487_v59 = vld [vmem:[#allocation7 + $0xf8] ss:$12 sps:$4 sm:$0xff]  }
 0x14e   :  { %v695_v63 = vadd.f32 %v643_v61, %v315_v58  ;;  %v645_v1 = vpop.f32.mrb[18].mxu0  ;;  %v9459_v58 = vld [vmem:[#allocation7 + $0xf0] ss:$12 sps:$4 sm:$0xff]   ;;  %v9466_v61 = vld [vmem:[#allocation7 + $0x108] ss:$12 sps:$4 sm:$0xff]  }
 0x14f   :  { %v6992_v2 = vmul.f32 -1.442695, %v688_v60  ;;  %v646_v3 = vpop.f32.mrb[19].mxu0  ;;  %v682_v11 = vpop.f32.mrb[8].mxu1  ;;  %v9463_v60 = vld [vmem:[#allocation7 + $0x10c] ss:$12 sps:$4 sm:$0xff]  }
 0x150   :  { %v6993_v5 = vmul.f32 -1.442695, %v695_v63  ;;  %v7878_v13 = vpop.f32.mrb[9].mxu1  ;;  %v709_v9 = vadd.f32 %v9436_v7, %v682_v11  ;;  %v8491_v63 = vld [vmem:[#allocation7 + $0x110] ss:$12 sps:$4 sm:$0xff]  }
 0x151   :  { %8916 = vpow2.f32 %v6992_v2  ;;  %v685_v17 = vpop.f32.mrb[10].mxu1  ;;  %v9470_v1 = vld [vmem:[#allocation7 + $0x124] ss:$12 sps:$4 sm:$0xff]   ;;  %v9473_v2 = vld [vmem:[#allocation7 + $0x120] ss:$12 sps:$4 sm:$0xff]  }
 0x152   :  { %8918 = vpow2.f32 %v6993_v5  ;;  %v7879_v19 = vpop.f32.mrb[11].mxu1  ;;  %v8495_v3 = vld [vmem:[#allocation7 + $0x128] ss:$12 sps:$4 sm:$0xff]   ;;  %v9480_v11 = vld [vmem:[#allocation7 + $0x138] ss:$12 sps:$4 sm:$0xff]  }
 0x153   :  { %v9477_v5 = vld [vmem:[#allocation7 + $0x13c] ss:$12 sps:$4 sm:$0xff]   ;;  %v8499_v13 = vld [vmem:[#allocation7 + $0x140] ss:$12 sps:$4 sm:$0xff]  }
 0x154   :  { %v9484_v17 = vld [vmem:[#allocation7 + $0x154] ss:$12 sps:$4 sm:$0xff]   ;;  %v9487_v19 = vld [vmem:[#allocation7 + $0x150] ss:$12 sps:$4 sm:$0xff]  }
 0x15b   :  { %v8917_v21 = vpop.eup %8916 }
 0x15c   :  { %v692_v22 = vadd.f32 1.0, %v8917_v21  ;;  %v8919_v24 = vpop.eup %8918  ;;  %v8503_v21 = vld [vmem:[#allocation7 + $0x158] ss:$12 sps:$4 sm:$0xff]  }
 0x15d   :  { %v699_v8 = vadd.f32 1.0, %v8919_v24  ;;  %v9494_v24 = vld [vmem:[#allocation7 + $0x168] ss:$12 sps:$4 sm:$0xff]  }
 0x15e   :  { %8920 = vrcp.f32 %v692_v22  ;;  %v9491_v22 = vld [vmem:[#allocation7 + $0x16c] ss:$12 sps:$4 sm:$0xff]  }
 0x15f   :  { %8922 = vrcp.f32 %v699_v8  ;;  %v8507_v8 = vld [vmem:[#allocation7 + $0x170] ss:$12 sps:$4 sm:$0xff]  }
 0x168   :  { %v8921_v10 = vpop.eup %8920 }
 0x169   :  { %v710_v30 = vmul.f32 %v8921_v10, %v709_v9  ;;  %v8923_v34 = vpop.eup %8922  ;;  %v9498_v9 = vld [vmem:[#allocation9 + $0xc4] ss:$12 sps:$4 sm:$0xff]   ;;  %v9501_v10 = vld [vmem:[#allocation9 + $0xc0] ss:$12 sps:$4 sm:$0xff]  }
 0x16a   :  { %v713_v37 = vsub.f32 1.0, %v8923_v34  ;;  %v715_v45 = vmul.f32 %v9076_v42, %v8923_v34  ;;  %v8533_v34 = vld [vmem:[#allocation9 + $0xe0] ss:$12 sps:$4 sm:$0xff]  }
 0x16b   :  { %v711_v32 = vadd.f32 %v710_v30, %v386_v28  ;;  %v8529_v28 = vld [vmem:[#allocation9 + $0xc8] ss:$12 sps:$4 sm:$0xff]   ;;  %v9521_v42 = vld [vmem:[#allocation9 + $0x10c] ss:$12 sps:$4 sm:$0xff]  }
 0x16c   :  { %v9504_v30 = vld [vmem:[#allocation9 + $0xdc] ss:$12 sps:$4 sm:$0xff]  }
 0x16d   :  { %8924 = vtanh.f32 %v711_v32  ;;  %v9508_v32 = vld [vmem:[#allocation9 + $0xd8] ss:$12 sps:$4 sm:$0xff]  }
 0x177   :  { %v8925_v38 = vpop.eup %8924 }
 0x178   :  { %v714_v40 = vmul.f32 %v8925_v38, %v713_v37  ;;  %v9511_v37 = vld [vmem:[#allocation9 + $0xf4] ss:$12 sps:$4 sm:$0xff]   ;;  %v9518_v38 = vld [vmem:[#allocation9 + $0xf0] ss:$12 sps:$4 sm:$0xff]  }
 0x17a   :  { %v9440_v47 = vadd.f32 %v715_v45, %v714_v40  ;;  %v8534_v40 = vld [vmem:[#allocation9 + $0xf8] ss:$12 sps:$4 sm:$0xff]   ;;  %v9525_v45 = vld [vmem:[#allocation9 + $0x108] ss:$12 sps:$4 sm:$0xff]  }
 0x17c   :  { %v721_v53 = vpack.c.bf16 %v9440_v47, %v9440_v47 }
 0x17e   :  { %915 = vmatmul.mubr.bf16.vlgmr.msra.gmra.mrb[20].mxu0 %v721_v53  ;;  %7897 = vmatmul.mubr.bf16.vlgmr.msra.gmra.mrb[12].mxu1 %v721_v53 }
 0x17f   :  { %1175 = vmatpush1.bf16.msra.mxu0 %v9442_v49  ;;  %7901 = vmatpush3.bf16.msra.mxu1 %v8479_v51  ;;  %v8535_v51 = vld [vmem:[#allocation9 + $0x110] ss:$12 sps:$4 sm:$0xff]  }
 0x180   :  { %1176 = vmatprep.subr.bf16.mxu0 %v9446_v55  ;;  %7902 = vmatprep.subr.bf16.mxu1 %v10723_v36 }
 0x181   :  { %1206 = vmatprep.mubr.bf16.mxu0 %v10714_v0  ;;  %7916 = vmatprep.mubr.msk.bf16.mxu1 %vm9204_vm0, %v10723_v36 }
 0x183   :  { %1177 = vmatpush1.bf16.msra.mxu0 %v9449_v16  ;;  %7903 = vmatpush3.bf16.msra.mxu1 %v8483_v26  ;;  %v9532_v26 = vld [vmem:[#allocation9 + $0x120] ss:$12 sps:$4 sm:$0xff]  }
 0x184   :  { %1178 = vmatprep.subr.bf16.mxu0 %v9453_v57  ;;  %7904 = vmatprep.subr.bf16.mxu1 %v10723_v36 }
 0x187   :  { %1179 = vmatpush1.bf16.msra.mxu0 %v9459_v58  ;;  %7905 = vmatpush3.bf16.msra.mxu1 %v8487_v59  ;;  %v8536_v59 = vld [vmem:[#allocation9 + $0x128] ss:$12 sps:$4 sm:$0xff]  }
 0x188   :  { %1180 = vmatprep.subr.bf16.mxu0 %v9463_v60  ;;  %7906 = vmatprep.subr.bf16.mxu1 %v10723_v36 }
 0x18b   :  { %1181 = vmatpush1.bf16.msra.mxu0 %v9466_v61  ;;  %7907 = vmatpush3.bf16.msra.mxu1 %v8491_v63  ;;  %v9535_v63 = vld [vmem:[#allocation9 + $0x13c] ss:$12 sps:$4 sm:$0xff]  }
 0x18c   :  { %1182 = vmatprep.subr.bf16.mxu0 %v9470_v1  ;;  %7908 = vmatprep.subr.bf16.mxu1 %v10723_v36 }
 0x18f   :  { %1183 = vmatpush1.bf16.msra.mxu0 %v9473_v2  ;;  %7909 = vmatpush3.bf16.msra.mxu1 %v8495_v3  ;;  %v9539_v3 = vld [vmem:[#allocation9 + $0x138] ss:$12 sps:$4 sm:$0xff]  }
 0x190   :  { %1184 = vmatprep.subr.bf16.mxu0 %v9477_v5  ;;  %7910 = vmatprep.subr.bf16.mxu1 %v10723_v36 }
 0x193   :  { %1185 = vmatpush1.bf16.msra.mxu0 %v9480_v11  ;;  %7911 = vmatpush3.bf16.msra.mxu1 %v8499_v13  ;;  %v8537_v13 = vld [vmem:[#allocation9 + $0x140] ss:$12 sps:$4 sm:$0xff]  }
 0x194   :  { %1186 = vmatprep.subr.bf16.mxu0 %v9484_v17  ;;  %7912 = vmatprep.subr.bf16.mxu1 %v10723_v36 }
 0x197   :  { %1187 = vmatpush1.bf16.msra.mxu0 %v9487_v19  ;;  %7913 = vmatpush3.bf16.msra.mxu1 %v8503_v21  ;;  %v9542_v21 = vld [vmem:[#allocation9 + $0x154] ss:$12 sps:$4 sm:$0xff]  }
 0x198   :  { %1188 = vmatprep.subr.bf16.mxu0 %v9491_v22  ;;  %7914 = vmatprep.subr.bf16.mxu1 %v10723_v36 }
 0x19b   :  { %1189 = vmatpush1.bf16.msra.mxu0 %v9494_v24  ;;  %7915 = vmatpush3.bf16.msra.mxu1 %v8507_v8  ;;  %v9546_v8 = vld [vmem:[#allocation9 + $0x150] ss:$12 sps:$4 sm:$0xff]  }
 0x19c   :  { %1417 = vmatprep.subr.bf16.mxu0 %v9498_v9  ;;  %7920 = vmatprep.subr.bf16.mxu1 %v10723_v36 }
 0x19e   :  { %1207 = vmatmul.mubr.bf16.vlgmr.msra.gmra.mrb[24].mxu0 %v721_v53  ;;  %7917 = vmatmul.mubr.bf16.vlgmr.msra.gmra.mrb[16].mxu1 %v721_v53  ;;  %v9528_v53 = vld [vmem:[#allocation9 + $0x124] ss:$12 sps:$4 sm:$0xff]  }
 0x19f   :  { %1418 = vmatpush1.bf16.msra.mxu0 %v9501_v10  ;;  %7921 = vmatpush3.bf16.msra.mxu1 %v8529_v28  ;;  %v8538_v28 = vld [vmem:[#allocation9 + $0x158] ss:$12 sps:$4 sm:$0xff]  }
 0x1a0   :  { %1419 = vmatprep.subr.bf16.mxu0 %v9504_v30  ;;  %7922 = vmatprep.subr.bf16.mxu1 %v10723_v36 }
 0x1a1   :  { %1449 = vmatprep.mubr.bf16.mxu0 %v10714_v0  ;;  %7936 = vmatprep.mubr.msk.bf16.mxu1 %vm9204_vm0, %v10723_v36 }
 0x1a3   :  { %1420 = vmatpush1.bf16.msra.mxu0 %v9508_v32  ;;  %7923 = vmatpush3.bf16.msra.mxu1 %v8533_v34  ;;  %v9549_v34 = vld [vmem:[#allocation9 + $0x16c] ss:$12 sps:$4 sm:$0xff]  }
 0x1a4   :  { %1421 = vmatprep.subr.bf16.mxu0 %v9511_v37  ;;  %7924 = vmatprep.subr.bf16.mxu1 %v10723_v36 }
 0x1a7   :  { %1422 = vmatpush1.bf16.msra.mxu0 %v9518_v38  ;;  %7925 = vmatpush3.bf16.msra.mxu1 %v8534_v40  ;;  %v9553_v40 = vld [vmem:[#allocation9 + $0x168] ss:$12 sps:$4 sm:$0xff]  }
 0x1a8   :  { %1423 = vmatprep.subr.bf16.mxu0 %v9521_v42  ;;  %7926 = vmatprep.subr.bf16.mxu1 %v10723_v36 }
 0x1ab   :  { %1424 = vmatpush1.bf16.msra.mxu0 %v9525_v45  ;;  %7927 = vmatpush3.bf16.msra.mxu1 %v8535_v51  ;;  %v9555_v51 = vld [vmem:[#allocation4 + $0x8] sm:$0xff] }
 0x1ac   :  { %1425 = vmatprep.subr.bf16.mxu0 %v9528_v53  ;;  %7928 = vmatprep.subr.bf16.mxu1 %v10723_v36 }
 0x1af   :  { %1426 = vmatpush1.bf16.msra.mxu0 %v9532_v26  ;;  %7929 = vmatpush3.bf16.msra.mxu1 %v8536_v59  ;;  %v8539_v59 = vld [vmem:[#allocation9 + $0x170] ss:$12 sps:$4 sm:$0xff]  }
 0x1b0   :  { %1427 = vmatprep.subr.bf16.mxu0 %v9535_v63  ;;  %7930 = vmatprep.subr.bf16.mxu1 %v10723_v36 }
 0x1b3   :  { %1428 = vmatpush1.bf16.msra.mxu0 %v9539_v3  ;;  %7931 = vmatpush3.bf16.msra.mxu1 %v8537_v13  ;;  %v1255_v13 = vpack.c.bf16 %v9555_v51, %v9555_v51 }
 0x1b4   :  { %1429 = vmatprep.subr.bf16.mxu0 %v9542_v21  ;;  %7932 = vmatprep.subr.bf16.mxu1 %v10723_v36 }
 0x1b7   :  { %1430 = vmatpush1.bf16.msra.mxu0 %v9546_v8  ;;  %7933 = vmatpush3.bf16.msra.mxu1 %v8538_v28  ;;  %v9566_v28 = vld [vmem:[#allocation9 + $0x4] ss:$12 sps:$4 sm:$0xff]  }
 0x1b8   :  { %1431 = vmatprep.subr.bf16.mxu0 %v9549_v34  ;;  %7934 = vmatprep.subr.bf16.mxu1 %v10723_v36 }
 0x1bb   :  { %1432 = vmatpush1.bf16.msra.mxu0 %v9553_v40  ;;  %7935 = vmatpush3.bf16.msra.mxu1 %v8539_v59  ;;  %v9572_v59 = vld [vmem:[#allocation9 + $0x1c] ss:$12 sps:$4 sm:$0xff]  }
 0x1bc   :  { %7940 = vmatprep.subr.bf16.mxu1 %v10723_v36  ;;  %1693 = vmatprep.subr.bf16.mxu0 %v9566_v28 }
 0x1be   :  { %1450 = vmatmul.mubr.bf16.vlgmr.msra.gmra.mrb[24].mxu0 %v1255_v13  ;;  %7937 = vmatmul.mubr.bf16.vlgmr.msra.gmra.mrb[20].mxu1 %v1255_v13  ;;  %v9575_v13 = vld [vmem:[#allocation9 + $0x18] ss:$12 sps:$4 sm:$0xff]  }
 0x1bf   :  { %1725 = vmatprep.mubr.bf16.mxu0 %v10714_v0  ;;  %7956 = vmatprep.mubr.msk.bf16.mxu1 %vm9204_vm0, %v10723_v36  ;;  %v8547_v0 = vld [vmem:[#allocation9 + $0x20] ss:$12 sps:$4 sm:$0xff]  }
 0x1c0   :  { %1694 = vmatpush1.bf16.msra.mxu0 %v9568_v46  ;;  %7941 = vmatpush3.bf16.msra.mxu1 %v8543_v56  ;;  %v9586_v56 = vld [vmem:[#allocation9 + $0x4c] ss:$12 sps:$4 sm:$0xff]  }
 0x1c1   :  { %7942 = vmatprep.subr.bf16.mxu1 %v10723_v36  ;;  %1695 = vmatprep.subr.bf16.mxu0 %v9572_v59 }
 0x1c4   :  { %1696 = vmatpush1.bf16.msra.mxu0 %v9575_v13  ;;  %7943 = vmatpush3.bf16.msra.mxu1 %v8547_v0  ;;  %v9593_v0 = vld [vmem:[#allocation9 + $0x64] ss:$12 sps:$4 sm:$0xff]  }
 0x1c5   :  { %7944 = vmatprep.subr.bf16.mxu1 %v10723_v36  ;;  %1697 = vmatprep.subr.bf16.mxu0 %v9579_v54  ;;  %10766 = vst [vmem:[#allocation36_spill] sm:$0xff] %v9593_v0 }
 0x1c8   :  { %1698 = vmatpush1.bf16.msra.mxu0 %v9582_v41  ;;  %7945 = vmatpush3.bf16.msra.mxu1 %v8551_v52  ;;  %v9600_v52 = vld [vmem:[#allocation9 + $0x78] ss:$12 sps:$4 sm:$0xff]  }
 0x1c9   :  { %7946 = vmatprep.subr.bf16.mxu1 %v10723_v36  ;;  %1699 = vmatprep.subr.bf16.mxu0 %v9586_v56  ;;  %10768 = vst [vmem:[#allocation38_spill] sm:$0xff] %v9600_v52 }
 0x1cc   :  { %1700 = vmatpush1.bf16.msra.mxu0 %v9589_v50  ;;  %7947 = vmatpush3.bf16.msra.mxu1 %v8555_v48  ;;  %v9605_v48 = vld [vmem:[#allocation9 + $0x94] ss:$12 sps:$4 sm:$0xff]  }
 0x1cd   :  { %7948 = vmatprep.subr.bf16.mxu1 %v10723_v36  ;;  %1701 = vmatprep.subr.bf16.mxu0 %v9593_v0  ;;  %10770 = vst [vmem:[#allocation40_spill] sm:$0xff] %v9605_v48 }
 0x1d0   :  { %1702 = vmatpush1.bf16.msra.mxu0 %v9596_v43  ;;  %7949 = vmatpush3.bf16.msra.mxu1 %v8559_v39  ;;  %v9613_v39 = vld [vmem:[#allocation9 + $0xac] ss:$12 sps:$4 sm:$0xff]  }
 0x1d1   :  { %7950 = vmatprep.subr.bf16.mxu1 %v10723_v36  ;;  %1703 = vmatprep.subr.bf16.mxu0 %v9602_v44  ;;  %10772 = vst [vmem:[#allocation42_spill] sm:$0xff] %v9613_v39 }
 0x1d4   :  { %1704 = vmatpush1.bf16.msra.mxu0 %v9600_v52  ;;  %7951 = vmatpush3.bf16.msra.mxu1 %v8563_v35 }
 0x1d5   :  { %1705 = vmatprep.subr.bf16.mxu0 %v9605_v48  ;;  %7952 = vmatprep.subr.bf16.mxu1 %v10723_v36 }
 0x1d8   :  { %1706 = vmatpush1.bf16.msra.mxu0 %v9609_v33  ;;  %7953 = vmatpush3.bf16.msra.mxu1 %v8567_v29 }
 0x1d9   :  { %1707 = vmatprep.subr.bf16.mxu0 %v9613_v39  ;;  %7954 = vmatprep.subr.bf16.mxu1 %v10723_v36 }
 0x1dc   :  { %1708 = vmatpush1.bf16.msra.mxu0 %v9616_v27  ;;  %7955 = vmatpush3.bf16.msra.mxu1 %v8571_v23 }
 0x1dd   :  { %1983 = vmatprep.subr.bf16.mxu0 %v9363_v62  ;;  %7960 = vmatprep.subr.bf16.mxu1 %v10723_v36 }
 0x251   :  { %v916_v35 = vpop.f32.mrb[20].mxu0  ;;  %v957_v25 = vpop.f32.mrb[12].mxu1 }
 0x252   :  { %v963_v20 = vadd.f32 %v916_v35, %v9379_v12  ;;  %v918_v18 = vpop.f32.mrb[21].mxu0  ;;  %v7898_v29 = vpop.f32.mrb[13].mxu1  ;;  %v984_v50 = vadd.f32 %v9436_v7, %v957_v25  ;;  %v8572_v25 = vld [vmem:[#allocation7 + $0xc8] ss:$12 sps:$4 sm:$0xff]   ;;  %v10774_v7 = vmov 0.0  }
 0x253   :  { %v970_v33 = vadd.f32 %v918_v18, %v9383_v15  ;;  %v920_v48 = vpop.f32.mrb[22].mxu0  ;;  %v960_v52 = vpop.f32.mrb[14].mxu1 }
 0x254   :  { %v7019_v39 = vmul.f32 -1.442695, %v963_v20  ;;  %v921_v44 = vpop.f32.mrb[23].mxu0  ;;  %v7899_v43 = vpop.f32.mrb[15].mxu1 }
 0x255   :  { %v7020_v27 = vmul.f32 -1.442695, %v970_v33 }
 0x256   :  { %8926 = vpow2.f32 %v7019_v39 }
 0x257   :  { %8928 = vpow2.f32 %v7020_v27 }
 0x260   :  { %v8927_v23 = vpop.eup %8926 }
 0x261   :  { %v967_v62 = vadd.f32 1.0, %v8927_v23  ;;  %v8929_v36 = vpop.eup %8928 }
 0x262   :  { %v974_v0 = vadd.f32 1.0, %v8929_v36 }
 0x263   :  { %8930 = vrcp.f32 %v967_v62 }
 0x264   :  { %8932 = vrcp.f32 %v974_v0  ;;  %v8574_v0 = vld [vmem:[#allocation7 + $0xf8] ss:$12 sps:$4 sm:$0xff]  }
 0x26d   :  { %v8931_v12 = vpop.eup %8930 }
 0x26e   :  { %v985_v35 = vmul.f32 %v8931_v12, %v984_v50  ;;  %v8933_v33 = vpop.eup %8932 }
 0x26f   :  { %v988_v27 = vsub.f32 1.0, %v8933_v33  ;;  %v990_v39 = vmul.f32 %v8933_v33, %v9440_v47  ;;  %v10775_v47 = vmov 0  }
 0x270   :  { %v986_v15 = vadd.f32 %v985_v35, %v9403_v31  ;;  %v8573_v31 = vld [vmem:[#allocation7 + $0xe0] ss:$12 sps:$4 sm:$0xff]  }
 0x271   :  { %v9627_v18 = vpop.f32.mrb[16].mxu1 }
 0x272   :  { %8934 = vtanh.f32 %v986_v15  ;;  %v7918_v20 = vpop.f32.mrb[17].mxu1 }
 0x273   :  { %v1252_v43 = vpop.f32.mrb[18].mxu1 }
 0x274   :  { %v7919_v44 = vpop.f32.mrb[19].mxu1 }
 0x27c   :  { %v8935_v52 = vpop.eup %8934 }
 0x27d   :  { %v989_v48 = vmul.f32 %v8935_v52, %v988_v27 }
 0x27f   :  { %v9630_v36 = vadd.f32 %v990_v39, %v989_v48  ;;  %v8583_v48 = vld [vmem:[#allocation9 + $0x110] ss:$12 sps:$4 sm:$0xff]  }
 0x281   :  { %v9634_v50 = vpack.c.bf16 %v9630_v36, %v9630_v36 }
 0x283   :  { %1726 = vmatmul.mubr.bf16.vlgmr.msra.gmra.mrb[28].mxu0 %v9634_v50  ;;  %7957 = vmatmul.mubr.bf16.vlgmr.msra.gmra.mrb[24].mxu1 %v9634_v50 }
 0x284   :  { %1984 = vmatpush1.bf16.msra.mxu0 %v9442_v49  ;;  %7961 = vmatpush3.bf16.msra.mxu1 %v8572_v25  ;;  %v8575_v49 = vld [vmem:[#allocation7 + $0x110] ss:$12 sps:$4 sm:$0xff]  }
 0x285   :  { %1985 = vmatprep.subr.bf16.mxu0 %v9446_v55  ;;  %7962 = vmatprep.subr.bf16.mxu1 %v10774_v7  ;;  %v9651_v55 = vld [vmem:[%s10710_s4 + $0x3] sm:$0x7] }
 0x286   :  { %2015 = vmatprep.mubr.bf16.mxu0 %v10775_v47  ;;  %7976 = vmatprep.mubr.msk.bf16.mxu1 %vm9204_vm0, %v10774_v7 }
 0x288   :  { %1986 = vmatpush1.bf16.msra.mxu0 %v9449_v16  ;;  %7963 = vmatpush3.bf16.msra.mxu1 %v8573_v31  ;;  %v1034_v16 = vrot.slane %v9651_v55, %v9370_v4 }
 0x289   :  { %1987 = vmatprep.subr.bf16.mxu0 %v9453_v57  ;;  %7964 = vmatprep.subr.bf16.mxu1 %v10774_v7  ;;  %v8576_v57 = vld [vmem:[#allocation7 + $0x128] ss:$12 sps:$4 sm:$0xff]  }
 0x28c   :  { %1988 = vmatpush1.bf16.msra.mxu0 %v9459_v58  ;;  %7965 = vmatpush3.bf16.msra.mxu1 %v8574_v0  ;;  %v1038_v58 = vrot.slane %v9651_v55, %v9375_v6  ;;  %v8590_v0 = vld [vmem:[#allocation9 + $0x38] ss:$12 sps:$4 sm:$0xff]  }
 0x28d   :  { %1989 = vmatprep.subr.bf16.mxu0 %v9463_v60  ;;  %7966 = vmatprep.subr.bf16.mxu1 %v10774_v7 }
 0x290   :  { %1990 = vmatpush1.bf16.msra.mxu0 %v9466_v61  ;;  %7967 = vmatpush3.bf16.msra.mxu1 %v8575_v49  ;;  %v8577_v61 = vld [vmem:[#allocation7 + $0x140] ss:$12 sps:$4 sm:$0xff]   ;;  %v8591_v49 = vld [vmem:[#allocation9 + $0x50] ss:$12 sps:$4 sm:$0xff]  }
 0x291   :  { %v1451_v29 = vpop.f32.mrb[24].mxu0  ;;  %1991 = vmatprep.subr.bf16.mxu0 %v9470_v1  ;;  %7968 = vmatprep.subr.bf16.mxu1 %v10774_v7  ;;  %v1492_v23 = vpop.f32.mrb[20].mxu1  ;;  %v8578_v1 = vld [vmem:[#allocation7 + $0x158] ss:$12 sps:$4 sm:$0xff]  }
 0x292   :  { %v8340_v62 = vadd.f32 %v1451_v29, %v1034_v16  ;;  %v1453_v60 = vpop.f32.mrb[25].mxu0  ;;  %v7938_v12 = vpop.f32.mrb[21].mxu1  ;;  %v8593_v16 = vld [vmem:[#allocation9 + $0x80] ss:$12 sps:$4 sm:$0xff]   ;;  %v8594_v29 = vld [vmem:[#allocation9 + $0x98] ss:$12 sps:$4 sm:$0xff]  }
 0x293   :  { %v1455_v35 = vpop.f32.mrb[26].mxu0  ;;  %v1495_v15 = vpop.f32.mrb[22].mxu1  ;;  %v8341_v33 = vadd.f32 %v1453_v60, %v1038_v58  ;;  %v8595_v58 = vld [vmem:[#allocation9 + $0xb0] ss:$12 sps:$4 sm:$0xff]  }
 0x294   :  { %v7071_v20 = vmul.f32 -1.442695, %v8340_v62  ;;  %v1456_v43 = vpop.f32.mrb[27].mxu0  ;;  %1992 = vmatpush1.bf16.msra.mxu0 %v9473_v2  ;;  %7969 = vmatpush3.bf16.msra.mxu1 %v8576_v57  ;;  %v7939_v44 = vpop.f32.mrb[23].mxu1  ;;  %v8579_v2 = vld [vmem:[#allocation7 + $0x170] ss:$12 sps:$4 sm:$0xff]  }
 0x295   :  { %1993 = vmatprep.subr.bf16.mxu0 %v9477_v5  ;;  %7970 = vmatprep.subr.bf16.mxu1 %v10774_v7  ;;  %v7072_v27 = vmul.f32 -1.442695, %v8341_v33  ;;  %v9741_v57 = vld [vmem:[#allocation7 + $0xc4] ss:$12 sps:$4 sm:$0xff]  }
 0x296   :  { %8936 = vpow2.f32 %v7071_v20  ;;  %v10785_v60 = vld [vmem:[#allocation17_spill] sm:$0xff]  ;;  %v10786_v20 = vld [vmem:[#allocation18_spill] sm:$0xff] }
 0x297   :  { %8938 = vpow2.f32 %v7072_v27 }
 0x298   :  { %1994 = vmatpush1.bf16.msra.mxu0 %v9480_v11  ;;  %7971 = vmatpush3.bf16.msra.mxu1 %v8577_v61  ;;  %v8580_v11 = vld [vmem:[#allocation9 + $0xc8] ss:$12 sps:$4 sm:$0xff]  }
 0x299   :  { %1995 = vmatprep.subr.bf16.mxu0 %v9484_v17  ;;  %7972 = vmatprep.subr.bf16.mxu1 %v10774_v7  ;;  %v8581_v17 = vld [vmem:[#allocation9 + $0xe0] ss:$12 sps:$4 sm:$0xff]  }
 0x29c   :  { %1996 = vmatpush1.bf16.msra.mxu0 %v9487_v19  ;;  %7973 = vmatpush3.bf16.msra.mxu1 %v8578_v1 }
 0x29d   :  { %1997 = vmatprep.subr.bf16.mxu0 %v9491_v22  ;;  %7974 = vmatprep.subr.bf16.mxu1 %v10774_v7  ;;  %v9685_v22 = vld [vmem:[%s10711_s5 + $0x1] ss:$0 sm:$0xff] }
 0x2a0   :  { %v8937_v5 = vpop.eup %8936  ;;  %1998 = vmatpush1.bf16.msra.mxu0 %v9494_v24  ;;  %7975 = vmatpush3.bf16.msra.mxu1 %v8579_v2  ;;  %v8582_v24 = vld [vmem:[#allocation9 + $0xf8] ss:$12 sps:$4 sm:$0xff]  }
 0x2a1   :  { %v1502_v52 = vadd.f32 1.0, %v8937_v5  ;;  %2225 = vmatprep.subr.bf16.mxu0 %v9498_v9  ;;  %7980 = vmatprep.subr.bf16.mxu1 %v10774_v7  ;;  %v8939_v19 = vpop.eup %8938  ;;  %v1042_v9 = vrot.slane %v9651_v55, %v9381_v14  ;;  %v8592_v55 = vld [vmem:[#allocation9 + $0x68] ss:$12 sps:$4 sm:$0xff]  }
 0x2a3   :  { %8940 = vrcp.f32 %v1502_v52  ;;  %2016 = vmatmul.mubr.bf16.vlgmr.msra.gmra.mrb[32].mxu0 %v9634_v50  ;;  %7977 = vmatmul.mubr.bf16.vlgmr.msra.gmra.mrb[28].mxu1 %v9634_v50  ;;  %v8584_v50 = vld [vmem:[#allocation9 + $0x128] ss:$12 sps:$4 sm:$0xff]  }
 0x2a4   :  { %2226 = vmatpush1.bf16.msra.mxu0 %v9501_v10  ;;  %7981 = vmatpush3.bf16.msra.mxu1 %v8580_v11  ;;  %v1509_v10 = vadd.f32 1.0, %v8939_v19 }
 0x2a5   :  { %2227 = vmatprep.subr.bf16.mxu0 %v9504_v30  ;;  %7982 = vmatprep.subr.bf16.mxu1 %v10774_v7  ;;  %v1520_v30 = vadd.f32 %v9685_v22, %v1492_v23 }
 0x2a6   :  { %2257 = vmatprep.mubr.bf16.mxu0 %v10775_v47  ;;  %7996 = vmatprep.mubr.msk.bf16.mxu1 %vm9204_vm0, %v10774_v7  ;;  %8942 = vrcp.f32 %v1509_v10 }
 0x2a8   :  { %2228 = vmatpush1.bf16.msra.mxu0 %v9508_v32  ;;  %7983 = vmatpush3.bf16.msra.mxu1 %v8581_v17  ;;  %v1250_v32 = vadd.f32 %v9627_v18, %v1042_v9  ;;  %v9752_v17 = vld [vmem:[%s10711_s5] ss:$0 sm:$0xff] }
 0x2a9   :  { %2229 = vmatprep.subr.bf16.mxu0 %v9511_v37  ;;  %7984 = vmatprep.subr.bf16.mxu1 %v10774_v7 }
 0x2ac   :  { %2230 = vmatpush1.bf16.msra.mxu0 %v9518_v38  ;;  %7985 = vmatpush3.bf16.msra.mxu1 %v8582_v24  ;;  %v8585_v38 = vld [vmem:[#allocation9 + $0x140] ss:$12 sps:$4 sm:$0xff]  }
 0x2ad   :  { %v8941_v39 = vpop.eup %8940  ;;  %2231 = vmatprep.subr.bf16.mxu0 %v9521_v42  ;;  %7986 = vmatprep.subr.bf16.mxu1 %v10774_v7 }
 0x2ae   :  { %v1521_v37 = vmul.f32 %v8941_v39, %v1520_v30  ;;  %v10787_v30 = vld [vmem:[#allocation20_spill] sm:$0xff] }
 0x2b0   :  { %v1522_v25 = vadd.f32 %v1521_v37, %v1250_v32  ;;  %2232 = vmatpush1.bf16.msra.mxu0 %v9525_v45  ;;  %7987 = vmatpush3.bf16.msra.mxu1 %v8583_v48  ;;  %v8943_v42 = vpop.eup %8942  ;;  %v8586_v45 = vld [vmem:[#allocation9 + $0x158] ss:$12 sps:$4 sm:$0xff]  }
 0x2b1   :  { %2233 = vmatprep.subr.bf16.mxu0 %v9528_v53  ;;  %7988 = vmatprep.subr.bf16.mxu1 %v10774_v7  ;;  %v1524_v53 = vsub.f32 1.0, %v8943_v42  ;;  %v1526_v31 = vmul.f32 %v8943_v42, %v9555_v51  ;;  %v10780_v51 = vld [vmem:[#allocation38_spill] sm:$0xff] }
 0x2b2   :  { %8944 = vtanh.f32 %v1522_v25 }
 0x2b4   :  { %2234 = vmatpush1.bf16.msra.mxu0 %v9532_v26  ;;  %7989 = vmatpush3.bf16.msra.mxu1 %v8584_v50  ;;  %v8587_v26 = vld [vmem:[#allocation9 + $0x170] ss:$12 sps:$4 sm:$0xff]  }
 0x2b5   :  { %2235 = vmatprep.subr.bf16.mxu0 %v9535_v63  ;;  %7990 = vmatprep.subr.bf16.mxu1 %v10774_v7 }
 0x2b8   :  { %2236 = vmatpush1.bf16.msra.mxu0 %v9539_v3  ;;  %7991 = vmatpush3.bf16.msra.mxu1 %v8585_v38 }
 0x2b9   :  { %2237 = vmatprep.subr.bf16.mxu0 %v9542_v21  ;;  %7992 = vmatprep.subr.bf16.mxu1 %v10774_v7 }
 0x2bc   :  { %v8945_v18 = vpop.eup %8944  ;;  %2238 = vmatpush1.bf16.msra.mxu0 %v9546_v8  ;;  %7993 = vmatpush3.bf16.msra.mxu1 %v8586_v45  ;;  %v10776_v8 = vld [vmem:[#allocation35_spill] sm:$0xff] }
 0x2bd   :  { %2239 = vmatprep.subr.bf16.mxu0 %v9549_v34  ;;  %7994 = vmatprep.subr.bf16.mxu1 %v10774_v7  ;;  %v1525_v63 = vmul.f32 %v8945_v18, %v1524_v53  ;;  %v10777_v34 = vld [vmem:[#allocation36_spill] sm:$0xff] }
 0x2bf   :  { %v9710_v3 = vadd.f32 %v1526_v31, %v1525_v63  ;;  %v8599_v63 = vld [vmem:[#allocation7 + $0xc8] ss:$12 sps:$4 sm:$0xff]  }
 0x2c0   :  { %2240 = vmatpush1.bf16.msra.mxu0 %v9553_v40  ;;  %7995 = vmatpush3.bf16.msra.mxu1 %v8587_v26  ;;  %v10779_v40 = vld [vmem:[#allocation39_spill] sm:$0xff] }
 0x2c1   :  { %1528 = vst [vmem:[#allocation10] sm:$0xff] %v9710_v3  ;;  %v2064_v21 = vpack.c.bf16 %v9710_v3, %v9710_v3  ;;  %2500 = vmatprep.subr.bf16.mxu0 %v9566_v28  ;;  %8000 = vmatprep.subr.bf16.mxu1 %v10774_v7  ;;  %v10781_v28 = vld [vmem:[#allocation40_spill] sm:$0xff] }
 0x2c2   :  { %v9761_v26 = vld [vmem:[#allocation7 + $0xc0] ss:$12 sps:$4 sm:$0xff]  }
 0x2c3   :  { %2258 = vmatmul.mubr.bf16.vlgmr.msra.gmra.mrb[32].mxu0 %v2064_v21  ;;  %7997 = vmatmul.mubr.bf16.vlgmr.msra.gmra.mrb[32].mxu1 %v2064_v21  ;;  %v9767_v21 = vld [vmem:[#allocation7 + $0xdc] ss:$12 sps:$4 sm:$0xff]  }
 0x2c4   :  { %2501 = vmatpush1.bf16.msra.mxu0 %v9568_v46  ;;  %2532 = vmatprep.mubr.bf16.mxu0 %v10775_v47  ;;  %v10778_v46 = vld [vmem:[#allocation37_spill] sm:$0xff] }
 0x2c5   :  { %2502 = vmatprep.subr.bf16.mxu0 %v9572_v59  ;;  %8016 = vmatprep.mubr.msk.bf16.mxu1 %vm9204_vm0, %v10774_v7  ;;  %v10782_v59 = vld [vmem:[#allocation41_spill] sm:$0xff] }
 0x2c8   :  { %2503 = vmatpush1.bf16.msra.mxu0 %v9575_v13  ;;  %v10783_v13 = vld [vmem:[#allocation42_spill] sm:$0xff] }
 0x2c9   :  { %2504 = vmatprep.subr.bf16.mxu0 %v9579_v54  ;;  %v10784_v54 = vld [vmem:[#allocation43_spill] sm:$0xff] }
 0x2cc   :  { %2505 = vmatpush1.bf16.msra.mxu0 %v9582_v41  ;;  %v8588_v41 = vld [vmem:[#allocation9 + $0x8] ss:$12 sps:$4 sm:$0xff]  }
 0x2cd   :  { %2506 = vmatprep.subr.bf16.mxu0 %v9586_v56  ;;  %8001 = vmatpush3.bf16.msra.mxu1 %v8588_v41  ;;  %v8589_v56 = vld [vmem:[#allocation9 + $0x20] ss:$12 sps:$4 sm:$0xff]  }
 0x2ce   :  { %8002 = vmatprep.subr.bf16.mxu1 %v10774_v7 }
 0x2d0   :  { %2507 = vmatpush1.bf16.msra.mxu0 %v10776_v8  ;;  %v9772_v8 = vld [vmem:[#allocation7 + $0xd8] ss:$12 sps:$4 sm:$0xff]  }
 0x2d1   :  { %2508 = vmatprep.subr.bf16.mxu0 %v10777_v34  ;;  %8003 = vmatpush3.bf16.msra.mxu1 %v8589_v56  ;;  %v9776_v34 = vld [vmem:[#allocation7 + $0xf4] ss:$12 sps:$4 sm:$0xff]  }
 0x2d2   :  { %8004 = vmatprep.subr.bf16.mxu1 %v10774_v7  ;;  %v9803_v56 = vld [vmem:[#allocation7 + $0x120] ss:$12 sps:$4 sm:$0xff]  }
 0x2d4   :  { %2509 = vmatpush1.bf16.msra.mxu0 %v10778_v46  ;;  %v9782_v46 = vld [vmem:[#allocation7 + $0xf0] ss:$12 sps:$4 sm:$0xff]  }
 0x2d5   :  { %2510 = vmatprep.subr.bf16.mxu0 %v10779_v40  ;;  %8005 = vmatpush3.bf16.msra.mxu1 %v8590_v0  ;;  %v8607_v40 = vld [vmem:[#allocation7 + $0xf8] ss:$12 sps:$4 sm:$0xff]   ;;  %v8615_v0 = vld [vmem:[#allocation7 + $0x128] ss:$12 sps:$4 sm:$0xff]  }
 0x2d6   :  { %8006 = vmatprep.subr.bf16.mxu1 %v10774_v7 }
 0x2d8   :  { %2511 = vmatpush1.bf16.msra.mxu0 %v10780_v51  ;;  %v9786_v51 = vld [vmem:[#allocation7 + $0x10c] ss:$12 sps:$4 sm:$0xff]  }
 0x2d9   :  { %2512 = vmatprep.subr.bf16.mxu0 %v10781_v28  ;;  %8007 = vmatpush3.bf16.msra.mxu1 %v8591_v49  ;;  %v9789_v28 = vld [vmem:[#allocation7 + $0x108] ss:$12 sps:$4 sm:$0xff]  }
 0x2da   :  { %8008 = vmatprep.subr.bf16.mxu1 %v10774_v7 }
 0x2dc   :  { %2513 = vmatpush1.bf16.msra.mxu0 %v10782_v59  ;;  %v8611_v59 = vld [vmem:[#allocation7 + $0x110] ss:$12 sps:$4 sm:$0xff]  }
 0x2dd   :  { %2514 = vmatprep.subr.bf16.mxu0 %v10783_v13  ;;  %8009 = vmatpush3.bf16.msra.mxu1 %v8592_v55  ;;  %v9794_v13 = vld [vmem:[%s10710_s4 + $0x3] sm:$0x7] }
 0x2de   :  { %8010 = vmatprep.subr.bf16.mxu1 %v10774_v7  ;;  %v1843_v41 = vrot.slane %v9794_v13, %v9370_v4 }
 0x2e0   :  { %2515 = vmatpush1.bf16.msra.mxu0 %v10784_v54  ;;  %v9798_v54 = vld [vmem:[#allocation7 + $0x124] ss:$12 sps:$4 sm:$0xff]  }
 0x2e1   :  { %2790 = vmatprep.subr.bf16.mxu0 %v9741_v57  ;;  %8011 = vmatpush3.bf16.msra.mxu1 %v8593_v16  ;;  %v1847_v16 = vrot.slane %v9794_v13, %v9375_v6 }
 0x2e2   :  { %8012 = vmatprep.subr.bf16.mxu1 %v10774_v7 }
 0x2e5   :  { %8013 = vmatpush3.bf16.msra.mxu1 %v8594_v29  ;;  %v9811_v29 = vld [vmem:[#allocation7 + $0x13c] ss:$12 sps:$4 sm:$0xff]  }
 0x2e6   :  { %8014 = vmatprep.subr.bf16.mxu1 %v10774_v7 }
 0x2e9   :  { %8015 = vmatpush3.bf16.msra.mxu1 %v8595_v58 }
 0x2ea   :  { %8020 = vmatprep.subr.bf16.mxu1 %v10774_v7 }
 0x356   :  { %v1727_v23 = vpop.f32.mrb[28].mxu0  ;;  %v1768_v62 = vpop.f32.mrb[24].mxu1 }
 0x357   :  { %v1774_v12 = vadd.f32 %v1727_v23, %v10785_v60  ;;  %v1729_v35 = vpop.f32.mrb[29].mxu0  ;;  %v7958_v15 = vpop.f32.mrb[25].mxu1  ;;  %v1795_v24 = vadd.f32 %v9752_v17, %v1768_v62 }
 0x358   :  { %v1781_v43 = vadd.f32 %v1729_v35, %v10786_v20  ;;  %v1731_v61 = vpop.f32.mrb[30].mxu0  ;;  %v1771_v44 = vpop.f32.mrb[26].mxu1  ;;  %v9813_v35 = vld [vmem:[#allocation7 + $0x138] ss:$12 sps:$4 sm:$0xff]  }
 0x359   :  { %v7099_v33 = vmul.f32 -1.442695, %v1774_v12  ;;  %v1732_v1 = vpop.f32.mrb[31].mxu0  ;;  %v7959_v27 = vpop.f32.mrb[27].mxu1  ;;  %v8619_v61 = vld [vmem:[#allocation7 + $0x140] ss:$12 sps:$4 sm:$0xff]  }
 0x35a   :  { %v7100_v2 = vmul.f32 -1.442695, %v1781_v43  ;;  %v9821_v1 = vld [vmem:[#allocation7 + $0x150] ss:$12 sps:$4 sm:$0xff]   ;;  %v8623_v27 = vld [vmem:[#allocation7 + $0x158] ss:$12 sps:$4 sm:$0xff]  }
 0x35b   :  { %8946 = vpow2.f32 %v7099_v33  ;;  %v9818_v33 = vld [vmem:[#allocation7 + $0x154] ss:$12 sps:$4 sm:$0xff]  }
 0x35c   :  { %8948 = vpow2.f32 %v7100_v2 }
 0x365   :  { %v8947_v5 = vpop.eup %8946 }
 0x366   :  { %v1778_v11 = vadd.f32 1.0, %v8947_v5  ;;  %v8949_v52 = vpop.eup %8948  ;;  %v9825_v5 = vld [vmem:[#allocation7 + $0x16c] ss:$12 sps:$4 sm:$0xff]  }
 0x367   :  { %v1785_v19 = vadd.f32 1.0, %v8949_v52  ;;  %v8627_v52 = vld [vmem:[#allocation7 + $0x170] ss:$12 sps:$4 sm:$0xff]  }
 0x368   :  { %8950 = vrcp.f32 %v1778_v11  ;;  %v9828_v11 = vld [vmem:[#allocation7 + $0x168] ss:$12 sps:$4 sm:$0xff]  }
 0x369   :  { %8952 = vrcp.f32 %v1785_v19  ;;  %v9832_v19 = vld [vmem:[#allocation9 + $0xc4] ss:$12 sps:$4 sm:$0xff]  }
 0x372   :  { %v8951_v9 = vpop.eup %8950 }
 0x373   :  { %v1796_v10 = vmul.f32 %v8951_v9, %v1795_v24  ;;  %v8953_v50 = vpop.eup %8952  ;;  %v9835_v9 = vld [vmem:[#allocation9 + $0xc0] ss:$12 sps:$4 sm:$0xff]  }
 0x374   :  { %v1799_v38 = vsub.f32 1.0, %v8953_v50  ;;  %v1801_v53 = vmul.f32 %v8953_v50, %v9630_v36  ;;  %v8603_v36 = vld [vmem:[#allocation7 + $0xe0] ss:$12 sps:$4 sm:$0xff]  }
 0x375   :  { %v1797_v48 = vadd.f32 %v1796_v10, %v10787_v30  ;;  %v8631_v10 = vld [vmem:[#allocation9 + $0xc8] ss:$12 sps:$4 sm:$0xff]  }
 0x376   :  { %v9756_v39 = vpop.f32.mrb[28].mxu1 }
 0x377   :  { %8954 = vtanh.f32 %v1797_v48  ;;  %v7978_v32 = vpop.f32.mrb[29].mxu1  ;;  %v9839_v48 = vld [vmem:[#allocation9 + $0xdc] ss:$12 sps:$4 sm:$0xff]  }
 0x378   :  { %v2061_v37 = vpop.f32.mrb[30].mxu1  ;;  %v9844_v32 = vld [vmem:[#allocation9 + $0xd8] ss:$12 sps:$4 sm:$0xff]  }
 0x379   :  { %v7979_v25 = vpop.f32.mrb[31].mxu1  ;;  %v8635_v37 = vld [vmem:[#allocation9 + $0xe0] ss:$12 sps:$4 sm:$0xff]  }
 0x37a   :  { %v9848_v25 = vld [vmem:[#allocation9 + $0xf4] ss:$12 sps:$4 sm:$0xff]  }
 0x381   :  { %v8955_v42 = vpop.eup %8954 }
 0x382   :  { %v1800_v45 = vmul.f32 %v8955_v42, %v1799_v38  ;;  %v9854_v38 = vld [vmem:[#allocation9 + $0xf0] ss:$12 sps:$4 sm:$0xff]   ;;  %v8639_v42 = vld [vmem:[#allocation9 + $0xf8] ss:$12 sps:$4 sm:$0xff]  }
 0x384   :  { %v9759_v18 = vadd.f32 %v1801_v53, %v1800_v45  ;;  %v9858_v45 = vld [vmem:[#allocation9 + $0x10c] ss:$12 sps:$4 sm:$0xff]   ;;  %v1851_v53 = vrot.slane %v9794_v13, %v9381_v14 }
 0x386   :  { %v9765_v31 = vpack.c.bf16 %v9759_v18, %v9759_v18 }
 0x388   :  { %2533 = vmatmul.mubr.bf16.vlgmr.msra.gmra.mrb[36].mxu0 %v9765_v31  ;;  %8017 = vmatmul.mubr.bf16.vlgmr.msra.gmra.mrb[36].mxu1 %v9765_v31 }
 0x389   :  { %2791 = vmatpush1.bf16.msra.mxu0 %v9761_v26  ;;  %8021 = vmatpush3.bf16.msra.mxu1 %v8599_v63 }
 0x38a   :  { %2792 = vmatprep.subr.bf16.mxu0 %v9767_v21  ;;  %8022 = vmatprep.subr.bf16.mxu1 %v10774_v7 }
 0x38b   :  { %2822 = vmatprep.mubr.bf16.mxu0 %v10775_v47  ;;  %8036 = vmatprep.mubr.msk.bf16.mxu1 %vm9204_vm0, %v10774_v7 }
 0x38d   :  { %2793 = vmatpush1.bf16.msra.mxu0 %v9772_v8  ;;  %8023 = vmatpush3.bf16.msra.mxu1 %v8603_v36  ;;  %v9865_v36 = vld [vmem:[#allocation9 + $0x108] ss:$12 sps:$4 sm:$0xff]  }
 0x38e   :  { %2794 = vmatprep.subr.bf16.mxu0 %v9776_v34  ;;  %8024 = vmatprep.subr.bf16.mxu1 %v10774_v7 }
 0x391   :  { %2795 = vmatpush1.bf16.msra.mxu0 %v9782_v46  ;;  %8025 = vmatpush3.bf16.msra.mxu1 %v8607_v40  ;;  %v8643_v40 = vld [vmem:[#allocation9 + $0x110] ss:$12 sps:$4 sm:$0xff]  }
 0x392   :  { %2796 = vmatprep.subr.bf16.mxu0 %v9786_v51  ;;  %8026 = vmatprep.subr.bf16.mxu1 %v10774_v7 }
 0x395   :  { %2797 = vmatpush1.bf16.msra.mxu0 %v9789_v28  ;;  %8027 = vmatpush3.bf16.msra.mxu1 %v8611_v59 }
 0x396   :  { %v2259_v49 = vpop.f32.mrb[32].mxu0  ;;  %v9805_v55 = vpop.f32.mrb[32].mxu1  ;;  %2798 = vmatprep.subr.bf16.mxu0 %v9798_v54  ;;  %8028 = vmatprep.subr.bf16.mxu1 %v10774_v7 }
 0x397   :  { %v8342_v58 = vadd.f32 %v2259_v49, %v1843_v41  ;;  %v2261_v23 = vpop.f32.mrb[33].mxu0  ;;  %v7998_v62 = vpop.f32.mrb[33].mxu1  ;;  %v9869_v41 = vld [vmem:[#allocation9 + $0x124] ss:$12 sps:$4 sm:$0xff]  }
 0x398   :  { %v2263_v60 = vpop.f32.mrb[34].mxu0  ;;  %v2303_v12 = vpop.f32.mrb[34].mxu1  ;;  %v8343_v44 = vadd.f32 %v2261_v23, %v1847_v16  ;;  %v9877_v16 = vld [vmem:[#allocation9 + $0x13c] ss:$12 sps:$4 sm:$0xff]   ;;  %v9884_v23 = vld [vmem:[#allocation9 + $0x154] ss:$12 sps:$4 sm:$0xff]  }
 0x399   :  { %v7151_v15 = vmul.f32 -1.442695, %v8342_v58  ;;  %v2264_v20 = vpop.f32.mrb[35].mxu0  ;;  %v7999_v43 = vpop.f32.mrb[35].mxu1  ;;  %2799 = vmatpush1.bf16.msra.mxu0 %v9803_v56  ;;  %8029 = vmatpush3.bf16.msra.mxu1 %v8615_v0  ;;  %v2059_v0 = vadd.f32 %v9756_v39, %v1851_v53  ;;  %v9880_v39 = vld [vmem:[#allocation9 + $0x138] ss:$12 sps:$4 sm:$0xff]  }
 0x39a   :  { %2800 = vmatprep.subr.bf16.mxu0 %v9811_v29  ;;  %8030 = vmatprep.subr.bf16.mxu1 %v10774_v7  ;;  %v7152_v2 = vmul.f32 -1.442695, %v8343_v44  ;;  %v8651_v58 = vld [vmem:[#allocation9 + $0x140] ss:$12 sps:$4 sm:$0xff]   ;;  %v9887_v60 = vld [vmem:[#allocation9 + $0x150] ss:$12 sps:$4 sm:$0xff]  }
 0x39b   :  { %8956 = vpow2.f32 %v7151_v15  ;;  %v8655_v12 = vld [vmem:[#allocation9 + $0x158] ss:$12 sps:$4 sm:$0xff]   ;;  %v8659_v44 = vld [vmem:[#allocation9 + $0x170] ss:$12 sps:$4 sm:$0xff]   ;;  %v9922_v53 = vld [vmem:[#allocation9 + $0x34] ss:$12 sps:$4 sm:$0xff]  }
 0x39c   :  { %8958 = vpow2.f32 %v7152_v2  ;;  %v9891_v15 = vld [vmem:[#allocation9 + $0x16c] ss:$12 sps:$4 sm:$0xff]  }
 0x39d   :  { %2801 = vmatpush1.bf16.msra.mxu0 %v9813_v35  ;;  %8031 = vmatpush3.bf16.msra.mxu1 %v8619_v61  ;;  %v9894_v61 = vld [vmem:[#allocation9 + $0x168] ss:$12 sps:$4 sm:$0xff]  }
 0x39e   :  { %2802 = vmatprep.subr.bf16.mxu0 %v9818_v33  ;;  %8032 = vmatprep.subr.bf16.mxu1 %v10774_v7 }
 0x3a1   :  { %2803 = vmatpush1.bf16.msra.mxu0 %v9821_v1  ;;  %8033 = vmatpush3.bf16.msra.mxu1 %v8623_v27 }
 0x3a2   :  { %2804 = vmatprep.subr.bf16.mxu0 %v9825_v5  ;;  %8034 = vmatprep.subr.bf16.mxu1 %v10774_v7 }
 0x3a5   :  { %v8957_v24 = vpop.eup %8956  ;;  %2805 = vmatpush1.bf16.msra.mxu0 %v9828_v11  ;;  %8035 = vmatpush3.bf16.msra.mxu1 %v8627_v52 }
 0x3a6   :  { %v2310_v30 = vadd.f32 1.0, %v8957_v24  ;;  %3032 = vmatprep.subr.bf16.mxu0 %v9832_v19  ;;  %8040 = vmatprep.subr.bf16.mxu1 %v10774_v7  ;;  %v8959_v50 = vpop.eup %8958 }
 0x3a7   :  { %v2317_v63 = vadd.f32 1.0, %v8959_v50  ;;  %v9918_v50 = vld [vmem:[#allocation9 + $0x18] ss:$12 sps:$4 sm:$0xff]  }
 0x3a8   :  { %8960 = vrcp.f32 %v2310_v30  ;;  %2823 = vmatmul.mubr.bf16.vlgmr.msra.gmra.mrb[40].mxu0 %v9765_v31  ;;  %8037 = vmatmul.mubr.bf16.vlgmr.msra.gmra.mrb[40].mxu1 %v9765_v31  ;;  %v2327_v31 = vadd.f32 %v9685_v22, %v9805_v55  ;;  %v9873_v22 = vld [vmem:[#allocation9 + $0x120] ss:$12 sps:$4 sm:$0xff]   ;;  %v8647_v55 = vld [vmem:[#allocation9 + $0x128] ss:$12 sps:$4 sm:$0xff]  }
 0x3a9   :  { %3033 = vmatpush1.bf16.msra.mxu0 %v9835_v9  ;;  %8041 = vmatpush3.bf16.msra.mxu1 %v8631_v10  ;;  %8962 = vrcp.f32 %v2317_v63  ;;  %v9911_v10 = vld [vmem:[#allocation9] ss:$12 sps:$4 sm:$0xff]   ;;  %v8663_v30 = vld [vmem:[#allocation9 + $0x8] ss:$12 sps:$4 sm:$0xff]   ;;  %v9925_v63 = vld [vmem:[#allocation9 + $0x30] ss:$12 sps:$4 sm:$0xff]  }
 0x3aa   :  { %3034 = vmatprep.subr.bf16.mxu0 %v9839_v48  ;;  %8042 = vmatprep.subr.bf16.mxu1 %v10774_v7 }
 0x3ab   :  { %3064 = vmatprep.mubr.bf16.mxu0 %v10775_v47  ;;  %8056 = vmatprep.mubr.msk.bf16.mxu1 %vm9204_vm0, %v10774_v7 }
 0x3ad   :  { %3035 = vmatpush1.bf16.msra.mxu0 %v9844_v32  ;;  %8043 = vmatpush3.bf16.msra.mxu1 %v8635_v37  ;;  %v9915_v37 = vld [vmem:[#allocation9 + $0x1c] ss:$12 sps:$4 sm:$0xff]  }
 0x3ae   :  { %3036 = vmatprep.subr.bf16.mxu0 %v9848_v25  ;;  %8044 = vmatprep.subr.bf16.mxu1 %v10774_v7 }
 0x3b1   :  { %3037 = vmatpush1.bf16.msra.mxu0 %v9854_v38  ;;  %8045 = vmatpush3.bf16.msra.mxu1 %v8639_v42  ;;  %v8667_v42 = vld [vmem:[#allocation9 + $0x20] ss:$12 sps:$4 sm:$0xff]  }
 0x3b2   :  { %v8961_v59 = vpop.eup %8960  ;;  %3038 = vmatprep.subr.bf16.mxu0 %v9858_v45  ;;  %8046 = vmatprep.subr.bf16.mxu1 %v10774_v7 }
 0x3b3   :  { %v2328_v13 = vmul.f32 %v8961_v59, %v2327_v31  ;;  %v8963_v62 = vpop.eup %8962  ;;  %v8671_v31 = vld [vmem:[#allocation9 + $0x38] ss:$12 sps:$4 sm:$0xff]   ;;  %v9932_v59 = vld [vmem:[#allocation9 + $0x48] ss:$12 sps:$4 sm:$0xff]  }
 0x3b4   :  { %v2331_v20 = vsub.f32 1.0, %v8963_v62  ;;  %v2333_v2 = vmul.f32 %v8963_v62, %v9710_v3  ;;  %v9909_v3 = vld [vmem:[#allocation9 + $0x4] ss:$12 sps:$4 sm:$0xff]   ;;  %10789 = vst [vmem:[#allocation36_spill] sm:$0xff] %v9932_v59  ;;  %v9945_v62 = vld [vmem:[#allocation9 + $0x7c] ss:$12 sps:$4 sm:$0xff]  }
 0x3b5   :  { %v2329_v49 = vadd.f32 %v2328_v13, %v2059_v0  ;;  %3039 = vmatpush1.bf16.msra.mxu0 %v9865_v36  ;;  %8047 = vmatpush3.bf16.msra.mxu1 %v8643_v40  ;;  %v9929_v40 = vld [vmem:[#allocation9 + $0x4c] ss:$12 sps:$4 sm:$0xff]   ;;  %v8675_v0 = vld [vmem:[#allocation9 + $0x50] ss:$12 sps:$4 sm:$0xff]   ;;  %10793 = vst [vmem:[#allocation40_spill] sm:$0xff] %v9945_v62 }
 0x3b6   :  { %3040 = vmatprep.subr.bf16.mxu0 %v9869_v41  ;;  %8048 = vmatprep.subr.bf16.mxu1 %v10774_v7  ;;  %10788 = vst [vmem:[#allocation35_spill] sm:$0xff] %v9929_v40  ;;  %v9936_v13 = vld [vmem:[#allocation9 + $0x64] ss:$12 sps:$4 sm:$0xff]  }
 0x3b7   :  { %8964 = vtanh.f32 %v2329_v49  ;;  %10790 = vst [vmem:[#allocation37_spill] sm:$0xff] %v9936_v13  ;;  %v9939_v49 = vld [vmem:[#allocation9 + $0x60] ss:$12 sps:$4 sm:$0xff]  }
 0x3b8   :  { %10791 = vst [vmem:[#allocation39_spill] sm:$0xff] %v9939_v49 }
 0x3b9   :  { %3041 = vmatpush1.bf16.msra.mxu0 %v9873_v22  ;;  %8049 = vmatpush3.bf16.msra.mxu1 %v8647_v55  ;;  %v8679_v55 = vld [vmem:[#allocation9 + $0x68] ss:$12 sps:$4 sm:$0xff]  }
 0x3ba   :  { %3042 = vmatprep.subr.bf16.mxu0 %v9877_v16  ;;  %8050 = vmatprep.subr.bf16.mxu1 %v10774_v7 }
 0x3bd   :  { %3043 = vmatpush1.bf16.msra.mxu0 %v9880_v39  ;;  %8051 = vmatpush3.bf16.msra.mxu1 %v8651_v58  ;;  %v9943_v58 = vld [vmem:[#allocation9 + $0x78] ss:$12 sps:$4 sm:$0xff]  }
 0x3be   :  { %3044 = vmatprep.subr.bf16.mxu0 %v9884_v23  ;;  %8052 = vmatprep.subr.bf16.mxu1 %v10774_v7  ;;  %10792 = vst [vmem:[#allocation38_spill] sm:$0xff] %v9943_v58 }
 0x3c1   :  { %v8965_v43 = vpop.eup %8964  ;;  %3045 = vmatpush1.bf16.msra.mxu0 %v9887_v60  ;;  %8053 = vmatpush3.bf16.msra.mxu1 %v8655_v12  ;;  %v8683_v12 = vld [vmem:[#allocation9 + $0x80] ss:$12 sps:$4 sm:$0xff]  }
 0x3c2   :  { %3046 = vmatprep.subr.bf16.mxu0 %v9891_v15  ;;  %8054 = vmatprep.subr.bf16.mxu1 %v10774_v7  ;;  %v2332_v27 = vmul.f32 %v8965_v43, %v2331_v20  ;;  %v9948_v20 = vld [vmem:[#allocation9 + $0x94] ss:$12 sps:$4 sm:$0xff]   ;;  %v9952_v43 = vld [vmem:[#allocation9 + $0x90] ss:$12 sps:$4 sm:$0xff]  }
 0x3c3   :  { %10794 = vst [vmem:[#allocation41_spill] sm:$0xff] %v9948_v20  ;;  %10795 = vst [vmem:[#allocation42_spill] sm:$0xff] %v9952_v43 }
 0x3c4   :  { %v9899_v52 = vadd.f32 %v2333_v2, %v2332_v27  ;;  %v9956_v27 = vld [vmem:[#allocation9 + $0xac] ss:$12 sps:$4 sm:$0xff]   ;;  %v9959_v2 = vld [vmem:[#allocation9 + $0xa8] ss:$12 sps:$4 sm:$0xff]  }
 0x3c5   :  { %3047 = vmatpush1.bf16.msra.mxu0 %v9894_v61  ;;  %8055 = vmatpush3.bf16.msra.mxu1 %v8659_v44  ;;  %v8687_v44 = vld [vmem:[#allocation9 + $0x98] ss:$12 sps:$4 sm:$0xff]   ;;  %10796 = vst [vmem:[#allocation43_spill] sm:$0xff] %v9956_v27  ;;  %10797 = vst [vmem:[#allocation17_spill] sm:$0xff] %v9959_v2 }
 0x3c6   :  { %2335 = vst [vmem:[#allocation10 + $0x8] sm:$0xff] %v9899_v52  ;;  %v2871_v24 = vpack.c.bf16 %v9899_v52, %v9899_v52  ;;  %8060 = vmatprep.subr.bf16.mxu1 %v10774_v7  ;;  %3307 = vmatprep.subr.bf16.mxu0 %v9909_v3 }
 0x3c8   :  { %3065 = vmatmul.mubr.bf16.vlgmr.msra.gmra.mrb[40].mxu0 %v2871_v24  ;;  %8057 = vmatmul.mubr.bf16.vlgmr.msra.gmra.mrb[44].mxu1 %v2871_v24  ;;  %v8691_v24 = vld [vmem:[#allocation9 + $0xb0] ss:$12 sps:$4 sm:$0xff]  }
 0x3c9   :  { %3339 = vmatprep.mubr.bf16.mxu0 %v10775_v47  ;;  %8076 = vmatprep.mubr.msk.bf16.mxu1 %vm9204_vm0, %v10774_v7 }
 0x3ca   :  { %3308 = vmatpush1.bf16.msra.mxu0 %v9911_v10  ;;  %8061 = vmatpush3.bf16.msra.mxu1 %v8663_v30 }
 0x3cb   :  { %8062 = vmatprep.subr.bf16.mxu1 %v10774_v7  ;;  %3309 = vmatprep.subr.bf16.mxu0 %v9915_v37 }
 0x3ce   :  { %3310 = vmatpush1.bf16.msra.mxu0 %v9918_v50  ;;  %8063 = vmatpush3.bf16.msra.mxu1 %v8667_v42 }
 0x3cf   :  { %8064 = vmatprep.subr.bf16.mxu1 %v10774_v7  ;;  %3311 = vmatprep.subr.bf16.mxu0 %v9922_v53 }
 0x3d2   :  { %3312 = vmatpush1.bf16.msra.mxu0 %v9925_v63  ;;  %8065 = vmatpush3.bf16.msra.mxu1 %v8671_v31  ;;  %v10798_v31 = vld [vmem:[#allocation19_spill] sm:$0xff] }
 0x3d3   :  { %8066 = vmatprep.subr.bf16.mxu1 %v10774_v7  ;;  %3313 = vmatprep.subr.bf16.mxu0 %v9929_v40 }
 0x3d6   :  { %3314 = vmatpush1.bf16.msra.mxu0 %v9932_v59  ;;  %8067 = vmatpush3.bf16.msra.mxu1 %v8675_v0 }
 0x3d7   :  { %8068 = vmatprep.subr.bf16.mxu1 %v10774_v7  ;;  %3315 = vmatprep.subr.bf16.mxu0 %v9936_v13 }
 0x3da   :  { %3316 = vmatpush1.bf16.msra.mxu0 %v9939_v49  ;;  %8069 = vmatpush3.bf16.msra.mxu1 %v8679_v55 }
 0x3db   :  { %8070 = vmatprep.subr.bf16.mxu1 %v10774_v7  ;;  %3317 = vmatprep.subr.bf16.mxu0 %v9945_v62 }
 0x3de   :  { %3318 = vmatpush1.bf16.msra.mxu0 %v9943_v58  ;;  %8071 = vmatpush3.bf16.msra.mxu1 %v8683_v12 }
 0x3df   :  { %3319 = vmatprep.subr.bf16.mxu0 %v9948_v20  ;;  %8072 = vmatprep.subr.bf16.mxu1 %v10774_v7 }
 0x3e2   :  { %3320 = vmatpush1.bf16.msra.mxu0 %v9952_v43  ;;  %8073 = vmatpush3.bf16.msra.mxu1 %v8687_v44  ;;  %v10799_v44 = vld [vmem:[#allocation21_spill] sm:$0xff] }
 0x3e3   :  { %3321 = vmatprep.subr.bf16.mxu0 %v9956_v27  ;;  %8074 = vmatprep.subr.bf16.mxu1 %v10774_v7 }
 0x3e6   :  { %3322 = vmatpush1.bf16.msra.mxu0 %v9959_v2  ;;  %8075 = vmatpush3.bf16.msra.mxu1 %v8691_v24 }
 0x3e7   :  { %3597 = vmatprep.subr.bf16.mxu0 %v9741_v57  ;;  %8080 = vmatprep.subr.bf16.mxu1 %v10774_v7 }
 0x45b   :  { %v2534_v30 = vpop.f32.mrb[36].mxu0  ;;  %v2575_v42 = vpop.f32.mrb[36].mxu1 }
 0x45c   :  { %v2581_v0 = vadd.f32 %v2534_v30, %v10798_v31  ;;  %v2536_v55 = vpop.f32.mrb[37].mxu0  ;;  %v8018_v12 = vpop.f32.mrb[37].mxu1  ;;  %v2602_v40 = vadd.f32 %v9752_v17, %v2575_v42  ;;  %v8692_v17 = vld [vmem:[#allocation7 + $0xc8] ss:$12 sps:$4 sm:$0xff]  }
 0x45d   :  { %v2588_v43 = vadd.f32 %v2536_v55, %v10799_v44  ;;  %v2538_v20 = vpop.f32.mrb[38].mxu0  ;;  %v2578_v58 = vpop.f32.mrb[38].mxu1  ;;  %v10800_v12 = vld [vmem:[#allocation22_spill] sm:$0xff] }
 0x45e   :  { %v7179_v27 = vmul.f32 -1.442695, %v2581_v0  ;;  %v2539_v62 = vpop.f32.mrb[39].mxu0  ;;  %v8019_v49 = vpop.f32.mrb[39].mxu1 }
 0x45f   :  { %v7180_v2 = vmul.f32 -1.442695, %v2588_v43 }
 0x460   :  { %8966 = vpow2.f32 %v7179_v27 }
 0x461   :  { %8968 = vpow2.f32 %v7180_v2 }
 0x46a   :  { %v8967_v24 = vpop.eup %8966 }
 0x46b   :  { %v2585_v57 = vadd.f32 1.0, %v8967_v24  ;;  %v8969_v13 = vpop.eup %8968 }
 0x46c   :  { %v2592_v59 = vadd.f32 1.0, %v8969_v13 }
 0x46d   :  { %8970 = vrcp.f32 %v2585_v57 }
 0x46e   :  { %8972 = vrcp.f32 %v2592_v59  ;;  %v8693_v59 = vld [vmem:[#allocation7 + $0xe0] ss:$12 sps:$4 sm:$0xff]  }
 0x477   :  { %v8971_v30 = vpop.eup %8970 }
 0x478   :  { %v2603_v31 = vmul.f32 %v8971_v30, %v2602_v40  ;;  %v8973_v43 = vpop.eup %8972 }
 0x479   :  { %v2606_v27 = vsub.f32 1.0, %v8973_v43  ;;  %v2608_v44 = vmul.f32 %v8973_v43, %v9759_v18  ;;  %v8694_v18 = vld [vmem:[#allocation7 + $0xf8] ss:$12 sps:$4 sm:$0xff]  }
 0x47a   :  { %v2604_v55 = vadd.f32 %v2603_v31, %v10800_v12 }
 0x47b   :  { %v9970_v20 = vpop.f32.mrb[40].mxu1 }
 0x47c   :  { %8974 = vtanh.f32 %v2604_v55  ;;  %v8038_v58 = vpop.f32.mrb[41].mxu1 }
 0x47d   :  { %v2868_v49 = vpop.f32.mrb[42].mxu1 }
 0x47e   :  { %v8039_v62 = vpop.f32.mrb[43].mxu1 }
 0x486   :  { %v8975_v2 = vpop.eup %8974 }
 0x487   :  { %v2607_v0 = vmul.f32 %v8975_v2, %v2606_v27 }
 0x489   :  { %v9973_v13 = vadd.f32 %v2608_v44, %v2607_v0 }
 0x48b   :  { %v9977_v40 = vpack.c.bf16 %v9973_v13, %v9973_v13 }
 0x48d   :  { %3340 = vmatmul.mubr.bf16.vlgmr.msra.gmra.mrb[44].mxu0 %v9977_v40  ;;  %8077 = vmatmul.mubr.bf16.vlgmr.msra.gmra.mrb[48].mxu1 %v9977_v40 }
 0x48e   :  { %3598 = vmatpush1.bf16.msra.mxu0 %v9761_v26  ;;  %8081 = vmatpush3.bf16.msra.mxu1 %v8692_v17  ;;  %v8695_v26 = vld [vmem:[#allocation7 + $0x110] ss:$12 sps:$4 sm:$0xff]   ;;  %v8704_v17 = vld [vmem:[#allocation9 + $0x128] ss:$12 sps:$4 sm:$0xff]  }
 0x48f   :  { %3599 = vmatprep.subr.bf16.mxu0 %v9767_v21  ;;  %8082 = vmatprep.subr.bf16.mxu1 %v10774_v7  ;;  %v9994_v21 = vld [vmem:[%s10710_s4 + $0x3] sm:$0x7] }
 0x490   :  { %3629 = vmatprep.mubr.bf16.mxu0 %v10775_v47  ;;  %8096 = vmatprep.mubr.msk.bf16.mxu1 %vm9204_vm0, %v10774_v7  ;;  %v2654_v24 = vrot.slane %v9994_v21, %v9375_v6 }
 0x492   :  { %3600 = vmatpush1.bf16.msra.mxu0 %v9772_v8  ;;  %8083 = vmatpush3.bf16.msra.mxu1 %v8693_v59  ;;  %v2650_v8 = vrot.slane %v9994_v21, %v9370_v4  ;;  %v10808_v59 = vld [vmem:[#allocation42_spill] sm:$0xff] }
 0x493   :  { %3601 = vmatprep.subr.bf16.mxu0 %v9776_v34  ;;  %8084 = vmatprep.subr.bf16.mxu1 %v10774_v7  ;;  %v8696_v34 = vld [vmem:[#allocation7 + $0x128] ss:$12 sps:$4 sm:$0xff]  }
 0x496   :  { %3602 = vmatpush1.bf16.msra.mxu0 %v9782_v46  ;;  %8085 = vmatpush3.bf16.msra.mxu1 %v8694_v18  ;;  %v8709_v18 = vld [vmem:[#allocation9 + $0x20] ss:$12 sps:$4 sm:$0xff]  }
 0x497   :  { %3603 = vmatprep.subr.bf16.mxu0 %v9786_v51  ;;  %8086 = vmatprep.subr.bf16.mxu1 %v10774_v7 }
 0x49a   :  { %3604 = vmatpush1.bf16.msra.mxu0 %v9789_v28  ;;  %8087 = vmatpush3.bf16.msra.mxu1 %v8695_v26  ;;  %v8697_v28 = vld [vmem:[#allocation7 + $0x140] ss:$12 sps:$4 sm:$0xff]   ;;  %v8710_v26 = vld [vmem:[#allocation9 + $0x38] ss:$12 sps:$4 sm:$0xff]  }
 0x49b   :  { %v3066_v42 = vpop.f32.mrb[40].mxu0  ;;  %v3107_v46 = vpop.f32.mrb[44].mxu1  ;;  %3605 = vmatprep.subr.bf16.mxu0 %v9798_v54  ;;  %8088 = vmatprep.subr.bf16.mxu1 %v10774_v7  ;;  %v8698_v54 = vld [vmem:[#allocation7 + $0x158] ss:$12 sps:$4 sm:$0xff]  }
 0x49c   :  { %v8344_v57 = vadd.f32 %v3066_v42, %v2650_v8  ;;  %v3068_v51 = vpop.f32.mrb[41].mxu0  ;;  %v8058_v30 = vpop.f32.mrb[45].mxu1  ;;  %v8712_v8 = vld [vmem:[#allocation9 + $0x68] ss:$12 sps:$4 sm:$0xff]   ;;  %v10084_v42 = vld [vmem:[#allocation7 + $0xc4] ss:$12 sps:$4 sm:$0xff]  }
 0x49d   :  { %v3070_v31 = vpop.f32.mrb[42].mxu0  ;;  %v3110_v12 = vpop.f32.mrb[46].mxu1  ;;  %v8345_v62 = vadd.f32 %v3068_v51, %v2654_v24  ;;  %v8715_v24 = vld [vmem:[#allocation9 + $0xb0] ss:$12 sps:$4 sm:$0xff]   ;;  %v10811_v30 = vld [vmem:[#allocation23_spill] sm:$0xff] }
 0x49e   :  { %v7231_v55 = vmul.f32 -1.442695, %v8344_v57  ;;  %v3071_v58 = vpop.f32.mrb[43].mxu0  ;;  %v8059_v49 = vpop.f32.mrb[47].mxu1  ;;  %3606 = vmatpush1.bf16.msra.mxu0 %v9803_v56  ;;  %8089 = vmatpush3.bf16.msra.mxu1 %v8696_v34  ;;  %v8699_v56 = vld [vmem:[#allocation7 + $0x170] ss:$12 sps:$4 sm:$0xff]  }
 0x49f   :  { %3607 = vmatprep.subr.bf16.mxu0 %v9811_v29  ;;  %8090 = vmatprep.subr.bf16.mxu1 %v10774_v7  ;;  %v7232_v43 = vmul.f32 -1.442695, %v8345_v62  ;;  %v8713_v34 = vld [vmem:[#allocation9 + $0x80] ss:$12 sps:$4 sm:$0xff]  }
 0x4a0   :  { %8976 = vpow2.f32 %v7231_v55  ;;  %v10812_v58 = vld [vmem:[#allocation24_spill] sm:$0xff] }
 0x4a1   :  { %8978 = vpow2.f32 %v7232_v43 }
 0x4a2   :  { %3608 = vmatpush1.bf16.msra.mxu0 %v9813_v35  ;;  %8091 = vmatpush3.bf16.msra.mxu1 %v8697_v28  ;;  %v8700_v35 = vld [vmem:[#allocation9 + $0xc8] ss:$12 sps:$4 sm:$0xff]  }
 0x4a3   :  { %3609 = vmatprep.subr.bf16.mxu0 %v9818_v33  ;;  %8092 = vmatprep.subr.bf16.mxu1 %v10774_v7  ;;  %v8701_v33 = vld [vmem:[#allocation9 + $0xe0] ss:$12 sps:$4 sm:$0xff]  }
 0x4a6   :  { %3610 = vmatpush1.bf16.msra.mxu0 %v9821_v1  ;;  %8093 = vmatpush3.bf16.msra.mxu1 %v8698_v54 }
 0x4a7   :  { %3611 = vmatprep.subr.bf16.mxu0 %v9825_v5  ;;  %8094 = vmatprep.subr.bf16.mxu1 %v10774_v7  ;;  %v8702_v5 = vld [vmem:[#allocation9 + $0xf8] ss:$12 sps:$4 sm:$0xff]  }
 0x4aa   :  { %v8977_v29 = vpop.eup %8976  ;;  %3612 = vmatpush1.bf16.msra.mxu0 %v9828_v11  ;;  %8095 = vmatpush3.bf16.msra.mxu1 %v8699_v56  ;;  %v10029_v11 = vld [vmem:[%s10711_s5 + $0x1] ss:$0 sm:$0xff] }
 0x4ab   :  { %v3117_v27 = vadd.f32 1.0, %v8977_v29  ;;  %3839 = vmatprep.subr.bf16.mxu0 %v9832_v19  ;;  %8100 = vmatprep.subr.bf16.mxu1 %v10774_v7  ;;  %v8979_v1 = vpop.eup %8978  ;;  %v2658_v19 = vrot.slane %v9994_v21, %v9381_v14  ;;  %v8711_v21 = vld [vmem:[#allocation9 + $0x50] ss:$12 sps:$4 sm:$0xff]  }
 0x4ad   :  { %8980 = vrcp.f32 %v3117_v27  ;;  %3630 = vmatmul.mubr.bf16.vlgmr.msra.gmra.mrb[48].mxu0 %v9977_v40  ;;  %8097 = vmatmul.mubr.bf16.vlgmr.msra.gmra.mrb[52].mxu1 %v9977_v40  ;;  %v2866_v0 = vadd.f32 %v9970_v20, %v2658_v19 }
 0x4ae   :  { %3840 = vmatpush1.bf16.msra.mxu0 %v9835_v9  ;;  %8101 = vmatpush3.bf16.msra.mxu1 %v8700_v35  ;;  %v3124_v9 = vadd.f32 1.0, %v8979_v1  ;;  %v10095_v1 = vld [vmem:[%s10711_s5] ss:$0 sm:$0xff] }
 0x4af   :  { %3841 = vmatprep.subr.bf16.mxu0 %v9839_v48  ;;  %8102 = vmatprep.subr.bf16.mxu1 %v10774_v7  ;;  %v3134_v48 = vadd.f32 %v10029_v11, %v3107_v46  ;;  %v8714_v46 = vld [vmem:[#allocation9 + $0x98] ss:$12 sps:$4 sm:$0xff]  }
 0x4b0   :  { %3871 = vmatprep.mubr.bf16.mxu0 %v10775_v47  ;;  %8116 = vmatprep.mubr.msk.bf16.mxu1 %vm9204_vm0, %v10774_v7  ;;  %8982 = vrcp.f32 %v3124_v9 }
 0x4b2   :  { %3842 = vmatpush1.bf16.msra.mxu0 %v9844_v32  ;;  %8103 = vmatpush3.bf16.msra.mxu1 %v8701_v33  ;;  %v8703_v32 = vld [vmem:[#allocation9 + $0x110] ss:$12 sps:$4 sm:$0xff]  }
 0x4b3   :  { %3843 = vmatprep.subr.bf16.mxu0 %v9848_v25  ;;  %8104 = vmatprep.subr.bf16.mxu1 %v10774_v7 }
 0x4b6   :  { %3844 = vmatpush1.bf16.msra.mxu0 %v9854_v38  ;;  %8105 = vmatpush3.bf16.msra.mxu1 %v8702_v5  ;;  %v8705_v38 = vld [vmem:[#allocation9 + $0x140] ss:$12 sps:$4 sm:$0xff]  }
 0x4b7   :  { %v8981_v2 = vpop.eup %8980  ;;  %3845 = vmatprep.subr.bf16.mxu0 %v9858_v45  ;;  %8106 = vmatprep.subr.bf16.mxu1 %v10774_v7 }
 0x4b8   :  { %v3135_v25 = vmul.f32 %v8981_v2, %v3134_v48 }
 0x4ba   :  { %v3136_v44 = vadd.f32 %v3135_v25, %v2866_v0  ;;  %3846 = vmatpush1.bf16.msra.mxu0 %v9865_v36  ;;  %8107 = vmatpush3.bf16.msra.mxu1 %v8703_v32  ;;  %v8983_v45 = vpop.eup %8982  ;;  %v8706_v36 = vld [vmem:[#allocation9 + $0x158] ss:$12 sps:$4 sm:$0xff]   ;;  %v10813_v32 = vld [vmem:[#allocation28_spill] sm:$0xff] }
 0x4bb   :  { %3847 = vmatprep.subr.bf16.mxu0 %v9869_v41  ;;  %8108 = vmatprep.subr.bf16.mxu1 %v10774_v7  ;;  %v3138_v41 = vsub.f32 1.0, %v8983_v45  ;;  %v3140_v40 = vmul.f32 %v8983_v45, %v9899_v52  ;;  %v10804_v52 = vld [vmem:[#allocation39_spill] sm:$0xff] }
 0x4bc   :  { %8984 = vtanh.f32 %v3136_v44 }
 0x4be   :  { %3848 = vmatpush1.bf16.msra.mxu0 %v9873_v22  ;;  %8109 = vmatpush3.bf16.msra.mxu1 %v8704_v17  ;;  %v8707_v22 = vld [vmem:[#allocation9 + $0x170] ss:$12 sps:$4 sm:$0xff]  }
 0x4bf   :  { %3849 = vmatprep.subr.bf16.mxu0 %v9877_v16  ;;  %8110 = vmatprep.subr.bf16.mxu1 %v10774_v7 }
 0x4c2   :  { %3850 = vmatpush1.bf16.msra.mxu0 %v9880_v39  ;;  %8111 = vmatpush3.bf16.msra.mxu1 %v8705_v38 }
 0x4c3   :  { %3851 = vmatprep.subr.bf16.mxu0 %v9884_v23  ;;  %8112 = vmatprep.subr.bf16.mxu1 %v10774_v7 }
 0x4c6   :  { %v8985_v20 = vpop.eup %8984  ;;  %3852 = vmatpush1.bf16.msra.mxu0 %v9887_v60  ;;  %8113 = vmatpush3.bf16.msra.mxu1 %v8706_v36  ;;  %v10801_v60 = vld [vmem:[#allocation35_spill] sm:$0xff] }
 0x4c7   :  { %3853 = vmatprep.subr.bf16.mxu0 %v9891_v15  ;;  %8114 = vmatprep.subr.bf16.mxu1 %v10774_v7  ;;  %v3139_v16 = vmul.f32 %v8985_v20, %v3138_v41  ;;  %v10802_v15 = vld [vmem:[#allocation36_spill] sm:$0xff] }
 0x4c9   :  { %v10053_v39 = vadd.f32 %v3140_v40, %v3139_v16  ;;  %v10104_v16 = vld [vmem:[#allocation7 + $0xc0] ss:$12 sps:$4 sm:$0xff]   ;;  %v8719_v40 = vld [vmem:[#allocation7 + $0xc8] ss:$12 sps:$4 sm:$0xff]  }
 0x4ca   :  { %3854 = vmatpush1.bf16.msra.mxu0 %v9894_v61  ;;  %8115 = vmatpush3.bf16.msra.mxu1 %v8707_v22  ;;  %v10803_v61 = vld [vmem:[#allocation37_spill] sm:$0xff] }
 0x4cb   :  { %3142 = vst [vmem:[#allocation10 + $0x10] sm:$0xff] %v10053_v39  ;;  %v3678_v23 = vpack.c.bf16 %v10053_v39, %v10053_v39  ;;  %4114 = vmatprep.subr.bf16.mxu0 %v9909_v3  ;;  %8120 = vmatprep.subr.bf16.mxu1 %v10774_v7  ;;  %v10805_v3 = vld [vmem:[#allocation40_spill] sm:$0xff] }
 0x4cd   :  { %3872 = vmatmul.mubr.bf16.vlgmr.msra.gmra.mrb[48].mxu0 %v3678_v23  ;;  %8117 = vmatmul.mubr.bf16.vlgmr.msra.gmra.mrb[56].mxu1 %v3678_v23 }
 0x4ce   :  { %4115 = vmatpush1.bf16.msra.mxu0 %v9911_v10  ;;  %4146 = vmatprep.mubr.bf16.mxu0 %v10775_v47  ;;  %v10806_v10 = vld [vmem:[#allocation38_spill] sm:$0xff] }
 0x4cf   :  { %4116 = vmatprep.subr.bf16.mxu0 %v9915_v37  ;;  %8136 = vmatprep.mubr.msk.bf16.mxu1 %vm9204_vm0, %v10774_v7  ;;  %v10807_v37 = vld [vmem:[#allocation41_spill] sm:$0xff] }
 0x4d2   :  { %4117 = vmatpush1.bf16.msra.mxu0 %v9918_v50  ;;  %v10809_v50 = vld [vmem:[#allocation43_spill] sm:$0xff] }
 0x4d3   :  { %4118 = vmatprep.subr.bf16.mxu0 %v9922_v53  ;;  %v10810_v53 = vld [vmem:[#allocation17_spill] sm:$0xff] }
 0x4d6   :  { %4119 = vmatpush1.bf16.msra.mxu0 %v9925_v63  ;;  %v8708_v63 = vld [vmem:[#allocation9 + $0x8] ss:$12 sps:$4 sm:$0xff]  }
 0x4d7   :  { %4120 = vmatprep.subr.bf16.mxu0 %v10801_v60  ;;  %8121 = vmatpush3.bf16.msra.mxu1 %v8708_v63  ;;  %v10110_v60 = vld [vmem:[#allocation7 + $0xdc] ss:$12 sps:$4 sm:$0xff]  }
 0x4d8   :  { %8122 = vmatprep.subr.bf16.mxu1 %v10774_v7 }
 0x4da   :  { %4121 = vmatpush1.bf16.msra.mxu0 %v10802_v15  ;;  %v10115_v15 = vld [vmem:[#allocation7 + $0xd8] ss:$12 sps:$4 sm:$0xff]  }
 0x4db   :  { %4122 = vmatprep.subr.bf16.mxu0 %v10803_v61  ;;  %8123 = vmatpush3.bf16.msra.mxu1 %v8709_v18  ;;  %v10119_v61 = vld [vmem:[#allocation7 + $0xf4] ss:$12 sps:$4 sm:$0xff]  }
 0x4dc   :  { %8124 = vmatprep.subr.bf16.mxu1 %v10774_v7  ;;  %v10146_v18 = vld [vmem:[#allocation7 + $0x120] ss:$12 sps:$4 sm:$0xff]  }
 0x4de   :  { %4123 = vmatpush1.bf16.msra.mxu0 %v10804_v52  ;;  %v10125_v52 = vld [vmem:[#allocation7 + $0xf0] ss:$12 sps:$4 sm:$0xff]  }
 0x4df   :  { %4124 = vmatprep.subr.bf16.mxu0 %v10805_v3  ;;  %8125 = vmatpush3.bf16.msra.mxu1 %v8710_v26  ;;  %v8727_v3 = vld [vmem:[#allocation7 + $0xf8] ss:$12 sps:$4 sm:$0xff]   ;;  %v8735_v26 = vld [vmem:[#allocation7 + $0x128] ss:$12 sps:$4 sm:$0xff]  }
 0x4e0   :  { %8126 = vmatprep.subr.bf16.mxu1 %v10774_v7 }
 0x4e2   :  { %4125 = vmatpush1.bf16.msra.mxu0 %v10806_v10  ;;  %v10129_v10 = vld [vmem:[#allocation7 + $0x10c] ss:$12 sps:$4 sm:$0xff]  }
 0x4e3   :  { %4126 = vmatprep.subr.bf16.mxu0 %v10807_v37  ;;  %8127 = vmatpush3.bf16.msra.mxu1 %v8711_v21  ;;  %v10132_v37 = vld [vmem:[#allocation7 + $0x108] ss:$12 sps:$4 sm:$0xff]  }
 0x4e4   :  { %8128 = vmatprep.subr.bf16.mxu1 %v10774_v7 }
 0x4e6   :  { %4127 = vmatpush1.bf16.msra.mxu0 %v10808_v59  ;;  %v8731_v59 = vld [vmem:[#allocation7 + $0x110] ss:$12 sps:$4 sm:$0xff]  }
 0x4e7   :  { %4128 = vmatprep.subr.bf16.mxu0 %v10809_v50  ;;  %8129 = vmatpush3.bf16.msra.mxu1 %v8712_v8  ;;  %v10137_v50 = vld [vmem:[%s10710_s4 + $0x3] sm:$0x7] }
 0x4e8   :  { %8130 = vmatprep.subr.bf16.mxu1 %v10774_v7  ;;  %v3457_v63 = vrot.slane %v10137_v50, %v9370_v4 }
 0x4ea   :  { %4129 = vmatpush1.bf16.msra.mxu0 %v10810_v53  ;;  %v10141_v53 = vld [vmem:[#allocation7 + $0x124] ss:$12 sps:$4 sm:$0xff]  }
 0x4eb   :  { %4404 = vmatprep.subr.bf16.mxu0 %v10084_v42  ;;  %8131 = vmatpush3.bf16.msra.mxu1 %v8713_v34  ;;  %v3461_v34 = vrot.slane %v10137_v50, %v9375_v6 }
 0x4ec   :  { %8132 = vmatprep.subr.bf16.mxu1 %v10774_v7 }
 0x4ef   :  { %8133 = vmatpush3.bf16.msra.mxu1 %v8714_v46  ;;  %v10154_v46 = vld [vmem:[#allocation7 + $0x13c] ss:$12 sps:$4 sm:$0xff]  }
 0x4f0   :  { %8134 = vmatprep.subr.bf16.mxu1 %v10774_v7 }
 0x4f3   :  { %8135 = vmatpush3.bf16.msra.mxu1 %v8715_v24 }
 0x4f4   :  { %8140 = vmatprep.subr.bf16.mxu1 %v10774_v7 }
 0x560   :  { %v3341_v57 = vpop.f32.mrb[44].mxu0  ;;  %v3382_v51 = vpop.f32.mrb[48].mxu1 }
 0x561   :  { %v3388_v31 = vadd.f32 %v3341_v57, %v10811_v30  ;;  %v3343_v12 = vpop.f32.mrb[45].mxu0  ;;  %v8078_v55 = vpop.f32.mrb[49].mxu1  ;;  %v3409_v19 = vadd.f32 %v10095_v1, %v3382_v51 }
 0x562   :  { %v3395_v49 = vadd.f32 %v3343_v12, %v10812_v58  ;;  %v3345_v28 = vpop.f32.mrb[46].mxu0  ;;  %v3385_v62 = vpop.f32.mrb[50].mxu1  ;;  %v10156_v12 = vld [vmem:[#allocation7 + $0x138] ss:$12 sps:$4 sm:$0xff]  }
 0x563   :  { %v7259_v54 = vmul.f32 -1.442695, %v3388_v31  ;;  %v3346_v43 = vpop.f32.mrb[47].mxu0  ;;  %v8079_v56 = vpop.f32.mrb[51].mxu1  ;;  %v8739_v28 = vld [vmem:[#allocation7 + $0x140] ss:$12 sps:$4 sm:$0xff]  }
 0x564   :  { %v7260_v29 = vmul.f32 -1.442695, %v3395_v49  ;;  %v10164_v43 = vld [vmem:[#allocation7 + $0x150] ss:$12 sps:$4 sm:$0xff]   ;;  %v8743_v56 = vld [vmem:[#allocation7 + $0x158] ss:$12 sps:$4 sm:$0xff]  }
 0x565   :  { %8986 = vpow2.f32 %v7259_v54  ;;  %v10161_v54 = vld [vmem:[#allocation7 + $0x154] ss:$12 sps:$4 sm:$0xff]  }
 0x566   :  { %8988 = vpow2.f32 %v7260_v29 }
 0x56f   :  { %v8987_v35 = vpop.eup %8986 }
 0x570   :  { %v3392_v27 = vadd.f32 1.0, %v8987_v35  ;;  %v8989_v33 = vpop.eup %8988  ;;  %v10168_v35 = vld [vmem:[#allocation7 + $0x16c] ss:$12 sps:$4 sm:$0xff]  }
 0x571   :  { %v3399_v5 = vadd.f32 1.0, %v8989_v33  ;;  %v8747_v33 = vld [vmem:[#allocation7 + $0x170] ss:$12 sps:$4 sm:$0xff]  }
 0x572   :  { %8990 = vrcp.f32 %v3392_v27  ;;  %v10171_v27 = vld [vmem:[#allocation7 + $0x168] ss:$12 sps:$4 sm:$0xff]  }
 0x573   :  { %8992 = vrcp.f32 %v3399_v5  ;;  %v10175_v5 = vld [vmem:[#allocation9 + $0xc4] ss:$12 sps:$4 sm:$0xff]  }
 0x57c   :  { %v8991_v9 = vpop.eup %8990 }
 0x57d   :  { %v3410_v48 = vmul.f32 %v8991_v9, %v3409_v19  ;;  %v8993_v38 = vpop.eup %8992  ;;  %v10178_v9 = vld [vmem:[#allocation9 + $0xc0] ss:$12 sps:$4 sm:$0xff]  }
 0x57e   :  { %v3413_v45 = vsub.f32 1.0, %v8993_v38  ;;  %v3415_v20 = vmul.f32 %v8993_v38, %v9973_v13  ;;  %v8723_v13 = vld [vmem:[#allocation7 + $0xe0] ss:$12 sps:$4 sm:$0xff]  }
 0x57f   :  { %v3411_v2 = vadd.f32 %v3410_v48, %v10813_v32  ;;  %v8751_v48 = vld [vmem:[#allocation9 + $0xc8] ss:$12 sps:$4 sm:$0xff]  }
 0x580   :  { %v10099_v0 = vpop.f32.mrb[52].mxu1 }
 0x581   :  { %8994 = vtanh.f32 %v3411_v2  ;;  %v8098_v25 = vpop.f32.mrb[53].mxu1  ;;  %v10182_v2 = vld [vmem:[#allocation9 + $0xdc] ss:$12 sps:$4 sm:$0xff]  }
 0x582   :  { %v3675_v44 = vpop.f32.mrb[54].mxu1  ;;  %v10187_v25 = vld [vmem:[#allocation9 + $0xd8] ss:$12 sps:$4 sm:$0xff]  }
 0x583   :  { %v8099_v17 = vpop.f32.mrb[55].mxu1  ;;  %v8755_v44 = vld [vmem:[#allocation9 + $0xe0] ss:$12 sps:$4 sm:$0xff]  }
 0x584   :  { %v10191_v17 = vld [vmem:[#allocation9 + $0xf4] ss:$12 sps:$4 sm:$0xff]  }
 0x58b   :  { %v8995_v36 = vpop.eup %8994 }
 0x58c   :  { %v3414_v41 = vmul.f32 %v8995_v36, %v3413_v45  ;;  %v10197_v45 = vld [vmem:[#allocation9 + $0xf0] ss:$12 sps:$4 sm:$0xff]   ;;  %v8759_v36 = vld [vmem:[#allocation9 + $0xf8] ss:$12 sps:$4 sm:$0xff]  }
 0x58e   :  { %v10102_v22 = vadd.f32 %v3415_v20, %v3414_v41  ;;  %v10201_v41 = vld [vmem:[#allocation9 + $0x10c] ss:$12 sps:$4 sm:$0xff]   ;;  %v3465_v20 = vrot.slane %v10137_v50, %v9381_v14 }
 0x590   :  { %v10108_v23 = vpack.c.bf16 %v10102_v22, %v10102_v22 }
 0x592   :  { %4147 = vmatmul.mubr.bf16.vlgmr.msra.gmra.mrb[52].mxu0 %v10108_v23  ;;  %8137 = vmatmul.mubr.bf16.vlgmr.msra.gmra.mrb[60].mxu1 %v10108_v23 }
 0x593   :  { %4405 = vmatpush1.bf16.msra.mxu0 %v10104_v16  ;;  %8141 = vmatpush3.bf16.msra.mxu1 %v8719_v40 }
 0x594   :  { %4406 = vmatprep.subr.bf16.mxu0 %v10110_v60  ;;  %8142 = vmatprep.subr.bf16.mxu1 %v10774_v7 }
 0x595   :  { %4436 = vmatprep.mubr.bf16.mxu0 %v10775_v47  ;;  %8156 = vmatprep.mubr.msk.bf16.mxu1 %vm9204_vm0, %v10774_v7 }
 0x597   :  { %4407 = vmatpush1.bf16.msra.mxu0 %v10115_v15  ;;  %8143 = vmatpush3.bf16.msra.mxu1 %v8723_v13  ;;  %v10208_v13 = vld [vmem:[#allocation9 + $0x108] ss:$12 sps:$4 sm:$0xff]  }
 0x598   :  { %4408 = vmatprep.subr.bf16.mxu0 %v10119_v61  ;;  %8144 = vmatprep.subr.bf16.mxu1 %v10774_v7 }
 0x59b   :  { %4409 = vmatpush1.bf16.msra.mxu0 %v10125_v52  ;;  %8145 = vmatpush3.bf16.msra.mxu1 %v8727_v3  ;;  %v8763_v3 = vld [vmem:[#allocation9 + $0x110] ss:$12 sps:$4 sm:$0xff]  }
 0x59c   :  { %4410 = vmatprep.subr.bf16.mxu0 %v10129_v10  ;;  %8146 = vmatprep.subr.bf16.mxu1 %v10774_v7 }
 0x59f   :  { %4411 = vmatpush1.bf16.msra.mxu0 %v10132_v37  ;;  %8147 = vmatpush3.bf16.msra.mxu1 %v8731_v59 }
 0x5a0   :  { %v3873_v21 = vpop.f32.mrb[48].mxu0  ;;  %v10148_v8 = vpop.f32.mrb[56].mxu1  ;;  %4412 = vmatprep.subr.bf16.mxu0 %v10141_v53  ;;  %8148 = vmatprep.subr.bf16.mxu1 %v10774_v7 }
 0x5a1   :  { %v8346_v24 = vadd.f32 %v3873_v21, %v3457_v63  ;;  %v3875_v57 = vpop.f32.mrb[49].mxu0  ;;  %v8118_v51 = vpop.f32.mrb[57].mxu1  ;;  %v10212_v63 = vld [vmem:[#allocation9 + $0x124] ss:$12 sps:$4 sm:$0xff]  }
 0x5a2   :  { %v3877_v30 = vpop.f32.mrb[50].mxu0  ;;  %v3917_v31 = vpop.f32.mrb[58].mxu1  ;;  %v8347_v62 = vadd.f32 %v3875_v57, %v3461_v34  ;;  %v10220_v34 = vld [vmem:[#allocation9 + $0x13c] ss:$12 sps:$4 sm:$0xff]   ;;  %v10227_v57 = vld [vmem:[#allocation9 + $0x154] ss:$12 sps:$4 sm:$0xff]  }
 0x5a3   :  { %v7311_v55 = vmul.f32 -1.442695, %v8346_v24  ;;  %v3878_v58 = vpop.f32.mrb[51].mxu0  ;;  %v8119_v49 = vpop.f32.mrb[59].mxu1  ;;  %4413 = vmatpush1.bf16.msra.mxu0 %v10146_v18  ;;  %8149 = vmatpush3.bf16.msra.mxu1 %v8735_v26  ;;  %v3673_v26 = vadd.f32 %v10099_v0, %v3465_v20  ;;  %v10223_v0 = vld [vmem:[#allocation9 + $0x138] ss:$12 sps:$4 sm:$0xff]  }
 0x5a4   :  { %4414 = vmatprep.subr.bf16.mxu0 %v10154_v46  ;;  %8150 = vmatprep.subr.bf16.mxu1 %v10774_v7  ;;  %v7312_v29 = vmul.f32 -1.442695, %v8347_v62  ;;  %v8771_v24 = vld [vmem:[#allocation9 + $0x140] ss:$12 sps:$4 sm:$0xff]   ;;  %v10230_v30 = vld [vmem:[#allocation9 + $0x150] ss:$12 sps:$4 sm:$0xff]  }
 0x5a5   :  { %8996 = vpow2.f32 %v7311_v55  ;;  %v8775_v31 = vld [vmem:[#allocation9 + $0x158] ss:$12 sps:$4 sm:$0xff]   ;;  %v8779_v62 = vld [vmem:[#allocation9 + $0x170] ss:$12 sps:$4 sm:$0xff]   ;;  %v10265_v20 = vld [vmem:[#allocation9 + $0x34] ss:$12 sps:$4 sm:$0xff]  }
 0x5a6   :  { %8998 = vpow2.f32 %v7312_v29  ;;  %v10234_v55 = vld [vmem:[#allocation9 + $0x16c] ss:$12 sps:$4 sm:$0xff]  }
 0x5a7   :  { %4415 = vmatpush1.bf16.msra.mxu0 %v10156_v12  ;;  %8151 = vmatpush3.bf16.msra.mxu1 %v8739_v28  ;;  %v10237_v28 = vld [vmem:[#allocation9 + $0x168] ss:$12 sps:$4 sm:$0xff]  }
 0x5a8   :  { %4416 = vmatprep.subr.bf16.mxu0 %v10161_v54  ;;  %8152 = vmatprep.subr.bf16.mxu1 %v10774_v7 }
 0x5ab   :  { %4417 = vmatpush1.bf16.msra.mxu0 %v10164_v43  ;;  %8153 = vmatpush3.bf16.msra.mxu1 %v8743_v56 }
 0x5ac   :  { %4418 = vmatprep.subr.bf16.mxu0 %v10168_v35  ;;  %8154 = vmatprep.subr.bf16.mxu1 %v10774_v7 }
 0x5af   :  { %v8997_v19 = vpop.eup %8996  ;;  %4419 = vmatpush1.bf16.msra.mxu0 %v10171_v27  ;;  %8155 = vmatpush3.bf16.msra.mxu1 %v8747_v33 }
 0x5b0   :  { %v3924_v32 = vadd.f32 1.0, %v8997_v19  ;;  %4646 = vmatprep.subr.bf16.mxu0 %v10175_v5  ;;  %8160 = vmatprep.subr.bf16.mxu1 %v10774_v7  ;;  %v8999_v38 = vpop.eup %8998 }
 0x5b1   :  { %v3931_v40 = vadd.f32 1.0, %v8999_v38  ;;  %v10261_v38 = vld [vmem:[#allocation9 + $0x18] ss:$12 sps:$4 sm:$0xff]  }
 0x5b2   :  { %9000 = vrcp.f32 %v3924_v32  ;;  %4437 = vmatmul.mubr.bf16.vlgmr.msra.gmra.mrb[56].mxu0 %v10108_v23  ;;  %8157 = vmatmul.mubr.bf16.vlgmr.msra.gmra.mrb[64].mxu1 %v10108_v23  ;;  %v3941_v23 = vadd.f32 %v10029_v11, %v10148_v8  ;;  %v10216_v11 = vld [vmem:[#allocation9 + $0x120] ss:$12 sps:$4 sm:$0xff]   ;;  %v8767_v8 = vld [vmem:[#allocation9 + $0x128] ss:$12 sps:$4 sm:$0xff]  }
 0x5b3   :  { %4647 = vmatpush1.bf16.msra.mxu0 %v10178_v9  ;;  %8161 = vmatpush3.bf16.msra.mxu1 %v8751_v48  ;;  %9002 = vrcp.f32 %v3931_v40  ;;  %v10254_v48 = vld [vmem:[#allocation9] ss:$12 sps:$4 sm:$0xff]   ;;  %v8783_v32 = vld [vmem:[#allocation9 + $0x8] ss:$12 sps:$4 sm:$0xff]   ;;  %v10268_v40 = vld [vmem:[#allocation9 + $0x30] ss:$12 sps:$4 sm:$0xff]  }
 0x5b4   :  { %4648 = vmatprep.subr.bf16.mxu0 %v10182_v2  ;;  %8162 = vmatprep.subr.bf16.mxu1 %v10774_v7 }
 0x5b5   :  { %4678 = vmatprep.mubr.bf16.mxu0 %v10775_v47  ;;  %8176 = vmatprep.mubr.msk.bf16.mxu1 %vm9204_vm0, %v10774_v7 }
 0x5b7   :  { %4649 = vmatpush1.bf16.msra.mxu0 %v10187_v25  ;;  %8163 = vmatpush3.bf16.msra.mxu1 %v8755_v44  ;;  %v10258_v44 = vld [vmem:[#allocation9 + $0x1c] ss:$12 sps:$4 sm:$0xff]  }
 0x5b8   :  { %4650 = vmatprep.subr.bf16.mxu0 %v10191_v17  ;;  %8164 = vmatprep.subr.bf16.mxu1 %v10774_v7 }
 0x5bb   :  { %4651 = vmatpush1.bf16.msra.mxu0 %v10197_v45  ;;  %8165 = vmatpush3.bf16.msra.mxu1 %v8759_v36  ;;  %v8787_v36 = vld [vmem:[#allocation9 + $0x20] ss:$12 sps:$4 sm:$0xff]  }
 0x5bc   :  { %v9001_v59 = vpop.eup %9000  ;;  %4652 = vmatprep.subr.bf16.mxu0 %v10201_v41  ;;  %8166 = vmatprep.subr.bf16.mxu1 %v10774_v7 }
 0x5bd   :  { %v3942_v50 = vmul.f32 %v9001_v59, %v3941_v23  ;;  %v9003_v51 = vpop.eup %9002  ;;  %v8791_v23 = vld [vmem:[#allocation9 + $0x38] ss:$12 sps:$4 sm:$0xff]   ;;  %v10275_v59 = vld [vmem:[#allocation9 + $0x48] ss:$12 sps:$4 sm:$0xff]  }
 0x5be   :  { %v3945_v58 = vsub.f32 1.0, %v9003_v51  ;;  %v3947_v29 = vmul.f32 %v9003_v51, %v10053_v39  ;;  %v10252_v39 = vld [vmem:[#allocation9 + $0x4] ss:$12 sps:$4 sm:$0xff]   ;;  %10815 = vst [vmem:[#allocation20_spill] sm:$0xff] %v10275_v59  ;;  %v10288_v51 = vld [vmem:[#allocation9 + $0x7c] ss:$12 sps:$4 sm:$0xff]  }
 0x5bf   :  { %v3943_v21 = vadd.f32 %v3942_v50, %v3673_v26  ;;  %4653 = vmatpush1.bf16.msra.mxu0 %v10208_v13  ;;  %8167 = vmatpush3.bf16.msra.mxu1 %v8763_v3  ;;  %v10272_v3 = vld [vmem:[#allocation9 + $0x4c] ss:$12 sps:$4 sm:$0xff]   ;;  %v8795_v26 = vld [vmem:[#allocation9 + $0x50] ss:$12 sps:$4 sm:$0xff]   ;;  %10819 = vst [vmem:[#allocation35_spill] sm:$0xff] %v10288_v51 }
 0x5c0   :  { %4654 = vmatprep.subr.bf16.mxu0 %v10212_v63  ;;  %8168 = vmatprep.subr.bf16.mxu1 %v10774_v7  ;;  %10814 = vst [vmem:[#allocation18_spill] sm:$0xff] %v10272_v3  ;;  %v10279_v50 = vld [vmem:[#allocation9 + $0x64] ss:$12 sps:$4 sm:$0xff]  }
 0x5c1   :  { %9004 = vtanh.f32 %v3943_v21  ;;  %10816 = vst [vmem:[#allocation19_spill] sm:$0xff] %v10279_v50  ;;  %v10282_v21 = vld [vmem:[#allocation9 + $0x60] ss:$12 sps:$4 sm:$0xff]  }
 0x5c2   :  { %10817 = vst [vmem:[#allocation21_spill] sm:$0xff] %v10282_v21 }
 0x5c3   :  { %4655 = vmatpush1.bf16.msra.mxu0 %v10216_v11  ;;  %8169 = vmatpush3.bf16.msra.mxu1 %v8767_v8  ;;  %v8799_v8 = vld [vmem:[#allocation9 + $0x68] ss:$12 sps:$4 sm:$0xff]  }
 0x5c4   :  { %4656 = vmatprep.subr.bf16.mxu0 %v10220_v34  ;;  %8170 = vmatprep.subr.bf16.mxu1 %v10774_v7 }
 0x5c7   :  { %4657 = vmatpush1.bf16.msra.mxu0 %v10223_v0  ;;  %8171 = vmatpush3.bf16.msra.mxu1 %v8771_v24  ;;  %v10286_v24 = vld [vmem:[#allocation9 + $0x78] ss:$12 sps:$4 sm:$0xff]  }
 0x5c8   :  { %4658 = vmatprep.subr.bf16.mxu0 %v10227_v57  ;;  %8172 = vmatprep.subr.bf16.mxu1 %v10774_v7  ;;  %10818 = vst [vmem:[#allocation22_spill] sm:$0xff] %v10286_v24 }
 0x5cb   :  { %v9005_v49 = vpop.eup %9004  ;;  %4659 = vmatpush1.bf16.msra.mxu0 %v10230_v30  ;;  %8173 = vmatpush3.bf16.msra.mxu1 %v8775_v31  ;;  %v8803_v31 = vld [vmem:[#allocation9 + $0x80] ss:$12 sps:$4 sm:$0xff]  }
 0x5cc   :  { %4660 = vmatprep.subr.bf16.mxu0 %v10234_v55  ;;  %8174 = vmatprep.subr.bf16.mxu1 %v10774_v7  ;;  %v3946_v56 = vmul.f32 %v9005_v49, %v3945_v58  ;;  %v10291_v58 = vld [vmem:[#allocation9 + $0x94] ss:$12 sps:$4 sm:$0xff]   ;;  %v10295_v49 = vld [vmem:[#allocation9 + $0x90] ss:$12 sps:$4 sm:$0xff]  }
 0x5cd   :  { %10820 = vst [vmem:[#allocation36_spill] sm:$0xff] %v10291_v58  ;;  %10821 = vst [vmem:[#allocation37_spill] sm:$0xff] %v10295_v49 }
 0x5ce   :  { %v10242_v33 = vadd.f32 %v3947_v29, %v3946_v56  ;;  %v10299_v56 = vld [vmem:[#allocation9 + $0xac] ss:$12 sps:$4 sm:$0xff]   ;;  %v10302_v29 = vld [vmem:[#allocation9 + $0xa8] ss:$12 sps:$4 sm:$0xff]  }
 0x5cf   :  { %4661 = vmatpush1.bf16.msra.mxu0 %v10237_v28  ;;  %8175 = vmatpush3.bf16.msra.mxu1 %v8779_v62  ;;  %v8807_v62 = vld [vmem:[#allocation9 + $0x98] ss:$12 sps:$4 sm:$0xff]   ;;  %10822 = vst [vmem:[#allocation39_spill] sm:$0xff] %v10299_v56  ;;  %10823 = vst [vmem:[#allocation40_spill] sm:$0xff] %v10302_v29 }
 0x5d0   :  { %3949 = vst [vmem:[#allocation10 + $0x18] sm:$0xff] %v10242_v33  ;;  %v4485_v19 = vpack.c.bf16 %v10242_v33, %v10242_v33  ;;  %8180 = vmatprep.subr.bf16.mxu1 %v10774_v7  ;;  %4921 = vmatprep.subr.bf16.mxu0 %v10252_v39 }
 0x5d2   :  { %4679 = vmatmul.mubr.bf16.vlgmr.msra.gmra.mrb[56].mxu0 %v4485_v19  ;;  %8177 = vmatmul.mubr.bf16.vlgmr.msra.gmra.mrb[68].mxu1 %v4485_v19  ;;  %v8811_v19 = vld [vmem:[#allocation9 + $0xb0] ss:$12 sps:$4 sm:$0xff]  }
 0x5d3   :  { %4953 = vmatprep.mubr.bf16.mxu0 %v10775_v47  ;;  %8196 = vmatprep.mubr.msk.bf16.mxu1 %vm9204_vm0, %v10774_v7 }
 0x5d4   :  { %4922 = vmatpush1.bf16.msra.mxu0 %v10254_v48  ;;  %8181 = vmatpush3.bf16.msra.mxu1 %v8783_v32 }
 0x5d5   :  { %8182 = vmatprep.subr.bf16.mxu1 %v10774_v7  ;;  %4923 = vmatprep.subr.bf16.mxu0 %v10258_v44 }
 0x5d8   :  { %4924 = vmatpush1.bf16.msra.mxu0 %v10261_v38  ;;  %8183 = vmatpush3.bf16.msra.mxu1 %v8787_v36 }
 0x5d9   :  { %8184 = vmatprep.subr.bf16.mxu1 %v10774_v7  ;;  %4925 = vmatprep.subr.bf16.mxu0 %v10265_v20 }
 0x5dc   :  { %4926 = vmatpush1.bf16.msra.mxu0 %v10268_v40  ;;  %8185 = vmatpush3.bf16.msra.mxu1 %v8791_v23  ;;  %v10824_v23 = vld [vmem:[#allocation25_spill] sm:$0xff] }
 0x5dd   :  { %8186 = vmatprep.subr.bf16.mxu1 %v10774_v7  ;;  %4927 = vmatprep.subr.bf16.mxu0 %v10272_v3 }
 0x5e0   :  { %4928 = vmatpush1.bf16.msra.mxu0 %v10275_v59  ;;  %8187 = vmatpush3.bf16.msra.mxu1 %v8795_v26 }
 0x5e1   :  { %8188 = vmatprep.subr.bf16.mxu1 %v10774_v7  ;;  %4929 = vmatprep.subr.bf16.mxu0 %v10279_v50 }
 0x5e4   :  { %4930 = vmatpush1.bf16.msra.mxu0 %v10282_v21  ;;  %8189 = vmatpush3.bf16.msra.mxu1 %v8799_v8 }
 0x5e5   :  { %8190 = vmatprep.subr.bf16.mxu1 %v10774_v7  ;;  %4931 = vmatprep.subr.bf16.mxu0 %v10288_v51 }
 0x5e8   :  { %4932 = vmatpush1.bf16.msra.mxu0 %v10286_v24  ;;  %8191 = vmatpush3.bf16.msra.mxu1 %v8803_v31 }
 0x5e9   :  { %4933 = vmatprep.subr.bf16.mxu0 %v10291_v58  ;;  %8192 = vmatprep.subr.bf16.mxu1 %v10774_v7 }
 0x5ec   :  { %4934 = vmatpush1.bf16.msra.mxu0 %v10295_v49  ;;  %8193 = vmatpush3.bf16.msra.mxu1 %v8807_v62  ;;  %v10825_v62 = vld [vmem:[#allocation27_spill] sm:$0xff] }
 0x5ed   :  { %4935 = vmatprep.subr.bf16.mxu0 %v10299_v56  ;;  %8194 = vmatprep.subr.bf16.mxu1 %v10774_v7 }
 0x5f0   :  { %4936 = vmatpush1.bf16.msra.mxu0 %v10302_v29  ;;  %8195 = vmatpush3.bf16.msra.mxu1 %v8811_v19 }
 0x5f1   :  { %5211 = vmatprep.subr.bf16.mxu0 %v10084_v42  ;;  %8200 = vmatprep.subr.bf16.mxu1 %v10774_v7 }
 0x665   :  { %v4148_v32 = vpop.f32.mrb[52].mxu0  ;;  %v4189_v36 = vpop.f32.mrb[60].mxu1 }
 0x666   :  { %v4195_v26 = vadd.f32 %v4148_v32, %v10824_v23  ;;  %v4150_v8 = vpop.f32.mrb[53].mxu0  ;;  %v8138_v31 = vpop.f32.mrb[61].mxu1  ;;  %v4216_v3 = vadd.f32 %v10095_v1, %v4189_v36  ;;  %v8812_v1 = vld [vmem:[#allocation7 + $0xc8] ss:$12 sps:$4 sm:$0xff]  }
 0x667   :  { %v4202_v49 = vadd.f32 %v4150_v8, %v10825_v62  ;;  %v4152_v58 = vpop.f32.mrb[54].mxu0  ;;  %v4192_v24 = vpop.f32.mrb[62].mxu1  ;;  %v10826_v31 = vld [vmem:[#allocation30_spill] sm:$0xff] }
 0x668   :  { %v7339_v56 = vmul.f32 -1.442695, %v4195_v26  ;;  %v4153_v51 = vpop.f32.mrb[55].mxu0  ;;  %v8139_v21 = vpop.f32.mrb[63].mxu1 }
 0x669   :  { %v7340_v29 = vmul.f32 -1.442695, %v4202_v49 }
 0x66a   :  { %9006 = vpow2.f32 %v7339_v56 }
 0x66b   :  { %9008 = vpow2.f32 %v7340_v29 }
 0x674   :  { %v9007_v19 = vpop.eup %9006 }
 0x675   :  { %v4199_v42 = vadd.f32 1.0, %v9007_v19  ;;  %v9009_v50 = vpop.eup %9008 }
 0x676   :  { %v4206_v59 = vadd.f32 1.0, %v9009_v50 }
 0x677   :  { %9010 = vrcp.f32 %v4199_v42 }
 0x678   :  { %9012 = vrcp.f32 %v4206_v59  ;;  %v8813_v59 = vld [vmem:[#allocation7 + $0xe0] ss:$12 sps:$4 sm:$0xff]  }
 0x681   :  { %v9011_v32 = vpop.eup %9010 }
 0x682   :  { %v4217_v23 = vmul.f32 %v9011_v32, %v4216_v3  ;;  %v9013_v49 = vpop.eup %9012 }
 0x683   :  { %v4220_v56 = vsub.f32 1.0, %v9013_v49  ;;  %v4222_v62 = vmul.f32 %v9013_v49, %v10102_v22  ;;  %v8814_v22 = vld [vmem:[#allocation7 + $0xf8] ss:$12 sps:$4 sm:$0xff]  }
 0x684   :  { %v4218_v8 = vadd.f32 %v4217_v23, %v10826_v31 }
 0x685   :  { %v10313_v58 = vpop.f32.mrb[64].mxu1 }
 0x686   :  { %9014 = vtanh.f32 %v4218_v8  ;;  %v8158_v24 = vpop.f32.mrb[65].mxu1 }
 0x687   :  { %v4482_v21 = vpop.f32.mrb[66].mxu1 }
 0x688   :  { %v8159_v51 = vpop.f32.mrb[67].mxu1 }
 0x690   :  { %v9015_v29 = vpop.eup %9014 }
 0x691   :  { %v4221_v26 = vmul.f32 %v9015_v29, %v4220_v56 }
 0x693   :  { %v10316_v50 = vadd.f32 %v4222_v62, %v4221_v26 }
 0x695   :  { %v10320_v3 = vpack.c.bf16 %v10316_v50, %v10316_v50 }
 0x697   :  { %4954 = vmatmul.mubr.bf16.vlgmr.msra.gmra.mrb[60].mxu0 %v10320_v3  ;;  %8197 = vmatmul.mubr.bf16.vlgmr.msra.gmra.mrb[72].mxu1 %v10320_v3 }
 0x698   :  { %5212 = vmatpush1.bf16.msra.mxu0 %v10104_v16  ;;  %8201 = vmatpush3.bf16.msra.mxu1 %v8812_v1  ;;  %v8815_v16 = vld [vmem:[#allocation7 + $0x110] ss:$12 sps:$4 sm:$0xff]   ;;  %v8824_v1 = vld [vmem:[#allocation9 + $0x128] ss:$12 sps:$4 sm:$0xff]  }
 0x699   :  { %5213 = vmatprep.subr.bf16.mxu0 %v10110_v60  ;;  %8202 = vmatprep.subr.bf16.mxu1 %v10774_v7  ;;  %v10337_v60 = vld [vmem:[%s10710_s4 + $0x3] sm:$0x7] }
 0x69a   :  { %5243 = vmatprep.mubr.bf16.mxu0 %v10775_v47  ;;  %8216 = vmatprep.mubr.msk.bf16.mxu1 %vm9204_vm0, %v10774_v7  ;;  %v4268_v19 = vrot.slane %v10337_v60, %v9375_v6 }
 0x69c   :  { %5214 = vmatpush1.bf16.msra.mxu0 %v10115_v15  ;;  %8203 = vmatpush3.bf16.msra.mxu1 %v8813_v59  ;;  %v4264_v15 = vrot.slane %v10337_v60, %v9370_v4  ;;  %v10834_v59 = vld [vmem:[#allocation37_spill] sm:$0xff] }
 0x69d   :  { %5215 = vmatprep.subr.bf16.mxu0 %v10119_v61  ;;  %8204 = vmatprep.subr.bf16.mxu1 %v10774_v7  ;;  %v8816_v61 = vld [vmem:[#allocation7 + $0x128] ss:$12 sps:$4 sm:$0xff]  }
 0x6a0   :  { %5216 = vmatpush1.bf16.msra.mxu0 %v10125_v52  ;;  %8205 = vmatpush3.bf16.msra.mxu1 %v8814_v22  ;;  %v8829_v22 = vld [vmem:[#allocation9 + $0x20] ss:$12 sps:$4 sm:$0xff]  }
 0x6a1   :  { %5217 = vmatprep.subr.bf16.mxu0 %v10129_v10  ;;  %8206 = vmatprep.subr.bf16.mxu1 %v10774_v7 }
 0x6a4   :  { %5218 = vmatpush1.bf16.msra.mxu0 %v10132_v37  ;;  %8207 = vmatpush3.bf16.msra.mxu1 %v8815_v16  ;;  %v8817_v37 = vld [vmem:[#allocation7 + $0x140] ss:$12 sps:$4 sm:$0xff]   ;;  %v8830_v16 = vld [vmem:[#allocation9 + $0x38] ss:$12 sps:$4 sm:$0xff]  }
 0x6a5   :  { %v4680_v36 = vpop.f32.mrb[56].mxu0  ;;  %v4721_v52 = vpop.f32.mrb[68].mxu1  ;;  %5219 = vmatprep.subr.bf16.mxu0 %v10141_v53  ;;  %8208 = vmatprep.subr.bf16.mxu1 %v10774_v7  ;;  %v8818_v53 = vld [vmem:[#allocation7 + $0x158] ss:$12 sps:$4 sm:$0xff]  }
 0x6a6   :  { %v8348_v42 = vadd.f32 %v4680_v36, %v4264_v15  ;;  %v4682_v10 = vpop.f32.mrb[57].mxu0  ;;  %v8178_v32 = vpop.f32.mrb[69].mxu1  ;;  %v8832_v15 = vld [vmem:[#allocation9 + $0x68] ss:$12 sps:$4 sm:$0xff]   ;;  %v10427_v36 = vld [vmem:[#allocation7 + $0xc4] ss:$12 sps:$4 sm:$0xff]  }
 0x6a7   :  { %v4684_v23 = vpop.f32.mrb[58].mxu0  ;;  %v4724_v31 = vpop.f32.mrb[70].mxu1  ;;  %v8349_v51 = vadd.f32 %v4682_v10, %v4268_v19  ;;  %v8835_v19 = vld [vmem:[#allocation9 + $0xb0] ss:$12 sps:$4 sm:$0xff]   ;;  %v10837_v32 = vld [vmem:[#allocation31_spill] sm:$0xff] }
 0x6a8   :  { %v7391_v8 = vmul.f32 -1.442695, %v8348_v42  ;;  %v4685_v24 = vpop.f32.mrb[59].mxu0  ;;  %v8179_v21 = vpop.f32.mrb[71].mxu1  ;;  %5220 = vmatpush1.bf16.msra.mxu0 %v10146_v18  ;;  %8209 = vmatpush3.bf16.msra.mxu1 %v8816_v61  ;;  %v8819_v18 = vld [vmem:[#allocation7 + $0x170] ss:$12 sps:$4 sm:$0xff]  }
 0x6a9   :  { %5221 = vmatprep.subr.bf16.mxu0 %v10154_v46  ;;  %8210 = vmatprep.subr.bf16.mxu1 %v10774_v7  ;;  %v7392_v49 = vmul.f32 -1.442695, %v8349_v51  ;;  %v8833_v61 = vld [vmem:[#allocation9 + $0x80] ss:$12 sps:$4 sm:$0xff]  }
 0x6aa   :  { %9016 = vpow2.f32 %v7391_v8  ;;  %v10838_v24 = vld [vmem:[#allocation32_spill] sm:$0xff] }
 0x6ab   :  { %9018 = vpow2.f32 %v7392_v49 }
 0x6ac   :  { %5222 = vmatpush1.bf16.msra.mxu0 %v10156_v12  ;;  %8211 = vmatpush3.bf16.msra.mxu1 %v8817_v37  ;;  %v8820_v12 = vld [vmem:[#allocation9 + $0xc8] ss:$12 sps:$4 sm:$0xff]  }
 0x6ad   :  { %5223 = vmatprep.subr.bf16.mxu0 %v10161_v54  ;;  %8212 = vmatprep.subr.bf16.mxu1 %v10774_v7  ;;  %v8821_v54 = vld [vmem:[#allocation9 + $0xe0] ss:$12 sps:$4 sm:$0xff]  }
 0x6b0   :  { %5224 = vmatpush1.bf16.msra.mxu0 %v10164_v43  ;;  %8213 = vmatpush3.bf16.msra.mxu1 %v8818_v53 }
 0x6b1   :  { %5225 = vmatprep.subr.bf16.mxu0 %v10168_v35  ;;  %8214 = vmatprep.subr.bf16.mxu1 %v10774_v7  ;;  %v8822_v35 = vld [vmem:[#allocation9 + $0xf8] ss:$12 sps:$4 sm:$0xff]  }
 0x6b4   :  { %v9017_v46 = vpop.eup %9016  ;;  %5226 = vmatpush1.bf16.msra.mxu0 %v10171_v27  ;;  %8215 = vmatpush3.bf16.msra.mxu1 %v8819_v18  ;;  %v10372_v27 = vld [vmem:[%s10711_s5 + $0x1] ss:$0 sm:$0xff] }
 0x6b5   :  { %v4731_v56 = vadd.f32 1.0, %v9017_v46  ;;  %5453 = vmatprep.subr.bf16.mxu0 %v10175_v5  ;;  %8220 = vmatprep.subr.bf16.mxu1 %v10774_v7  ;;  %v9019_v43 = vpop.eup %9018  ;;  %v4272_v5 = vrot.slane %v10337_v60, %v9381_v14  ;;  %v8831_v60 = vld [vmem:[#allocation9 + $0x50] ss:$12 sps:$4 sm:$0xff]  }
 0x6b7   :  { %9020 = vrcp.f32 %v4731_v56  ;;  %5244 = vmatmul.mubr.bf16.vlgmr.msra.gmra.mrb[64].mxu0 %v10320_v3  ;;  %8217 = vmatmul.mubr.bf16.vlgmr.msra.gmra.mrb[76].mxu1 %v10320_v3  ;;  %v4480_v26 = vadd.f32 %v10313_v58, %v4272_v5 }
 0x6b8   :  { %5454 = vmatpush1.bf16.msra.mxu0 %v10178_v9  ;;  %8221 = vmatpush3.bf16.msra.mxu1 %v8820_v12  ;;  %v4738_v9 = vadd.f32 1.0, %v9019_v43  ;;  %v10438_v43 = vld [vmem:[%s10711_s5] ss:$0 sm:$0xff] }
 0x6b9   :  { %5455 = vmatprep.subr.bf16.mxu0 %v10182_v2  ;;  %8222 = vmatprep.subr.bf16.mxu1 %v10774_v7  ;;  %v4748_v2 = vadd.f32 %v10372_v27, %v4721_v52  ;;  %v8834_v52 = vld [vmem:[#allocation9 + $0x98] ss:$12 sps:$4 sm:$0xff]  }
 0x6ba   :  { %5485 = vmatprep.mubr.bf16.mxu0 %v10775_v47  ;;  %8236 = vmatprep.mubr.msk.bf16.mxu1 %vm9204_vm0, %v10774_v7  ;;  %9022 = vrcp.f32 %v4738_v9 }
 0x6bc   :  { %5456 = vmatpush1.bf16.msra.mxu0 %v10187_v25  ;;  %8223 = vmatpush3.bf16.msra.mxu1 %v8821_v54  ;;  %v8823_v25 = vld [vmem:[#allocation9 + $0x110] ss:$12 sps:$4 sm:$0xff]  }
 0x6bd   :  { %5457 = vmatprep.subr.bf16.mxu0 %v10191_v17  ;;  %8224 = vmatprep.subr.bf16.mxu1 %v10774_v7 }
 0x6c0   :  { %5458 = vmatpush1.bf16.msra.mxu0 %v10197_v45  ;;  %8225 = vmatpush3.bf16.msra.mxu1 %v8822_v35  ;;  %v8825_v45 = vld [vmem:[#allocation9 + $0x140] ss:$12 sps:$4 sm:$0xff]  }
 0x6c1   :  { %v9021_v29 = vpop.eup %9020  ;;  %5459 = vmatprep.subr.bf16.mxu0 %v10201_v41  ;;  %8226 = vmatprep.subr.bf16.mxu1 %v10774_v7 }
 0x6c2   :  { %v4749_v17 = vmul.f32 %v9021_v29, %v4748_v2 }
 0x6c4   :  { %v4750_v62 = vadd.f32 %v4749_v17, %v4480_v26  ;;  %5460 = vmatpush1.bf16.msra.mxu0 %v10208_v13  ;;  %8227 = vmatpush3.bf16.msra.mxu1 %v8823_v25  ;;  %v9023_v41 = vpop.eup %9022  ;;  %v8826_v13 = vld [vmem:[#allocation9 + $0x158] ss:$12 sps:$4 sm:$0xff]  }
 0x6c5   :  { %5461 = vmatprep.subr.bf16.mxu0 %v10212_v63  ;;  %8228 = vmatprep.subr.bf16.mxu1 %v10774_v7  ;;  %v4752_v63 = vsub.f32 1.0, %v9023_v41  ;;  %v4754_v3 = vmul.f32 %v9023_v41, %v10242_v33  ;;  %v10830_v33 = vld [vmem:[#allocation21_spill] sm:$0xff]  ;;  %v10839_v25 = vld [vmem:[#allocation26_spill] sm:$0xff] }
 0x6c6   :  { %9024 = vtanh.f32 %v4750_v62 }
 0x6c8   :  { %5462 = vmatpush1.bf16.msra.mxu0 %v10216_v11  ;;  %8229 = vmatpush3.bf16.msra.mxu1 %v8824_v1  ;;  %v8827_v11 = vld [vmem:[#allocation9 + $0x170] ss:$12 sps:$4 sm:$0xff]  }
 0x6c9   :  { %5463 = vmatprep.subr.bf16.mxu0 %v10220_v34  ;;  %8230 = vmatprep.subr.bf16.mxu1 %v10774_v7 }
 0x6cc   :  { %5464 = vmatpush1.bf16.msra.mxu0 %v10223_v0  ;;  %8231 = vmatpush3.bf16.msra.mxu1 %v8825_v45 }
 0x6cd   :  { %5465 = vmatprep.subr.bf16.mxu0 %v10227_v57  ;;  %8232 = vmatprep.subr.bf16.mxu1 %v10774_v7 }
 0x6d0   :  { %v9025_v58 = vpop.eup %9024  ;;  %5466 = vmatpush1.bf16.msra.mxu0 %v10230_v30  ;;  %8233 = vmatpush3.bf16.msra.mxu1 %v8826_v13  ;;  %v10827_v30 = vld [vmem:[#allocation18_spill] sm:$0xff] }
 0x6d1   :  { %5467 = vmatprep.subr.bf16.mxu0 %v10234_v55  ;;  %8234 = vmatprep.subr.bf16.mxu1 %v10774_v7  ;;  %v4753_v34 = vmul.f32 %v9025_v58, %v4752_v63  ;;  %v10828_v55 = vld [vmem:[#allocation20_spill] sm:$0xff] }
 0x6d3   :  { %v10396_v0 = vadd.f32 %v4754_v3, %v4753_v34  ;;  %v10447_v34 = vld [vmem:[#allocation7 + $0xc0] ss:$12 sps:$4 sm:$0xff]   ;;  %v8839_v3 = vld [vmem:[#allocation7 + $0xc8] ss:$12 sps:$4 sm:$0xff]  }
 0x6d4   :  { %5468 = vmatpush1.bf16.msra.mxu0 %v10237_v28  ;;  %8235 = vmatpush3.bf16.msra.mxu1 %v8827_v11  ;;  %v10829_v28 = vld [vmem:[#allocation19_spill] sm:$0xff] }
 0x6d5   :  { %4756 = vst [vmem:[#allocation10 + $0x20] sm:$0xff] %v10396_v0  ;;  %v5292_v57 = vpack.c.bf16 %v10396_v0, %v10396_v0  ;;  %5728 = vmatprep.subr.bf16.mxu0 %v10252_v39  ;;  %8240 = vmatprep.subr.bf16.mxu1 %v10774_v7  ;;  %v10831_v39 = vld [vmem:[#allocation35_spill] sm:$0xff] }
 0x6d7   :  { %5486 = vmatmul.mubr.bf16.vlgmr.msra.gmra.mrb[64].mxu0 %v5292_v57  ;;  %8237 = vmatmul.mubr.bf16.vlgmr.msra.gmra.mrb[80].mxu1 %v5292_v57 }
 0x6d8   :  { %5729 = vmatpush1.bf16.msra.mxu0 %v10254_v48  ;;  %5760 = vmatprep.mubr.bf16.mxu0 %v10775_v47  ;;  %v10832_v48 = vld [vmem:[#allocation22_spill] sm:$0xff] }
 0x6d9   :  { %5730 = vmatprep.subr.bf16.mxu0 %v10258_v44  ;;  %8256 = vmatprep.mubr.msk.bf16.mxu1 %vm9204_vm0, %v10774_v7  ;;  %v10833_v44 = vld [vmem:[#allocation36_spill] sm:$0xff] }
 0x6dc   :  { %5731 = vmatpush1.bf16.msra.mxu0 %v10261_v38  ;;  %v10835_v38 = vld [vmem:[#allocation39_spill] sm:$0xff] }
 0x6dd   :  { %5732 = vmatprep.subr.bf16.mxu0 %v10265_v20  ;;  %v10836_v20 = vld [vmem:[#allocation40_spill] sm:$0xff] }
 0x6e0   :  { %5733 = vmatpush1.bf16.msra.mxu0 %v10268_v40  ;;  %v8828_v40 = vld [vmem:[#allocation9 + $0x8] ss:$12 sps:$4 sm:$0xff]  }
 0x6e1   :  { %5734 = vmatprep.subr.bf16.mxu0 %v10827_v30  ;;  %8241 = vmatpush3.bf16.msra.mxu1 %v8828_v40  ;;  %v10453_v30 = vld [vmem:[#allocation7 + $0xdc] ss:$12 sps:$4 sm:$0xff]  }
 0x6e2   :  { %8242 = vmatprep.subr.bf16.mxu1 %v10774_v7 }
 0x6e4   :  { %5735 = vmatpush1.bf16.msra.mxu0 %v10828_v55  ;;  %v10458_v55 = vld [vmem:[#allocation7 + $0xd8] ss:$12 sps:$4 sm:$0xff]  }
 0x6e5   :  { %5736 = vmatprep.subr.bf16.mxu0 %v10829_v28  ;;  %8243 = vmatpush3.bf16.msra.mxu1 %v8829_v22  ;;  %v10462_v28 = vld [vmem:[#allocation7 + $0xf4] ss:$12 sps:$4 sm:$0xff]  }
 0x6e6   :  { %8244 = vmatprep.subr.bf16.mxu1 %v10774_v7  ;;  %v10489_v22 = vld [vmem:[#allocation7 + $0x120] ss:$12 sps:$4 sm:$0xff]  }
 0x6e8   :  { %5737 = vmatpush1.bf16.msra.mxu0 %v10830_v33  ;;  %v10468_v33 = vld [vmem:[#allocation7 + $0xf0] ss:$12 sps:$4 sm:$0xff]  }
 0x6e9   :  { %5738 = vmatprep.subr.bf16.mxu0 %v10831_v39  ;;  %8245 = vmatpush3.bf16.msra.mxu1 %v8830_v16  ;;  %v8847_v39 = vld [vmem:[#allocation7 + $0xf8] ss:$12 sps:$4 sm:$0xff]   ;;  %v8855_v16 = vld [vmem:[#allocation7 + $0x128] ss:$12 sps:$4 sm:$0xff]  }
 0x6ea   :  { %8246 = vmatprep.subr.bf16.mxu1 %v10774_v7 }
 0x6ec   :  { %5739 = vmatpush1.bf16.msra.mxu0 %v10832_v48  ;;  %v10472_v48 = vld [vmem:[#allocation7 + $0x10c] ss:$12 sps:$4 sm:$0xff]  }
 0x6ed   :  { %5740 = vmatprep.subr.bf16.mxu0 %v10833_v44  ;;  %8247 = vmatpush3.bf16.msra.mxu1 %v8831_v60  ;;  %v10475_v44 = vld [vmem:[#allocation7 + $0x108] ss:$12 sps:$4 sm:$0xff]  }
 0x6ee   :  { %8248 = vmatprep.subr.bf16.mxu1 %v10774_v7 }
 0x6f0   :  { %5741 = vmatpush1.bf16.msra.mxu0 %v10834_v59  ;;  %v8851_v59 = vld [vmem:[#allocation7 + $0x110] ss:$12 sps:$4 sm:$0xff]  }
 0x6f1   :  { %5742 = vmatprep.subr.bf16.mxu0 %v10835_v38  ;;  %8249 = vmatpush3.bf16.msra.mxu1 %v8832_v15  ;;  %v10480_v38 = vld [vmem:[%s10710_s4 + $0x3] sm:$0x7] }
 0x6f2   :  { %8250 = vmatprep.subr.bf16.mxu1 %v10774_v7  ;;  %v5071_v40 = vrot.slane %v10480_v38, %v9370_v4 }
 0x6f4   :  { %5743 = vmatpush1.bf16.msra.mxu0 %v10836_v20  ;;  %v10484_v20 = vld [vmem:[#allocation7 + $0x124] ss:$12 sps:$4 sm:$0xff]  }
 0x6f5   :  { %6018 = vmatprep.subr.bf16.mxu0 %v10427_v36  ;;  %8251 = vmatpush3.bf16.msra.mxu1 %v8833_v61  ;;  %v5075_v61 = vrot.slane %v10480_v38, %v9375_v6 }
 0x6f6   :  { %8252 = vmatprep.subr.bf16.mxu1 %v10774_v7 }
 0x6f9   :  { %8253 = vmatpush3.bf16.msra.mxu1 %v8834_v52  ;;  %v10497_v52 = vld [vmem:[#allocation7 + $0x13c] ss:$12 sps:$4 sm:$0xff]  }
 0x6fa   :  { %8254 = vmatprep.subr.bf16.mxu1 %v10774_v7 }
 0x6fd   :  { %8255 = vmatpush3.bf16.msra.mxu1 %v8835_v19 }
 0x6fe   :  { %8260 = vmatprep.subr.bf16.mxu1 %v10774_v7 }
 0x76a   :  { %v4955_v42 = vpop.f32.mrb[60].mxu0  ;;  %v4996_v10 = vpop.f32.mrb[72].mxu1 }
 0x76b   :  { %v5002_v23 = vadd.f32 %v4955_v42, %v10837_v32  ;;  %v4957_v31 = vpop.f32.mrb[61].mxu0  ;;  %v8198_v8 = vpop.f32.mrb[73].mxu1  ;;  %v5023_v5 = vadd.f32 %v10438_v43, %v4996_v10 }
 0x76c   :  { %v5009_v21 = vadd.f32 %v4957_v31, %v10838_v24  ;;  %v4959_v37 = vpop.f32.mrb[62].mxu0  ;;  %v4999_v51 = vpop.f32.mrb[74].mxu1  ;;  %v10499_v31 = vld [vmem:[#allocation7 + $0x138] ss:$12 sps:$4 sm:$0xff]  }
 0x76d   :  { %v7419_v53 = vmul.f32 -1.442695, %v5002_v23  ;;  %v4960_v49 = vpop.f32.mrb[63].mxu0  ;;  %v8199_v18 = vpop.f32.mrb[75].mxu1  ;;  %v8859_v37 = vld [vmem:[#allocation7 + $0x140] ss:$12 sps:$4 sm:$0xff]  }
 0x76e   :  { %v7420_v46 = vmul.f32 -1.442695, %v5009_v21  ;;  %v10507_v49 = vld [vmem:[#allocation7 + $0x150] ss:$12 sps:$4 sm:$0xff]   ;;  %v8863_v18 = vld [vmem:[#allocation7 + $0x158] ss:$12 sps:$4 sm:$0xff]  }
 0x76f   :  { %9026 = vpow2.f32 %v7419_v53  ;;  %v10504_v53 = vld [vmem:[#allocation7 + $0x154] ss:$12 sps:$4 sm:$0xff]  }
 0x770   :  { %9028 = vpow2.f32 %v7420_v46 }
 0x779   :  { %v9027_v12 = vpop.eup %9026 }
 0x77a   :  { %v5006_v56 = vadd.f32 1.0, %v9027_v12  ;;  %v9029_v54 = vpop.eup %9028  ;;  %v10511_v12 = vld [vmem:[#allocation7 + $0x16c] ss:$12 sps:$4 sm:$0xff]  }
 0x77b   :  { %v5013_v35 = vadd.f32 1.0, %v9029_v54  ;;  %v8867_v54 = vld [vmem:[#allocation7 + $0x170] ss:$12 sps:$4 sm:$0xff]  }
 0x77c   :  { %9030 = vrcp.f32 %v5006_v56  ;;  %v10514_v56 = vld [vmem:[#allocation7 + $0x168] ss:$12 sps:$4 sm:$0xff]  }
 0x77d   :  { %9032 = vrcp.f32 %v5013_v35  ;;  %v10518_v35 = vld [vmem:[#allocation9 + $0xc4] ss:$12 sps:$4 sm:$0xff]  }
 0x786   :  { %v9031_v9 = vpop.eup %9030 }
 0x787   :  { %v5024_v2 = vmul.f32 %v9031_v9, %v5023_v5  ;;  %v9033_v45 = vpop.eup %9032  ;;  %v10521_v9 = vld [vmem:[#allocation9 + $0xc0] ss:$12 sps:$4 sm:$0xff]  }
 0x788   :  { %v5027_v41 = vsub.f32 1.0, %v9033_v45  ;;  %v5029_v58 = vmul.f32 %v9033_v45, %v10316_v50  ;;  %v8843_v50 = vld [vmem:[#allocation7 + $0xe0] ss:$12 sps:$4 sm:$0xff]  }
 0x789   :  { %v5025_v29 = vadd.f32 %v5024_v2, %v10839_v25  ;;  %v8871_v2 = vld [vmem:[#allocation9 + $0xc8] ss:$12 sps:$4 sm:$0xff]  }
 0x78a   :  { %v10442_v26 = vpop.f32.mrb[76].mxu1 }
 0x78b   :  { %9034 = vtanh.f32 %v5025_v29  ;;  %v8218_v17 = vpop.f32.mrb[77].mxu1  ;;  %v10525_v29 = vld [vmem:[#allocation9 + $0xdc] ss:$12 sps:$4 sm:$0xff]  }
 0x78c   :  { %v5289_v62 = vpop.f32.mrb[78].mxu1  ;;  %v10530_v17 = vld [vmem:[#allocation9 + $0xd8] ss:$12 sps:$4 sm:$0xff]  }
 0x78d   :  { %v8219_v1 = vpop.f32.mrb[79].mxu1  ;;  %v8875_v62 = vld [vmem:[#allocation9 + $0xe0] ss:$12 sps:$4 sm:$0xff]  }
 0x78e   :  { %v10534_v1 = vld [vmem:[#allocation9 + $0xf4] ss:$12 sps:$4 sm:$0xff]  }
 0x795   :  { %v9035_v13 = vpop.eup %9034 }
 0x796   :  { %v5028_v63 = vmul.f32 %v9035_v13, %v5027_v41  ;;  %v10540_v41 = vld [vmem:[#allocation9 + $0xf0] ss:$12 sps:$4 sm:$0xff]   ;;  %v8879_v13 = vld [vmem:[#allocation9 + $0xf8] ss:$12 sps:$4 sm:$0xff]  }
 0x798   :  { %v10445_v11 = vadd.f32 %v5029_v58, %v5028_v63  ;;  %v10544_v63 = vld [vmem:[#allocation9 + $0x10c] ss:$12 sps:$4 sm:$0xff]   ;;  %v5079_v58 = vrot.slane %v10480_v38, %v9381_v14 }
 0x79a   :  { %v10451_v57 = vpack.c.bf16 %v10445_v11, %v10445_v11 }
 0x79c   :  { %5761 = vmatmul.mubr.bf16.vlgmr.msra.gmra.mrb[68].mxu0 %v10451_v57  ;;  %8257 = vmatmul.mubr.bf16.vlgmr.msra.gmra.mrb[84].mxu1 %v10451_v57 }
 0x79d   :  { %6019 = vmatpush1.bf16.msra.mxu0 %v10447_v34  ;;  %8261 = vmatpush3.bf16.msra.mxu1 %v8839_v3 }
 0x79e   :  { %6020 = vmatprep.subr.bf16.mxu0 %v10453_v30  ;;  %8262 = vmatprep.subr.bf16.mxu1 %v10774_v7 }
 0x79f   :  { %6050 = vmatprep.mubr.bf16.mxu0 %v10775_v47  ;;  %8276 = vmatprep.mubr.msk.bf16.mxu1 %vm9204_vm0, %v10774_v7 }
 0x7a1   :  { %6021 = vmatpush1.bf16.msra.mxu0 %v10458_v55  ;;  %8263 = vmatpush3.bf16.msra.mxu1 %v8843_v50  ;;  %v10551_v50 = vld [vmem:[#allocation9 + $0x108] ss:$12 sps:$4 sm:$0xff]  }
 0x7a2   :  { %6022 = vmatprep.subr.bf16.mxu0 %v10462_v28  ;;  %8264 = vmatprep.subr.bf16.mxu1 %v10774_v7 }
 0x7a5   :  { %6023 = vmatpush1.bf16.msra.mxu0 %v10468_v33  ;;  %8265 = vmatpush3.bf16.msra.mxu1 %v8847_v39  ;;  %v8883_v39 = vld [vmem:[#allocation9 + $0x110] ss:$12 sps:$4 sm:$0xff]  }
 0x7a6   :  { %6024 = vmatprep.subr.bf16.mxu0 %v10472_v48  ;;  %8266 = vmatprep.subr.bf16.mxu1 %v10774_v7 }
 0x7a9   :  { %6025 = vmatpush1.bf16.msra.mxu0 %v10475_v44  ;;  %8267 = vmatpush3.bf16.msra.mxu1 %v8851_v59 }
 0x7aa   :  { %v5487_v60 = vpop.f32.mrb[64].mxu0  ;;  %v10491_v15 = vpop.f32.mrb[80].mxu1  ;;  %6026 = vmatprep.subr.bf16.mxu0 %v10484_v20  ;;  %8268 = vmatprep.subr.bf16.mxu1 %v10774_v7 }
 0x7ab   :  { %v8350_v19 = vadd.f32 %v5487_v60, %v5071_v40  ;;  %v5489_v42 = vpop.f32.mrb[65].mxu0  ;;  %v8238_v10 = vpop.f32.mrb[81].mxu1  ;;  %v10555_v40 = vld [vmem:[#allocation9 + $0x124] ss:$12 sps:$4 sm:$0xff]  }
 0x7ac   :  { %v5491_v32 = vpop.f32.mrb[66].mxu0  ;;  %v5531_v23 = vpop.f32.mrb[82].mxu1  ;;  %v8351_v51 = vadd.f32 %v5489_v42, %v5075_v61  ;;  %v10563_v61 = vld [vmem:[#allocation9 + $0x13c] ss:$12 sps:$4 sm:$0xff]   ;;  %v10570_v42 = vld [vmem:[#allocation9 + $0x154] ss:$12 sps:$4 sm:$0xff]  }
 0x7ad   :  { %v7471_v8 = vmul.f32 -1.442695, %v8350_v19  ;;  %v5492_v24 = vpop.f32.mrb[67].mxu0  ;;  %v8239_v21 = vpop.f32.mrb[83].mxu1  ;;  %6027 = vmatpush1.bf16.msra.mxu0 %v10489_v22  ;;  %8269 = vmatpush3.bf16.msra.mxu1 %v8855_v16  ;;  %v5287_v16 = vadd.f32 %v10442_v26, %v5079_v58  ;;  %v10566_v26 = vld [vmem:[#allocation9 + $0x138] ss:$12 sps:$4 sm:$0xff]  }
 0x7ae   :  { %6028 = vmatprep.subr.bf16.mxu0 %v10497_v52  ;;  %8270 = vmatprep.subr.bf16.mxu1 %v10774_v7  ;;  %v7472_v46 = vmul.f32 -1.442695, %v8351_v51  ;;  %v8891_v19 = vld [vmem:[#allocation9 + $0x140] ss:$12 sps:$4 sm:$0xff]   ;;  %v10573_v32 = vld [vmem:[#allocation9 + $0x150] ss:$12 sps:$4 sm:$0xff]  }
 0x7af   :  { %9036 = vpow2.f32 %v7471_v8  ;;  %v8895_v23 = vld [vmem:[#allocation9 + $0x158] ss:$12 sps:$4 sm:$0xff]   ;;  %v8899_v51 = vld [vmem:[#allocation9 + $0x170] ss:$12 sps:$4 sm:$0xff]  }
 0x7b0   :  { %9038 = vpow2.f32 %v7472_v46  ;;  %v10577_v8 = vld [vmem:[#allocation9 + $0x16c] ss:$12 sps:$4 sm:$0xff]  }
 0x7b1   :  { %6029 = vmatpush1.bf16.msra.mxu0 %v10499_v31  ;;  %8271 = vmatpush3.bf16.msra.mxu1 %v8859_v37  ;;  %v10580_v37 = vld [vmem:[#allocation9 + $0x168] ss:$12 sps:$4 sm:$0xff]  }
 0x7b2   :  { %6030 = vmatprep.subr.bf16.mxu0 %v10504_v53  ;;  %8272 = vmatprep.subr.bf16.mxu1 %v10774_v7 }
 0x7b5   :  { %6031 = vmatpush1.bf16.msra.mxu0 %v10507_v49  ;;  %8273 = vmatpush3.bf16.msra.mxu1 %v8863_v18 }
 0x7b6   :  { %6032 = vmatprep.subr.bf16.mxu0 %v10511_v12  ;;  %8274 = vmatprep.subr.bf16.mxu1 %v10774_v7 }
 0x7b9   :  { %v9037_v5 = vpop.eup %9036  ;;  %6033 = vmatpush1.bf16.msra.mxu0 %v10514_v56  ;;  %8275 = vmatpush3.bf16.msra.mxu1 %v8867_v54 }
 0x7ba   :  { %v5538_v25 = vadd.f32 1.0, %v9037_v5  ;;  %6260 = vmatprep.subr.bf16.mxu0 %v10518_v35  ;;  %8280 = vmatprep.subr.bf16.mxu1 %v10774_v7  ;;  %v9039_v45 = vpop.eup %9038 }
 0x7bb   :  { %v5545_v3 = vadd.f32 1.0, %v9039_v45 }
 0x7bc   :  { %9040 = vrcp.f32 %v5538_v25  ;;  %6051 = vmatmul.mubr.bf16.vlgmr.msra.gmra.mrb[72].mxu0 %v10451_v57  ;;  %8277 = vmatmul.mubr.bf16.vlgmr.msra.gmra.mrb[88].mxu1 %v10451_v57  ;;  %v5555_v57 = vadd.f32 %v10372_v27, %v10491_v15  ;;  %v10559_v27 = vld [vmem:[#allocation9 + $0x120] ss:$12 sps:$4 sm:$0xff]   ;;  %v8887_v15 = vld [vmem:[#allocation9 + $0x128] ss:$12 sps:$4 sm:$0xff]  }
 0x7bd   :  { %6261 = vmatpush1.bf16.msra.mxu0 %v10521_v9  ;;  %8281 = vmatpush3.bf16.msra.mxu1 %v8871_v2  ;;  %9042 = vrcp.f32 %v5545_v3 }
 0x7be   :  { %6262 = vmatprep.subr.bf16.mxu0 %v10525_v29  ;;  %8282 = vmatprep.subr.bf16.mxu1 %v10774_v7 }
 0x7bf   :  { %6292 = vmatprep.mubr.bf16.mxu0 %v10775_v47  ;;  %8296 = vmatprep.mubr.msk.bf16.mxu1 %vm9204_vm0, %v10774_v7 }
 0x7c1   :  { %6263 = vmatpush1.bf16.msra.mxu0 %v10530_v17  ;;  %8283 = vmatpush3.bf16.msra.mxu1 %v8875_v62 }
 0x7c2   :  { %6264 = vmatprep.subr.bf16.mxu0 %v10534_v1  ;;  %8284 = vmatprep.subr.bf16.mxu1 %v10774_v7 }
 0x7c5   :  { %6265 = vmatpush1.bf16.msra.mxu0 %v10540_v41  ;;  %8285 = vmatpush3.bf16.msra.mxu1 %v8879_v13 }
 0x7c6   :  { %v9041_v59 = vpop.eup %9040  ;;  %6266 = vmatprep.subr.bf16.mxu0 %v10544_v63  ;;  %8286 = vmatprep.subr.bf16.mxu1 %v10774_v7 }
 0x7c7   :  { %v5556_v38 = vmul.f32 %v9041_v59, %v5555_v57  ;;  %v9043_v10 = vpop.eup %9042 }
 0x7c8   :  { %v5559_v24 = vsub.f32 1.0, %v9043_v10  ;;  %v5561_v46 = vmul.f32 %v9043_v10, %v10396_v0  ;;  %v8900_v0 = vld [vmem:[#allocation7 + $0xc8] ss:$12 sps:$4 sm:$0xff]  }
 0x7c9   :  { %v5557_v60 = vadd.f32 %v5556_v38, %v5287_v16  ;;  %6267 = vmatpush1.bf16.msra.mxu0 %v10551_v50  ;;  %8287 = vmatpush3.bf16.msra.mxu1 %v8883_v39  ;;  %v10842_v38 = vld [vmem:[#allocation29_spill] sm:$0xff] }
 0x7ca   :  { %6268 = vmatprep.subr.bf16.mxu0 %v10555_v40  ;;  %8288 = vmatprep.subr.bf16.mxu1 %v10774_v7 }
 0x7cb   :  { %9044 = vtanh.f32 %v5557_v60 }
 0x7cd   :  { %6269 = vmatpush1.bf16.msra.mxu0 %v10559_v27  ;;  %8289 = vmatpush3.bf16.msra.mxu1 %v8887_v15 }
 0x7ce   :  { %6270 = vmatprep.subr.bf16.mxu0 %v10563_v61  ;;  %8290 = vmatprep.subr.bf16.mxu1 %v10774_v7 }
 0x7d1   :  { %6271 = vmatpush1.bf16.msra.mxu0 %v10566_v26  ;;  %8291 = vmatpush3.bf16.msra.mxu1 %v8891_v19 }
 0x7d2   :  { %6272 = vmatprep.subr.bf16.mxu0 %v10570_v42  ;;  %8292 = vmatprep.subr.bf16.mxu1 %v10774_v7 }
 0x7d5   :  { %v9045_v21 = vpop.eup %9044  ;;  %6273 = vmatpush1.bf16.msra.mxu0 %v10573_v32  ;;  %8293 = vmatpush3.bf16.msra.mxu1 %v8895_v23 }
 0x7d6   :  { %6274 = vmatprep.subr.bf16.mxu0 %v10577_v8  ;;  %8294 = vmatprep.subr.bf16.mxu1 %v10774_v7  ;;  %v5560_v18 = vmul.f32 %v9045_v21, %v5559_v24 }
 0x7d8   :  { %v10585_v54 = vadd.f32 %v5561_v46, %v5560_v18 }
 0x7d9   :  { %6275 = vmatpush1.bf16.msra.mxu0 %v10580_v37  ;;  %8295 = vmatpush3.bf16.msra.mxu1 %v8899_v51 }
 0x7da   :  { %5563 = vst [vmem:[#allocation10 + $0x28] sm:$0xff] %v10585_v54  ;;  %v6099_v5 = vpack.c.bf16 %v10585_v54, %v10585_v54  ;;  %6550 = vmatprep.subr.bf16.mxu0 %v10427_v36  ;;  %8300 = vmatprep.subr.bf16.mxu1 %v10774_v7  ;;  %v8901_v36 = vld [vmem:[#allocation7 + $0xe0] ss:$12 sps:$4 sm:$0xff]  }
 0x7dc   :  { %6293 = vmatmul.mubr.bf16.vlgmr.msra.gmra.mrb[72].mxu0 %v6099_v5  ;;  %8297 = vmatmul.mubr.bf16.vlgmr.msra.gmra.mrb[92].mxu1 %v6099_v5 }
 0x7dd   :  { %6551 = vmatpush1.bf16.msra.mxu0 %v10447_v34  ;;  %6582 = vmatprep.mubr.bf16.mxu0 %v10775_v47  ;;  %v8902_v34 = vld [vmem:[#allocation7 + $0xf8] ss:$12 sps:$4 sm:$0xff]  }
 0x7de   :  { %6552 = vmatprep.subr.bf16.mxu0 %v10453_v30  ;;  %8316 = vmatprep.mubr.msk.bf16.mxu1 %vm9204_vm0, %v10774_v7  ;;  %v8903_v30 = vld [vmem:[#allocation7 + $0x110] ss:$12 sps:$4 sm:$0xff]  }
 0x7df   :  { %8301 = vmatpush3.bf16.msra.mxu1 %v8900_v0  ;;  %v8908_v0 = vld [vmem:[#allocation9 + $0xc8] ss:$12 sps:$4 sm:$0xff]  }
 0x7e0   :  { %8302 = vmatprep.subr.bf16.mxu1 %v10774_v7 }
 0x7e1   :  { %6553 = vmatpush1.bf16.msra.mxu0 %v10458_v55  ;;  %v8904_v55 = vld [vmem:[#allocation7 + $0x128] ss:$12 sps:$4 sm:$0xff]  }
 0x7e2   :  { %6554 = vmatprep.subr.bf16.mxu0 %v10462_v28  ;;  %v8905_v28 = vld [vmem:[#allocation7 + $0x140] ss:$12 sps:$4 sm:$0xff]  }
 0x7e3   :  { %8303 = vmatpush3.bf16.msra.mxu1 %v8901_v36  ;;  %v8909_v36 = vld [vmem:[#allocation9 + $0xe0] ss:$12 sps:$4 sm:$0xff]  }
 0x7e4   :  { %8304 = vmatprep.subr.bf16.mxu1 %v10774_v7 }
 0x7e5   :  { %6555 = vmatpush1.bf16.msra.mxu0 %v10468_v33  ;;  %v8906_v33 = vld [vmem:[#allocation7 + $0x158] ss:$12 sps:$4 sm:$0xff]  }
 0x7e6   :  { %6556 = vmatprep.subr.bf16.mxu0 %v10472_v48  ;;  %v8907_v48 = vld [vmem:[#allocation7 + $0x170] ss:$12 sps:$4 sm:$0xff]  }
 0x7e7   :  { %8305 = vmatpush3.bf16.msra.mxu1 %v8902_v34 }
 0x7e8   :  { %8306 = vmatprep.subr.bf16.mxu1 %v10774_v7 }
 0x7e9   :  { %6557 = vmatpush1.bf16.msra.mxu0 %v10475_v44 }
 0x7ea   :  { %6558 = vmatprep.subr.bf16.mxu0 %v10484_v20 }
 0x7eb   :  { %8307 = vmatpush3.bf16.msra.mxu1 %v8903_v30 }
 0x7ec   :  { %8308 = vmatprep.subr.bf16.mxu1 %v10774_v7 }
 0x7ed   :  { %6559 = vmatpush1.bf16.msra.mxu0 %v10489_v22  ;;  %v10840_v22 = vld [vmem:[#allocation33_spill] sm:$0xff] }
 0x7ee   :  { %6560 = vmatprep.subr.bf16.mxu0 %v10497_v52 }
 0x7ef   :  { %8309 = vmatpush3.bf16.msra.mxu1 %v8904_v55 }
 0x7f0   :  { %8310 = vmatprep.subr.bf16.mxu1 %v10774_v7 }
 0x7f1   :  { %6561 = vmatpush1.bf16.msra.mxu0 %v10499_v31 }
 0x7f2   :  { %6562 = vmatprep.subr.bf16.mxu0 %v10504_v53 }
 0x7f3   :  { %8311 = vmatpush3.bf16.msra.mxu1 %v8905_v28 }
 0x7f4   :  { %8312 = vmatprep.subr.bf16.mxu1 %v10774_v7 }
 0x7f5   :  { %6563 = vmatpush1.bf16.msra.mxu0 %v10507_v49  ;;  %v10841_v49 = vld [vmem:[#allocation34_spill] sm:$0xff] }
 0x7f6   :  { %6564 = vmatprep.subr.bf16.mxu0 %v10511_v12 }
 0x7f7   :  { %8313 = vmatpush3.bf16.msra.mxu1 %v8906_v33 }
 0x7f8   :  { %8314 = vmatprep.subr.bf16.mxu1 %v10774_v7 }
 0x7f9   :  { %6565 = vmatpush1.bf16.msra.mxu0 %v10514_v56 }
 0x7fa   :  { %6792 = vmatprep.subr.bf16.mxu0 %v10518_v35 }
 0x7fb   :  { %8315 = vmatpush3.bf16.msra.mxu1 %v8907_v48 }
 0x7fc   :  { %8320 = vmatprep.subr.bf16.mxu1 %v10774_v7 }
 0x86f   :  { %v5762_v44 = vpop.f32.mrb[68].mxu0  ;;  %v5803_v20 = vpop.f32.mrb[84].mxu1 }
 0x870   :  { %v5809_v52 = vadd.f32 %v5762_v44, %v10840_v22  ;;  %v5764_v31 = vpop.f32.mrb[69].mxu0  ;;  %v8258_v53 = vpop.f32.mrb[85].mxu1  ;;  %v5830_v39 = vadd.f32 %v10438_v43, %v5803_v20 }
 0x871   :  { %v5816_v12 = vadd.f32 %v5764_v31, %v10841_v49  ;;  %v5766_v56 = vpop.f32.mrb[70].mxu0  ;;  %v5806_v35 = vpop.f32.mrb[86].mxu1 }
 0x872   :  { %v7499_v2 = vmul.f32 -1.442695, %v5809_v52  ;;  %v5767_v25 = vpop.f32.mrb[71].mxu0  ;;  %v8259_v62 = vpop.f32.mrb[87].mxu1 }
 0x873   :  { %v7500_v45 = vmul.f32 -1.442695, %v5816_v12 }
 0x874   :  { %9046 = vpow2.f32 %v7499_v2 }
 0x875   :  { %9048 = vpow2.f32 %v7500_v45 }
 0x87e   :  { %v9047_v13 = vpop.eup %9046 }
 0x87f   :  { %v5813_v58 = vadd.f32 1.0, %v9047_v13  ;;  %v9049_v3 = vpop.eup %9048 }
 0x880   :  { %v5820_v57 = vadd.f32 1.0, %v9049_v3 }
 0x881   :  { %9050 = vrcp.f32 %v5813_v58 }
 0x882   :  { %9052 = vrcp.f32 %v5820_v57 }
 0x88b   :  { %v9051_v59 = vpop.eup %9050 }
 0x88c   :  { %v5831_v16 = vmul.f32 %v9051_v59, %v5830_v39  ;;  %v9053_v24 = vpop.eup %9052  ;;  %v7555_v59 = vld [vmem:[%s10710_s4 + $0x3] sm:$0x7] }
 0x88d   :  { %v5834_v21 = vsub.f32 1.0, %v9053_v24  ;;  %v5836_v46 = vmul.f32 %v9053_v24, %v10445_v11  ;;  %v8910_v11 = vld [vmem:[#allocation9 + $0xf8] ss:$12 sps:$4 sm:$0xff]  }
 0x88e   :  { %v5832_v60 = vadd.f32 %v5831_v16, %v10842_v38  ;;  %v6410_v16 = vrot.slane %v7555_v59, %v9370_v4 }
 0x88f   :  { %v10624_v15 = vpop.f32.mrb[88].mxu1 }
 0x890   :  { %9054 = vtanh.f32 %v5832_v60  ;;  %v8278_v19 = vpop.f32.mrb[89].mxu1 }
 0x891   :  { %v6096_v10 = vpop.f32.mrb[90].mxu1 }
 0x892   :  { %v8279_v23 = vpop.f32.mrb[91].mxu1 }
 0x89a   :  { %v9055_v51 = vpop.eup %9054 }
 0x89b   :  { %v5835_v18 = vmul.f32 %v9055_v51, %v5834_v21 }
 0x89d   :  { %v5837_v5 = vadd.f32 %v5836_v46, %v5835_v18 }
 0x89f   :  { %v6372_v43 = vpack.c.bf16 %v5837_v5, %v5837_v5  ;;  %6903 = vst [vmem:[#allocation11] sm:$0xff] %v5837_v5 }
 0x8a1   :  { %6583 = vmatmul.mubr.bf16.vlgmr.msra.gmra.mrb[76].mxu0 %v6372_v43  ;;  %8317 = vmatmul.mubr.bf16.vlgmr.msra.gmra.mrb[96].mxu1 %v6372_v43 }
 0x8a2   :  { %6793 = vmatpush1.bf16.msra.mxu0 %v10521_v9  ;;  %8321 = vmatpush3.bf16.msra.mxu1 %v8908_v0  ;;  %v8911_v9 = vld [vmem:[#allocation9 + $0x110] ss:$12 sps:$4 sm:$0xff]  }
 0x8a3   :  { %6794 = vmatprep.subr.bf16.mxu0 %v10525_v29  ;;  %8322 = vmatprep.subr.bf16.mxu1 %v10774_v7  ;;  %v7502_v29 = vld [vmem:[%s10710_s4 + $0x3] sm:$0x7]  ;;  %s9205_s4 = smov [#allocation10]  }
 0x8a4   :  { %6824 = vmatprep.mubr.bf16.mxu0 %v10775_v47  ;;  %8336 = vmatprep.mubr.msk.bf16.mxu1 %vm9204_vm0, %v10774_v7  ;;  %v5878_v47 = vrot.slane %v7502_v29, %v9370_v4  ;;  %s6911_s8 = sshll.u32 %s9205_s4, 4  ;;  %s6912_s8 = int_to_ptr.vmem [resolvable:$true] %s6911_s8 }
 0x8a5   :  { %s9143_s13 = scalar_lea.vmem %s6912_s8, 1024  ;;  %p9148_p11 = scmp.lt.s32.totalorder %s6912_s8, %s6912_s8 }
 0x8a6   :  { %6795 = vmatpush1.bf16.msra.mxu0 %v10530_v17  ;;  %8323 = vmatpush3.bf16.msra.mxu1 %v8909_v36  ;;  %v8912_v17 = vld [vmem:[#allocation9 + $0x128] ss:$12 sps:$4 sm:$0xff]   ;;  %v6418_v36 = vrot.slane %v7555_v59, %v9381_v14  ;;  %p9144_p10 = scmp.ne.s32.totalorder %s6912_s8, %s9143_s13  ;;  %p9149_p12 = scmp.lt.s32.totalorder %s9143_s13, %s9143_s13 }
 0x8a7   :  { %6796 = vmatprep.subr.bf16.mxu0 %v10534_v1  ;;  %8324 = vmatprep.subr.bf16.mxu1 %v10774_v7 }
 0x8a8   :  { %p9150_p13 = por %p9149_p12, %p9148_p11 }
 0x8aa   :  { %6797 = vmatpush1.bf16.msra.mxu0 %v10540_v41  ;;  %8325 = vmatpush3.bf16.msra.mxu1 %v8910_v11  ;;  %v5882_v41 = vrot.slane %v7502_v29, %v9375_v6  ;;  %p9151_p0 = pnand %p9150_p13, %p9144_p10 }
 0x8ab   :  { %6798 = vmatprep.subr.bf16.mxu0 %v10544_v63  ;;  %8326 = vmatprep.subr.bf16.mxu1 %v10774_v7 }
 0x8ae   :  { %6799 = vmatpush1.bf16.msra.mxu0 %v10551_v50  ;;  %8327 = vmatpush3.bf16.msra.mxu1 %v8911_v9  ;;  %v8913_v50 = vld [vmem:[#allocation9 + $0x140] ss:$12 sps:$4 sm:$0xff]  }
 0x8af   :  { %v6294_v1 = vpop.f32.mrb[72].mxu0  ;;  %v6335_v34 = vpop.f32.mrb[92].mxu1  ;;  %6800 = vmatprep.subr.bf16.mxu0 %v10555_v40  ;;  %8328 = vmatprep.subr.bf16.mxu1 %v10774_v7  ;;  %v8914_v40 = vld [vmem:[#allocation9 + $0x158] ss:$12 sps:$4 sm:$0xff]  }
 0x8b0   :  { %v8352_v30 = vadd.f32 %v6294_v1, %v5878_v47  ;;  %v6296_v55 = vpop.f32.mrb[73].mxu0  ;;  %v8298_v28 = vpop.f32.mrb[93].mxu1 }
 0x8b1   :  { %v6298_v63 = vpop.f32.mrb[74].mxu0  ;;  %v6338_v33 = vpop.f32.mrb[94].mxu1  ;;  %v8353_v22 = vadd.f32 %v6296_v55, %v5882_v41 }
 0x8b2   :  { %v7551_v48 = vmul.f32 -1.442695, %v8352_v30  ;;  %v6299_v44 = vpop.f32.mrb[75].mxu0  ;;  %v8299_v20 = vpop.f32.mrb[95].mxu1  ;;  %6801 = vmatpush1.bf16.msra.mxu0 %v10559_v27  ;;  %8329 = vmatpush3.bf16.msra.mxu1 %v8912_v17  ;;  %v8915_v27 = vld [vmem:[#allocation9 + $0x170] ss:$12 sps:$4 sm:$0xff]  }
 0x8b3   :  { %6802 = vmatprep.subr.bf16.mxu0 %v10563_v61  ;;  %8330 = vmatprep.subr.bf16.mxu1 %v10774_v7  ;;  %v7552_v52 = vmul.f32 -1.442695, %v8353_v22 }
 0x8b4   :  { %9056 = vpow2.f32 %v7551_v48 }
 0x8b5   :  { %9058 = vpow2.f32 %v7552_v52 }
 0x8b6   :  { %6803 = vmatpush1.bf16.msra.mxu0 %v10566_v26  ;;  %8331 = vmatpush3.bf16.msra.mxu1 %v8913_v50 }
 0x8b7   :  { %6804 = vmatprep.subr.bf16.mxu0 %v10570_v42  ;;  %8332 = vmatprep.subr.bf16.mxu1 %v10774_v7  ;;  %v7554_v42 = vld [vmem:[%s10711_s5 + $0x1] ss:$0 sm:$0xff] }
 0x8b8   :  { %v6362_v49 = vadd.f32 %v7554_v42, %v6335_v34 }
 0x8ba   :  { %6805 = vmatpush1.bf16.msra.mxu0 %v10573_v32  ;;  %8333 = vmatpush3.bf16.msra.mxu1 %v8914_v40  ;;  %v5886_v32 = vrot.slane %v7502_v29, %v9381_v14 }
 0x8bb   :  { %6806 = vmatprep.subr.bf16.mxu0 %v10577_v8  ;;  %8334 = vmatprep.subr.bf16.mxu1 %v10774_v7 }
 0x8bc   :  { %v6094_v8 = vadd.f32 %v10624_v15, %v5886_v32  ;;  %v6414_v15 = vrot.slane %v7555_v59, %v9375_v6 }
 0x8be   :  { %v9057_v61 = vpop.eup %9056  ;;  %6807 = vmatpush1.bf16.msra.mxu0 %v10580_v37  ;;  %8335 = vmatpush3.bf16.msra.mxu1 %v8915_v27 }
 0x8bf   :  { %v6345_v26 = vadd.f32 1.0, %v9057_v61  ;;  %v9059_v31 = vpop.eup %9058 }
 0x8c0   :  { %v6352_v53 = vadd.f32 1.0, %v9059_v31 }
 0x8c1   :  { %9060 = vrcp.f32 %v6345_v26 }
 0x8c2   :  { %9062 = vrcp.f32 %v6352_v53 }
 0x8cb   :  { %v9061_v12 = vpop.eup %9060 }
 0x8cc   :  { %v6363_v56 = vmul.f32 %v9061_v12, %v6362_v49  ;;  %v9063_v37 = vpop.eup %9062 }
 0x8cd   :  { %v6366_v35 = vsub.f32 1.0, %v9063_v37  ;;  %v6368_v62 = vmul.f32 %v9063_v37, %v10585_v54 }
 0x8ce   :  { %v6364_v7 = vadd.f32 %v6363_v56, %v6094_v8 }
 0x8d0   :  { %9064 = vtanh.f32 %v6364_v7 }
 0x8da   :  { %v9065_v2 = vpop.eup %9064 }
 0x8db   :  { %v6367_v25 = vmul.f32 %v9065_v2, %v6366_v35 }
 0x8dd   :  { %v6369_v45 = vadd.f32 %v6368_v62, %v6367_v25 }
 0x8df   :  { %6370 = vst [vmem:[#allocation10 + $0x30] sm:$0xff] %v6369_v45  ;;  %v6631_v13 = vpack.c.bf16 %v6369_v45, %v6369_v45 }
 0x8e1   :  { %6825 = vmatmul.mubr.bf16.vlgmr.msra.gmra.mrb[76].mxu0 %v6631_v13  ;;  %8337 = vmatmul.mubr.bf16.vlgmr.msra.gmra.mrb[100].mxu1 %v6631_v13 }
 0x974   :  { %v6625_v58 = vpop.f32.mrb[96].mxu1 }
 0x975   :  { %v8318_v3 = vpop.f32.mrb[97].mxu1  ;;  %v6626_v29 = vadd.f32 %v6625_v58, %v6418_v36 }
 0x976   :  { %v6628_v57 = vpop.f32.mrb[98].mxu1 }
 0x977   :  { %v8319_v39 = vpop.f32.mrb[99].mxu1 }
 0x9b4   :  { %v6826_v38 = vpop.f32.mrb[76].mxu0  ;;  %v6867_v60 = vpop.f32.mrb[100].mxu1 }
 0x9b5   :  { %v8354_v54 = vadd.f32 %v6826_v38, %v6410_v16  ;;  %v6828_v19 = vpop.f32.mrb[77].mxu0  ;;  %v8338_v10 = vpop.f32.mrb[101].mxu1  ;;  %v6894_v6 = vadd.f32 %v7554_v42, %v6867_v60 }
 0x9b6   :  { %v6830_v23 = vpop.f32.mrb[78].mxu0  ;;  %v6870_v24 = vpop.f32.mrb[102].mxu1  ;;  %v8355_v46 = vadd.f32 %v6828_v19, %v6414_v15 }
 0x9b7   :  { %v7604_v21 = vmul.f32 -1.442695, %v8354_v54  ;;  %v6831_v51 = vpop.f32.mrb[79].mxu0  ;;  %v8339_v18 = vpop.f32.mrb[103].mxu1 }
 0x9b8   :  { %v7605_v5 = vmul.f32 -1.442695, %v8355_v46 }
 0x9b9   :  { %9066 = vpow2.f32 %v7604_v21 }
 0x9ba   :  { %9068 = vpow2.f32 %v7605_v5 }
 0x9c3   :  { %v9067_v0 = vpop.eup %9066 }
 0x9c4   :  { %v6877_v43 = vadd.f32 1.0, %v9067_v0  ;;  %v9069_v4 = vpop.eup %9068 }
 0x9c5   :  { %v6884_v11 = vadd.f32 1.0, %v9069_v4 }
 0x9c6   :  { %9070 = vrcp.f32 %v6877_v43 }
 0x9c7   :  { %9072 = vrcp.f32 %v6884_v11 }
 0x9d0   :  { %v9071_v9 = vpop.eup %9070 }
 0x9d1   :  { %v6895_v47 = vmul.f32 %v9071_v9, %v6894_v6  ;;  %v9073_v1 = vpop.eup %9072 }
 0x9d2   :  { %v6898_v34 = vsub.f32 1.0, %v9073_v1  ;;  %v6900_v55 = vmul.f32 %v9073_v1, %v6369_v45 }
 0x9d3   :  { %v6896_v17 = vadd.f32 %v6895_v47, %v6626_v29 }
 0x9d5   :  { %9074 = vtanh.f32 %v6896_v17 }
 0x9df   :  { %v9075_v41 = vpop.eup %9074 }
 0x9e0   :  { %v6899_v30 = vmul.f32 %v9075_v41, %v6898_v34 }
 0x9e2   :  { %v6901_v28 = vadd.f32 %v6900_v55, %v6899_v30 }
 0x9e4   :  { %6902 = vst [vmem:[#allocation10 + $0x38] sm:$0xff] %v6901_v28  ;;  %6905 = vst [vmem:[#allocation11 + $0x8] sm:$0xff] %v6901_v28 }
 0x9e5   :  { %9154 = shalt.err (!%p9151_p0)
}
 0x9e6   :  { %s9155_s17 = scalar_lea.hbm %s10712_s6, 1024 }
 0x9e7   :  { %p9156_p1 = scmp.ne.s32.totalorder %s10712_s6, %s9155_s17  ;;  %p9159_p2 = scmp.lt.u32.totalorder %s9155_s17, %s10712_s6 }
 0x9e9   :  { %p9161_p3 = pnand %p9159_p2, %p9156_p1 }
 0x9eb   :  { %9164 = shalt.err (!%p9161_p3)
}
 0x9ec   :  { %6917 = dma.vmem_to_hbm [thread:$0]  %s6912_s8, 1024, %s10712_s6, [#allocation6], %s9199_s2, %s9199_s2, %s9200_s25  }
 0x9ed   :  { %s9165_s19 = scalar_lea.vmem %s10669_s10, 256  ;;  %p9170_p5 = scmp.lt.s32.totalorder %s10669_s10, %s10669_s10 }
 0x9ee   :  { %p9166_p4 = scmp.ne.s32.totalorder %s10669_s10, %s9165_s19  ;;  %p9171_p6 = scmp.lt.s32.totalorder %s9165_s19, %s9165_s19 }
 0x9f0   :  { %p9172_p7 = por %p9171_p6, %p9170_p5 }
 0x9f2   :  { %p9173_p8 = pnand %p9172_p7, %p9166_p4 }
 0x9f4   :  { %9176 = shalt.err (!%p9173_p8)
}
 0x9f5   :  { %s9177_s22 = scalar_lea.hbm %s10713_s7, 256 }
 0x9f6   :  { %p9178_p9 = scmp.ne.s32.totalorder %s10713_s7, %s9177_s22  ;;  %p9181_p10 = scmp.lt.u32.totalorder %s9177_s22, %s10713_s7 }
 0x9f8   :  { %p9183_p11 = pnand %p9181_p10, %p9178_p9 }
 0x9fa   :  { %9186 = shalt.err (!%p9183_p11)
}
 0x9fb   :  { %6929 = dma.vmem_to_hbm [thread:$0]  %s10669_s10, 256, %s10713_s7, [#allocation12], %s9199_s2, %s9199_s2, %s9200_s25  }
 0x9fc   :  { %9191 = dma.done.wait [#allocation6], 1024  }
 0x9fd   :  { %9192 = vsyncadd [#allocation6], 4294966272 }
 0x9fe   :  { %9193 = dma.done.wait [#allocation12], 256  }
 0x9ff   :  { %9194 = vsyncadd [#allocation12], 4294967040 }
 0xa00   :  { %6936 = vsyncpa [#allocation5], 1 }
 0xa01   :  { %6937 = vsyncpa [#allocation8], 1 }
 0xa02   :  { %6938 = vsyncpa [#allocation6], 1 }
 0xa03   :  { %6939 = vsyncpa [#allocation12], 1 }

</bundles_post_ra>
